<compile_context>
chip_gen: v7x
topology: tpu7x:2x2x1
jax: 0.10.0
libtpu: 0.0.40
codegen_flags: <defaults>
</compile_context>

<pallas_src>
import functools
import math

import jax
import jax.numpy as jnp
from jax.experimental import pallas as pl
from jax.experimental.pallas import tpu as pltpu


def _round_up(x, m):
    return ((x + m - 1) // m) * m


def attention_conv_kernel(colmask_ref, x_ref, w_ref, o_ref,
                          fbuf_ref, patch_ref, qkv_ref,
                          *, K, Cin, Cout, H, W, BT):
    """One grid step processes BT images, fused side-by-side along lanes."""
    HW = H * W
    NK = K * K                        # 9 attention neighbors
    KP = 2 * K - 1                    # 5 combined offsets per spatial dim
    NOFF = KP * KP                    # 25
    OFF = (K - 1) * W + (K - 1)       # origin of x inside one flat padded segment
    L = HW + 2 * OFF                  # flat padded segment length per image
    NPATCH = patch_ref.shape[0]
    LANES = BT * HW

    # ---- 1. per-image flat zero-padded input (row stride W), images side by
    #         side.  Only the pad strips are cleared (vst is the scarce slot).
    for b in range(BT):
        s0 = b * L
        fbuf_ref[:, s0:s0 + OFF] = jnp.zeros((Cin, OFF), jnp.float32)
        fbuf_ref[:, s0 + OFF + HW:s0 + L] = jnp.zeros((Cin, OFF), jnp.float32)
        fbuf_ref[:, s0 + OFF:s0 + OFF + HW] = x_ref[b]

    # Horizontal wrap masks: precomputed and pre-broadcast to Cin rows outside
    # the kernel, so no in-kernel broadcast_in_dim (JAX would not CSE 25 of them).
    cms = [colmask_ref[ow * Cin:(ow + 1) * Cin, :] for ow in range(KP)]

    # ---- 2. im2col over the 5x5 combined (conv tap + window shift) offsets.
    # Patch block o = oh*KP + ow holds x shifted by (oh-2, ow-2); each shift is
    # a contiguous lane slice of fbuf, horizontal wrap killed by a 0/1 mask.
    # (0*non-finite would be NaN; inputs are ordinary activations.)
    for b in range(BT):
        base = b * L + OFF
        l0 = b * HW
        for oh in range(KP):
            for ow in range(KP):
                o = oh * KP + ow
                s = base + (oh - (K - 1)) * W + (ow - (K - 1))
                patch_ref[o * Cin:(o + 1) * Cin, l0:l0 + HW] = (
                    fbuf_ref[:, s:s + HW] * cms[ow])
    # Row NOFF*Cin is the ones-row feeding the folded-in relative embeddings;
    # the remaining alignment-pad rows have zero weight columns but must be
    # finite.  Tiny store, kept unconditional so it stays valid even if a
    # "parallel" grid axis is split across TensorCores.
    patch_ref[NOFF * Cin:NPATCH, :] = jnp.ones(
        (NPATCH - NOFF * Cin, LANES), jnp.float32)

    # ---- 3. one MXU matmul: q | 9 k-windows(+rel) | 9 v-windows --------------
    qkv_ref[...] = jnp.dot(w_ref[...], patch_ref[...],
                           preferred_element_type=jnp.float32)

    # ---- 4. two-pass softmax over the 9 neighbors -----------------------------
    # All windows are resident in qkv_ref, so: max pass, then one exp pass.
    # 9 exps total (EUP is the scarce unit here) and no alpha-rescale chain.
    q = qkv_ref[0:Cout, :]

    def k_win(n):
        return qkv_ref[(1 + n) * Cout:(2 + n) * Cout, :]

    def v_win(n):
        return qkv_ref[(1 + NK + n) * Cout:(2 + NK + n) * Cout, :]

    m = q * k_win(0)
    for n in range(1, NK):
        m = jnp.maximum(m, q * k_win(n))

    denom = jnp.zeros_like(m)
    numer = jnp.zeros_like(m)
    for n in range(NK):
        e = jnp.exp(q * k_win(n) - m)
        denom = denom + e
        numer = numer + e * v_win(n)

    res = (numer * pl.reciprocal(denom, approx=True)).astype(o_ref.dtype)

    # ---- 5. per-image lane-dense (Cout, HW) output stores ---------------------
    for b in range(BT):
        o_ref[b] = res[:, b * HW:(b + 1) * HW]


def make_attention_conv_params(wq, wk, wv, rel_h, rel_w, *, H, W, eps=1e-5):
    """Build the constant kernel operands ONCE (at weight-load time)."""
    Cout, Cin, K, _ = wq.shape
    assert K == 3 and Cout % 2 == 0
    HW = H * W
    NK = K * K
    KP = 2 * K - 1
    NOFF = KP * KP
    NPATCH = _round_up(NOFF * Cin + 1, 128)       # ones row + pad to full 128-K tile
    NROWS = (1 + 2 * NK) * Cout

    bn_scale = 1.0 / math.sqrt(1.0 + eps)         # eval-mode SyncBN folded in

    def embed(w, sh, sw):
        # place a (Cout, Cin, K, K) conv weight at combined offset (sh, sw)
        wt = jnp.transpose(w, (0, 2, 3, 1)) * bn_scale            # (Cout, K, K, Cin)
        z = jnp.zeros((Cout, KP, KP, Cin), w.dtype)
        z = z.at[:, sh:sh + K, sw:sw + K, :].set(wt)
        return z.reshape(Cout, NOFF * Cin)

    blocks = [embed(wq, 1, 1)]                                    # query
    for dh in range(K):
        for dw in range(K):
            blocks.append(embed(wk, dh, dw))                      # key windows
    for dh in range(K):
        for dw in range(K):
            blocks.append(embed(wv, dh, dw))                      # value windows
    w_main = jnp.concatenate(blocks, axis=0)                      # (NROWS, 25*Cin)

    # relative embedding folded in as the coefficient of the ones-row
    rh = rel_h.reshape(Cout // 2, K)                              # indexed by dh
    rw = rel_w.reshape(Cout // 2, K)                              # indexed by dw
    rel_cols = [jnp.zeros((Cout,), w_main.dtype)]                 # q: no rel
    for dh in range(K):
        for dw in range(K):
            rel_cols.append(jnp.concatenate([rh[:, dh], rw[:, dw]]))
    rel_cols += [jnp.zeros((Cout,), w_main.dtype)] * NK           # v: no rel
    rel_col = jnp.concatenate(rel_cols)[:, None]                  # (NROWS, 1)

    pad_cols = jnp.zeros((NROWS, NPATCH - NOFF * Cin - 1), w_main.dtype)
    w_big = jnp.concatenate([w_main, rel_col, pad_cols], axis=1)  # (NROWS, NPATCH)

    # horizontal wrap mask pre-broadcast to Cin rows per offset:
    # colmask[ow*Cin + c, y*W + x] = (0 <= x + ow - 2 < W)
    col = jnp.arange(HW, dtype=jnp.int32) % W
    offs = jnp.arange(KP, dtype=jnp.int32)[:, None] - (K - 1)
    colmask = ((col[None, :] + offs >= 0) &
               (col[None, :] + offs < W)).astype(jnp.float32)     # (KP, HW)
    colmask = jnp.repeat(colmask, Cin, axis=0)                    # (KP*Cin, HW)

    return w_big, colmask


def attention_conv_pallas(x_nchw, w_big, colmask, *, kernel_size=3, batch_tile=None):
    B, Cin, H, W = x_nchw.shape
    K = kernel_size
    assert K == 3, "default config only (kernel_size=3, stride=1, padding=1)"
    NK = K * K
    KP = 2 * K - 1
    HW = H * W
    NROWS, NPATCH = w_big.shape
    Cout = NROWS // (1 + 2 * NK)
    assert colmask.shape == (KP * Cin, HW)

    BT = B if batch_tile is None else batch_tile
    assert B % BT == 0
    L = HW + 2 * ((K - 1) * W + (K - 1))          # per-image flat padded length

    x_flat = x_nchw.reshape(B, Cin, HW)           # free reshape (stays NCHW)

    kern = functools.partial(attention_conv_kernel,
                             K=K, Cin=Cin, Cout=Cout, H=H, W=W, BT=BT)
    out_flat = pl.pallas_call(
        kern,
        out_shape=jax.ShapeDtypeStruct((B, Cout, HW), x_nchw.dtype),
        grid=(B // BT,),
        in_specs=[
            pl.BlockSpec((KP * Cin, HW), lambda g: (0, 0)),       # colmask (const)
            pl.BlockSpec((BT, Cin, HW), lambda g: (g, 0, 0)),     # x batch tile
            pl.BlockSpec((NROWS, NPATCH), lambda g: (0, 0)),      # fused weights
        ],
        out_specs=pl.BlockSpec((BT, Cout, HW), lambda g: (g, 0, 0)),
        scratch_shapes=[
            pltpu.VMEM((Cin, BT * L), jnp.float32),       # flat zero-padded input
            pltpu.VMEM((NPATCH, BT * HW), jnp.float32),   # im2col patch matrix
            pltpu.VMEM((NROWS, BT * HW), jnp.float32),    # q | k windows | v windows
        ],
        compiler_params=pltpu.CompilerParams(dimension_semantics=("parallel",)),
    )(colmask, x_flat, w_big)

    return out_flat.reshape(B, Cout, H, W)                        # free reshape


def attention_conv_reference(x, wq, wk, wv, rel_h, rel_w, *, padding=1, K=3):
    """Plain-JAX reference mirroring the PyTorch forward (eval-mode BN)."""
    B, Cin, H, W = x.shape
    Cout = wq.shape[0]
    bn_scale = 1.0 / math.sqrt(1.0 + 1e-5)

    def conv(inp, w):
        return jax.lax.conv_general_dilated(
            inp, w, window_strides=(1, 1), padding=((1, 1), (1, 1)),
            dimension_numbers=('NCHW', 'OIHW', 'NCHW'),
            precision=jax.lax.Precision.HIGHEST) * bn_scale

    xp = jnp.pad(x, ((0, 0), (0, 0), (padding, padding), (padding, padding)))
    q = conv(x, wq)          # (B, Cout, H, W)
    k = conv(xp, wk)         # (B, Cout, H+2, W+2)
    v = conv(xp, wv)

    rh = rel_h.reshape(Cout // 2, K)
    rw = rel_w.reshape(Cout // 2, K)
    k_wins, v_wins = [], []
    for kh in range(K):
        for kw in range(K):
            rel_n = jnp.concatenate([rh[:, kh], rw[:, kw]])       # (Cout,)
            k_wins.append(k[:, :, kh:kh + H, kw:kw + W] + rel_n[None, :, None, None])
            v_wins.append(v[:, :, kh:kh + H, kw:kw + W])
    k_unf = jnp.stack(k_wins, axis=-1)  # (B, Cout, H, W, K*K)
    v_unf = jnp.stack(v_wins, axis=-1)
    logits = q[..., None] * k_unf
    attn = jax.nn.softmax(logits, axis=-1)
    return jnp.sum(attn * v_unf, axis=-1)  # (B, Cout, H, W)


if __name__ == "__main__":
    B, Cin, Cout, H, W, K = 2, 4, 8, 16, 16, 3

    key = jax.random.PRNGKey(0)
    k1, k2, k3, k4, k5, k6 = jax.random.split(key, 6)

    # kaiming_normal_(mode='fan_out', nonlinearity='relu'): std = sqrt(2 / (Cout*K*K))
    std = math.sqrt(2.0 / (Cout * K * K))
    wq = jax.random.normal(k1, (Cout, Cin, K, K), jnp.float32) * std
    wk = jax.random.normal(k2, (Cout, Cin, K, K), jnp.float32) * std
    wv = jax.random.normal(k3, (Cout, Cin, K, K), jnp.float32) * std
    rel_h = jax.random.normal(k4, (Cout // 2, 1, 1, K, 1), jnp.float32)
    rel_w = jax.random.normal(k5, (Cout // 2, 1, 1, 1, K), jnp.float32)
    x = jax.random.normal(k6, (B, Cin, H, W), jnp.float32)

    # Constant operands built once (weight-load time), reused across forwards.
    w_big, colmask = make_attention_conv_params(wq, wk, wv, rel_h, rel_w, H=H, W=W)
    w_big = jax.block_until_ready(w_big)
    colmask = jax.block_until_ready(colmask)

    out = attention_conv_pallas(x, w_big, colmask)
    out = jax.block_until_ready(out)

    ref = attention_conv_reference(x, wq, wk, wv, rel_h, rel_w)
    assert out.shape == (B, Cout, H, W), out.shape
    max_err = float(jnp.max(jnp.abs(out - ref)))
    # Tolerance accounts for approx reciprocal (EUP vrcp) + MXU f32 accumulation.
    if not jnp.allclose(out, ref, atol=5e-3, rtol=5e-3):
        raise AssertionError(f"Pallas kernel mismatch vs reference, max abs err={max_err}")

    print("KERNEL_OK")
</pallas_src>

<mosaic_0001>
module attributes {stable_mosaic.version = 11 : i64} {
  func.func @attention_conv_kernel(%arg0: i32, %arg1: memref<20x256xf32, #tpu.memory_space<vmem>>, %arg2: memref<2x4x256xf32, #tpu.memory_space<vmem>>, %arg3: memref<152x128xf32, #tpu.memory_space<vmem>>, %arg4: memref<2x8x256xf32, #tpu.memory_space<vmem>>, %arg5: memref<4x648xf32, #tpu.memory_space<vmem>>, %arg6: memref<128x512xf32, #tpu.memory_space<vmem>>, %arg7: memref<152x512xf32, #tpu.memory_space<vmem>>) attributes {dimension_semantics = [#tpu.dimension_semantics<parallel>], iteration_bounds = array<i64: 1>, scalar_prefetch = 0 : i64, scratch_operands = 3 : i64, tpu.core_type = #tpu.core_type<tc>, window_params = [{pipeline_mode = #tpu.pipeline_mode<synchronous>, transform_indices = @transform_0, window_bounds = array<i64: 20, 256>}, {transform_indices = @transform_1, window_bounds = array<i64: 2, 4, 256>}, {pipeline_mode = #tpu.pipeline_mode<synchronous>, transform_indices = @transform_2, window_bounds = array<i64: 152, 128>}, {transform_indices = @transform_3, window_bounds = array<i64: 2, 8, 256>}]} {
    %cst = arith.constant 0.000000e+00 : f32
    %0 = vector.broadcast %cst : f32 to vector<4x34xf32>
    %c0 = arith.constant 0 : index
    %c0_0 = arith.constant 0 : index
    %1 = vector.load %arg5[%c0, %c0_0] : memref<4x648xf32, #tpu.memory_space<vmem>>, vector<4x34xf32>
    tpu.vector_store %arg5[%c0, %c0_0], %0 {strides = array<i32>} : memref<4x648xf32, #tpu.memory_space<vmem>>, vector<4x34xf32>,
    %cst_1 = arith.constant 0.000000e+00 : f32
    %2 = vector.broadcast %cst_1 : f32 to vector<4x34xf32>
    %c0_2 = arith.constant 0 : index
    %c290 = arith.constant 290 : index
    %3 = vector.load %arg5[%c0_2, %c290] : memref<4x648xf32, #tpu.memory_space<vmem>>, vector<4x34xf32>
    tpu.vector_store %arg5[%c0_2, %c290], %2 {strides = array<i32>} : memref<4x648xf32, #tpu.memory_space<vmem>>, vector<4x34xf32>,
    %c0_3 = arith.constant 0 : index
    %c0_4 = arith.constant 0 : index
    %c0_5 = arith.constant 0 : index
    %4 = vector.load %arg2[%c0_3, %c0_4, %c0_5] : memref<2x4x256xf32, #tpu.memory_space<vmem>>, vector<1x4x256xf32>
    %5 = vector.shape_cast %4 : vector<1x4x256xf32> to vector<4x256xf32>
    %c0_6 = arith.constant 0 : index
    %c34 = arith.constant 34 : index
    %6 = vector.load %arg5[%c0_6, %c34] : memref<4x648xf32, #tpu.memory_space<vmem>>, vector<4x256xf32>
    tpu.vector_store %arg5[%c0_6, %c34], %5 {strides = array<i32>} : memref<4x648xf32, #tpu.memory_space<vmem>>, vector<4x256xf32>,
    %cst_7 = arith.constant 0.000000e+00 : f32
    %7 = vector.broadcast %cst_7 : f32 to vector<4x34xf32>
    %c0_8 = arith.constant 0 : index
    %c324 = arith.constant 324 : index
    %8 = vector.load %arg5[%c0_8, %c324] : memref<4x648xf32, #tpu.memory_space<vmem>>, vector<4x34xf32>
    tpu.vector_store %arg5[%c0_8, %c324], %7 {strides = array<i32>} : memref<4x648xf32, #tpu.memory_space<vmem>>, vector<4x34xf32>,
    %cst_9 = arith.constant 0.000000e+00 : f32
    %9 = vector.broadcast %cst_9 : f32 to vector<4x34xf32>
    %c0_10 = arith.constant 0 : index
    %c614 = arith.constant 614 : index
    %10 = vector.load %arg5[%c0_10, %c614] : memref<4x648xf32, #tpu.memory_space<vmem>>, vector<4x34xf32>
    tpu.vector_store %arg5[%c0_10, %c614], %9 {strides = array<i32>} : memref<4x648xf32, #tpu.memory_space<vmem>>, vector<4x34xf32>,
    %c1 = arith.constant 1 : index
    %c0_11 = arith.constant 0 : index
    %c0_12 = arith.constant 0 : index
    %11 = vector.load %arg2[%c1, %c0_11, %c0_12] : memref<2x4x256xf32, #tpu.memory_space<vmem>>, vector<1x4x256xf32>
    %12 = vector.shape_cast %11 : vector<1x4x256xf32> to vector<4x256xf32>
    %c0_13 = arith.constant 0 : index
    %c358 = arith.constant 358 : index
    %13 = vector.load %arg5[%c0_13, %c358] : memref<4x648xf32, #tpu.memory_space<vmem>>, vector<4x256xf32>
    tpu.vector_store %arg5[%c0_13, %c358], %12 {strides = array<i32>} : memref<4x648xf32, #tpu.memory_space<vmem>>, vector<4x256xf32>,
    %c0_14 = arith.constant 0 : index
    %c0_15 = arith.constant 0 : index
    %14 = vector.load %arg1[%c0_14, %c0_15] : memref<20x256xf32, #tpu.memory_space<vmem>>, vector<4x256xf32>
    %c4 = arith.constant 4 : index
    %c0_16 = arith.constant 0 : index
    %15 = vector.load %arg1[%c4, %c0_16] : memref<20x256xf32, #tpu.memory_space<vmem>>, vector<4x256xf32>
    %c8 = arith.constant 8 : index
    %c0_17 = arith.constant 0 : index
    %16 = vector.load %arg1[%c8, %c0_17] : memref<20x256xf32, #tpu.memory_space<vmem>>, vector<4x256xf32>
    %c12 = arith.constant 12 : index
    %c0_18 = arith.constant 0 : index
    %17 = vector.load %arg1[%c12, %c0_18] : memref<20x256xf32, #tpu.memory_space<vmem>>, vector<4x256xf32>
    %c16 = arith.constant 16 : index
    %c0_19 = arith.constant 0 : index
    %18 = vector.load %arg1[%c16, %c0_19] : memref<20x256xf32, #tpu.memory_space<vmem>>, vector<4x256xf32>
    %c0_20 = arith.constant 0 : index
    %c0_21 = arith.constant 0 : index
    %19 = vector.load %arg5[%c0_20, %c0_21] : memref<4x648xf32, #tpu.memory_space<vmem>>, vector<4x256xf32>
    %20 = arith.mulf %19, %14 : vector<4x256xf32>
    %c0_22 = arith.constant 0 : index
    %c0_23 = arith.constant 0 : index
    %21 = vector.load %arg6[%c0_22, %c0_23] : memref<128x512xf32, #tpu.memory_space<vmem>>, vector<4x256xf32>
    tpu.vector_store %arg6[%c0_22, %c0_23], %20 {strides = array<i32>} : memref<128x512xf32, #tpu.memory_space<vmem>>, vector<4x256xf32>,
    %c0_24 = arith.constant 0 : index
    %c1_25 = arith.constant 1 : index
    %22 = vector.load %arg5[%c0_24, %c1_25] : memref<4x648xf32, #tpu.memory_space<vmem>>, vector<4x256xf32>
    %23 = arith.mulf %22, %15 : vector<4x256xf32>
    %c4_26 = arith.constant 4 : index
    %c0_27 = arith.constant 0 : index
    %24 = vector.load %arg6[%c4_26, %c0_27] : memref<128x512xf32, #tpu.memory_space<vmem>>, vector<4x256xf32>
    tpu.vector_store %arg6[%c4_26, %c0_27], %23 {strides = array<i32>} : memref<128x512xf32, #tpu.memory_space<vmem>>, vector<4x256xf32>,
    %c0_28 = arith.constant 0 : index
    %c2 = arith.constant 2 : index
    %25 = vector.load %arg5[%c0_28, %c2] : memref<4x648xf32, #tpu.memory_space<vmem>>, vector<4x256xf32>
    %26 = arith.mulf %25, %16 : vector<4x256xf32>
    %c8_29 = arith.constant 8 : index
    %c0_30 = arith.constant 0 : index
    %27 = vector.load %arg6[%c8_29, %c0_30] : memref<128x512xf32, #tpu.memory_space<vmem>>, vector<4x256xf32>
    tpu.vector_store %arg6[%c8_29, %c0_30], %26 {strides = array<i32>} : memref<128x512xf32, #tpu.memory_space<vmem>>, vector<4x256xf32>,
    %c0_31 = arith.constant 0 : index
    %c3 = arith.constant 3 : index
    %28 = vector.load %arg5[%c0_31, %c3] : memref<4x648xf32, #tpu.memory_space<vmem>>, vector<4x256xf32>
    %29 = arith.mulf %28, %17 : vector<4x256xf32>
    %c12_32 = arith.constant 12 : index
    %c0_33 = arith.constant 0 : index
    %30 = vector.load %arg6[%c12_32, %c0_33] : memref<128x512xf32, #tpu.memory_space<vmem>>, vector<4x256xf32>
    tpu.vector_store %arg6[%c12_32, %c0_33], %29 {strides = array<i32>} : memref<128x512xf32, #tpu.memory_space<vmem>>, vector<4x256xf32>,
    %c0_34 = arith.constant 0 : index
    %c4_35 = arith.constant 4 : index
    %31 = vector.load %arg5[%c0_34, %c4_35] : memref<4x648xf32, #tpu.memory_space<vmem>>, vector<4x256xf32>
    %32 = arith.mulf %31, %18 : vector<4x256xf32>
    %c16_36 = arith.constant 16 : index
    %c0_37 = arith.constant 0 : index
    %33 = vector.load %arg6[%c16_36, %c0_37] : memref<128x512xf32, #tpu.memory_space<vmem>>, vector<4x256xf32>
    tpu.vector_store %arg6[%c16_36, %c0_37], %32 {strides = array<i32>} : memref<128x512xf32, #tpu.memory_space<vmem>>, vector<4x256xf32>,
    %c0_38 = arith.constant 0 : index
    %c16_39 = arith.constant 16 : index
    %34 = vector.load %arg5[%c0_38, %c16_39] : memref<4x648xf32, #tpu.memory_space<vmem>>, vector<4x256xf32>
    %35 = arith.mulf %34, %14 : vector<4x256xf32>
    %c20 = arith.constant 20 : index
    %c0_40 = arith.constant 0 : index
    %36 = vector.load %arg6[%c20, %c0_40] : memref<128x512xf32, #tpu.memory_space<vmem>>, vector<4x256xf32>
    tpu.vector_store %arg6[%c20, %c0_40], %35 {strides = array<i32>} : memref<128x512xf32, #tpu.memory_space<vmem>>, vector<4x256xf32>,
    %c0_41 = arith.constant 0 : index
    %c17 = arith.constant 17 : index
    %37 = vector.load %arg5[%c0_41, %c17] : memref<4x648xf32, #tpu.memory_space<vmem>>, vector<4x256xf32>
    %38 = arith.mulf %37, %15 : vector<4x256xf32>
    %c24 = arith.constant 24 : index
    %c0_42 = arith.constant 0 : index
    %39 = vector.load %arg6[%c24, %c0_42] : memref<128x512xf32, #tpu.memory_space<vmem>>, vector<4x256xf32>
    tpu.vector_store %arg6[%c24, %c0_42], %38 {strides = array<i32>} : memref<128x512xf32, #tpu.memory_space<vmem>>, vector<4x256xf32>,
    %c0_43 = arith.constant 0 : index
    %c18 = arith.constant 18 : index
    %40 = vector.load %arg5[%c0_43, %c18] : memref<4x648xf32, #tpu.memory_space<vmem>>, vector<4x256xf32>
    %41 = arith.mulf %40, %16 : vector<4x256xf32>
    %c28 = arith.constant 28 : index
    %c0_44 = arith.constant 0 : index
    %42 = vector.load %arg6[%c28, %c0_44] : memref<128x512xf32, #tpu.memory_space<vmem>>, vector<4x256xf32>
    tpu.vector_store %arg6[%c28, %c0_44], %41 {strides = array<i32>} : memref<128x512xf32, #tpu.memory_space<vmem>>, vector<4x256xf32>,
    %c0_45 = arith.constant 0 : index
    %c19 = arith.constant 19 : index
    %43 = vector.load %arg5[%c0_45, %c19] : memref<4x648xf32, #tpu.memory_space<vmem>>, vector<4x256xf32>
    %44 = arith.mulf %43, %17 : vector<4x256xf32>
    %c32 = arith.constant 32 : index
    %c0_46 = arith.constant 0 : index
    %45 = vector.load %arg6[%c32, %c0_46] : memref<128x512xf32, #tpu.memory_space<vmem>>, vector<4x256xf32>
    tpu.vector_store %arg6[%c32, %c0_46], %44 {strides = array<i32>} : memref<128x512xf32, #tpu.memory_space<vmem>>, vector<4x256xf32>,
    %c0_47 = arith.constant 0 : index
    %c20_48 = arith.constant 20 : index
    %46 = vector.load %arg5[%c0_47, %c20_48] : memref<4x648xf32, #tpu.memory_space<vmem>>, vector<4x256xf32>
    %47 = arith.mulf %46, %18 : vector<4x256xf32>
    %c36 = arith.constant 36 : index
    %c0_49 = arith.constant 0 : index
    %48 = vector.load %arg6[%c36, %c0_49] : memref<128x512xf32, #tpu.memory_space<vmem>>, vector<4x256xf32>
    tpu.vector_store %arg6[%c36, %c0_49], %47 {strides = array<i32>} : memref<128x512xf32, #tpu.memory_space<vmem>>, vector<4x256xf32>,
    %c0_50 = arith.constant 0 : index
    %c32_51 = arith.constant 32 : index
    %49 = vector.load %arg5[%c0_50, %c32_51] : memref<4x648xf32, #tpu.memory_space<vmem>>, vector<4x256xf32>
    %50 = arith.mulf %49, %14 : vector<4x256xf32>
    %c40 = arith.constant 40 : index
    %c0_52 = arith.constant 0 : index
    %51 = vector.load %arg6[%c40, %c0_52] : memref<128x512xf32, #tpu.memory_space<vmem>>, vector<4x256xf32>
    tpu.vector_store %arg6[%c40, %c0_52], %50 {strides = array<i32>} : memref<128x512xf32, #tpu.memory_space<vmem>>, vector<4x256xf32>,
    %c0_53 = arith.constant 0 : index
    %c33 = arith.constant 33 : index
    %52 = vector.load %arg5[%c0_53, %c33] : memref<4x648xf32, #tpu.memory_space<vmem>>, vector<4x256xf32>
    %53 = arith.mulf %52, %15 : vector<4x256xf32>
    %c44 = arith.constant 44 : index
    %c0_54 = arith.constant 0 : index
    %54 = vector.load %arg6[%c44, %c0_54] : memref<128x512xf32, #tpu.memory_space<vmem>>, vector<4x256xf32>
    tpu.vector_store %arg6[%c44, %c0_54], %53 {strides = array<i32>} : memref<128x512xf32, #tpu.memory_space<vmem>>, vector<4x256xf32>,
    %c0_55 = arith.constant 0 : index
    %c34_56 = arith.constant 34 : index
    %55 = vector.load %arg5[%c0_55, %c34_56] : memref<4x648xf32, #tpu.memory_space<vmem>>, vector<4x256xf32>
    %56 = arith.mulf %55, %16 : vector<4x256xf32>
    %c48 = arith.constant 48 : index
    %c0_57 = arith.constant 0 : index
    %57 = vector.load %arg6[%c48, %c0_57] : memref<128x512xf32, #tpu.memory_space<vmem>>, vector<4x256xf32>
    tpu.vector_store %arg6[%c48, %c0_57], %56 {strides = array<i32>} : memref<128x512xf32, #tpu.memory_space<vmem>>, vector<4x256xf32>,
    %c0_58 = arith.constant 0 : index
    %c35 = arith.constant 35 : index
    %58 = vector.load %arg5[%c0_58, %c35] : memref<4x648xf32, #tpu.memory_space<vmem>>, vector<4x256xf32>
    %59 = arith.mulf %58, %17 : vector<4x256xf32>
    %c52 = arith.constant 52 : index
    %c0_59 = arith.constant 0 : index
    %60 = vector.load %arg6[%c52, %c0_59] : memref<128x512xf32, #tpu.memory_space<vmem>>, vector<4x256xf32>
    tpu.vector_store %arg6[%c52, %c0_59], %59 {strides = array<i32>} : memref<128x512xf32, #tpu.memory_space<vmem>>, vector<4x256xf32>,
    %c0_60 = arith.constant 0 : index
    %c36_61 = arith.constant 36 : index
    %61 = vector.load %arg5[%c0_60, %c36_61] : memref<4x648xf32, #tpu.memory_space<vmem>>, vector<4x256xf32>
    %62 = arith.mulf %61, %18 : vector<4x256xf32>
    %c56 = arith.constant 56 : index
    %c0_62 = arith.constant 0 : index
    %63 = vector.load %arg6[%c56, %c0_62] : memref<128x512xf32, #tpu.memory_space<vmem>>, vector<4x256xf32>
    tpu.vector_store %arg6[%c56, %c0_62], %62 {strides = array<i32>} : memref<128x512xf32, #tpu.memory_space<vmem>>, vector<4x256xf32>,
    %c0_63 = arith.constant 0 : index
    %c48_64 = arith.constant 48 : index
    %64 = vector.load %arg5[%c0_63, %c48_64] : memref<4x648xf32, #tpu.memory_space<vmem>>, vector<4x256xf32>
    %65 = arith.mulf %64, %14 : vector<4x256xf32>
    %c60 = arith.constant 60 : index
    %c0_65 = arith.constant 0 : index
    %66 = vector.load %arg6[%c60, %c0_65] : memref<128x512xf32, #tpu.memory_space<vmem>>, vector<4x256xf32>
    tpu.vector_store %arg6[%c60, %c0_65], %65 {strides = array<i32>} : memref<128x512xf32, #tpu.memory_space<vmem>>, vector<4x256xf32>,
    %c0_66 = arith.constant 0 : index
    %c49 = arith.constant 49 : index
    %67 = vector.load %arg5[%c0_66, %c49] : memref<4x648xf32, #tpu.memory_space<vmem>>, vector<4x256xf32>
    %68 = arith.mulf %67, %15 : vector<4x256xf32>
    %c64 = arith.constant 64 : index
    %c0_67 = arith.constant 0 : index
    %69 = vector.load %arg6[%c64, %c0_67] : memref<128x512xf32, #tpu.memory_space<vmem>>, vector<4x256xf32>
    tpu.vector_store %arg6[%c64, %c0_67], %68 {strides = array<i32>} : memref<128x512xf32, #tpu.memory_space<vmem>>, vector<4x256xf32>,
    %c0_68 = arith.constant 0 : index
    %c50 = arith.constant 50 : index
    %70 = vector.load %arg5[%c0_68, %c50] : memref<4x648xf32, #tpu.memory_space<vmem>>, vector<4x256xf32>
    %71 = arith.mulf %70, %16 : vector<4x256xf32>
    %c68 = arith.constant 68 : index
    %c0_69 = arith.constant 0 : index
    %72 = vector.load %arg6[%c68, %c0_69] : memref<128x512xf32, #tpu.memory_space<vmem>>, vector<4x256xf32>
    tpu.vector_store %arg6[%c68, %c0_69], %71 {strides = array<i32>} : memref<128x512xf32, #tpu.memory_space<vmem>>, vector<4x256xf32>,
    %c0_70 = arith.constant 0 : index
    %c51 = arith.constant 51 : index
    %73 = vector.load %arg5[%c0_70, %c51] : memref<4x648xf32, #tpu.memory_space<vmem>>, vector<4x256xf32>
    %74 = arith.mulf %73, %17 : vector<4x256xf32>
    %c72 = arith.constant 72 : index
    %c0_71 = arith.constant 0 : index
    %75 = vector.load %arg6[%c72, %c0_71] : memref<128x512xf32, #tpu.memory_space<vmem>>, vector<4x256xf32>
    tpu.vector_store %arg6[%c72, %c0_71], %74 {strides = array<i32>} : memref<128x512xf32, #tpu.memory_space<vmem>>, vector<4x256xf32>,
    %c0_72 = arith.constant 0 : index
    %c52_73 = arith.constant 52 : index
    %76 = vector.load %arg5[%c0_72, %c52_73] : memref<4x648xf32, #tpu.memory_space<vmem>>, vector<4x256xf32>
    %77 = arith.mulf %76, %18 : vector<4x256xf32>
    %c76 = arith.constant 76 : index
    %c0_74 = arith.constant 0 : index
    %78 = vector.load %arg6[%c76, %c0_74] : memref<128x512xf32, #tpu.memory_space<vmem>>, vector<4x256xf32>
    tpu.vector_store %arg6[%c76, %c0_74], %77 {strides = array<i32>} : memref<128x512xf32, #tpu.memory_space<vmem>>, vector<4x256xf32>,
    %c0_75 = arith.constant 0 : index
    %c64_76 = arith.constant 64 : index
    %79 = vector.load %arg5[%c0_75, %c64_76] : memref<4x648xf32, #tpu.memory_space<vmem>>, vector<4x256xf32>
    %80 = arith.mulf %79, %14 : vector<4x256xf32>
    %c80 = arith.constant 80 : index
    %c0_77 = arith.constant 0 : index
    %81 = vector.load %arg6[%c80, %c0_77] : memref<128x512xf32, #tpu.memory_space<vmem>>, vector<4x256xf32>
    tpu.vector_store %arg6[%c80, %c0_77], %80 {strides = array<i32>} : memref<128x512xf32, #tpu.memory_space<vmem>>, vector<4x256xf32>,
    %c0_78 = arith.constant 0 : index
    %c65 = arith.constant 65 : index
    %82 = vector.load %arg5[%c0_78, %c65] : memref<4x648xf32, #tpu.memory_space<vmem>>, vector<4x256xf32>
    %83 = arith.mulf %82, %15 : vector<4x256xf32>
    %c84 = arith.constant 84 : index
    %c0_79 = arith.constant 0 : index
    %84 = vector.load %arg6[%c84, %c0_79] : memref<128x512xf32, #tpu.memory_space<vmem>>, vector<4x256xf32>
    tpu.vector_store %arg6[%c84, %c0_79], %83 {strides = array<i32>} : memref<128x512xf32, #tpu.memory_space<vmem>>, vector<4x256xf32>,
    %c0_80 = arith.constant 0 : index
    %c66 = arith.constant 66 : index
    %85 = vector.load %arg5[%c0_80, %c66] : memref<4x648xf32, #tpu.memory_space<vmem>>, vector<4x256xf32>
    %86 = arith.mulf %85, %16 : vector<4x256xf32>
    %c88 = arith.constant 88 : index
    %c0_81 = arith.constant 0 : index
    %87 = vector.load %arg6[%c88, %c0_81] : memref<128x512xf32, #tpu.memory_space<vmem>>, vector<4x256xf32>
    tpu.vector_store %arg6[%c88, %c0_81], %86 {strides = array<i32>} : memref<128x512xf32, #tpu.memory_space<vmem>>, vector<4x256xf32>,
    %c0_82 = arith.constant 0 : index
    %c67 = arith.constant 67 : index
    %88 = vector.load %arg5[%c0_82, %c67] : memref<4x648xf32, #tpu.memory_space<vmem>>, vector<4x256xf32>
    %89 = arith.mulf %88, %17 : vector<4x256xf32>
    %c92 = arith.constant 92 : index
    %c0_83 = arith.constant 0 : index
    %90 = vector.load %arg6[%c92, %c0_83] : memref<128x512xf32, #tpu.memory_space<vmem>>, vector<4x256xf32>
    tpu.vector_store %arg6[%c92, %c0_83], %89 {strides = array<i32>} : memref<128x512xf32, #tpu.memory_space<vmem>>, vector<4x256xf32>,
    %c0_84 = arith.constant 0 : index
    %c68_85 = arith.constant 68 : index
    %91 = vector.load %arg5[%c0_84, %c68_85] : memref<4x648xf32, #tpu.memory_space<vmem>>, vector<4x256xf32>
    %92 = arith.mulf %91, %18 : vector<4x256xf32>
    %c96 = arith.constant 96 : index
    %c0_86 = arith.constant 0 : index
    %93 = vector.load %arg6[%c96, %c0_86] : memref<128x512xf32, #tpu.memory_space<vmem>>, vector<4x256xf32>
    tpu.vector_store %arg6[%c96, %c0_86], %92 {strides = array<i32>} : memref<128x512xf32, #tpu.memory_space<vmem>>, vector<4x256xf32>,
    %c0_87 = arith.constant 0 : index
    %c324_88 = arith.constant 324 : index
    %94 = vector.load %arg5[%c0_87, %c324_88] : memref<4x648xf32, #tpu.memory_space<vmem>>, vector<4x256xf32>
    %95 = arith.mulf %94, %14 : vector<4x256xf32>
    %c0_89 = arith.constant 0 : index
    %c256 = arith.constant 256 : index
    %96 = vector.load %arg6[%c0_89, %c256] : memref<128x512xf32, #tpu.memory_space<vmem>>, vector<4x256xf32>
    tpu.vector_store %arg6[%c0_89, %c256], %95 {strides = array<i32>} : memref<128x512xf32, #tpu.memory_space<vmem>>, vector<4x256xf32>,
    %c0_90 = arith.constant 0 : index
    %c325 = arith.constant 325 : index
    %97 = vector.load %arg5[%c0_90, %c325] : memref<4x648xf32, #tpu.memory_space<vmem>>, vector<4x256xf32>
    %98 = arith.mulf %97, %15 : vector<4x256xf32>
    %c4_91 = arith.constant 4 : index
    %c256_92 = arith.constant 256 : index
    %99 = vector.load %arg6[%c4_91, %c256_92] : memref<128x512xf32, #tpu.memory_space<vmem>>, vector<4x256xf32>
    tpu.vector_store %arg6[%c4_91, %c256_92], %98 {strides = array<i32>} : memref<128x512xf32, #tpu.memory_space<vmem>>, vector<4x256xf32>,
    %c0_93 = arith.constant 0 : index
    %c326 = arith.constant 326 : index
    %100 = vector.load %arg5[%c0_93, %c326] : memref<4x648xf32, #tpu.memory_space<vmem>>, vector<4x256xf32>
    %101 = arith.mulf %100, %16 : vector<4x256xf32>
    %c8_94 = arith.constant 8 : index
    %c256_95 = arith.constant 256 : index
    %102 = vector.load %arg6[%c8_94, %c256_95] : memref<128x512xf32, #tpu.memory_space<vmem>>, vector<4x256xf32>
    tpu.vector_store %arg6[%c8_94, %c256_95], %101 {strides = array<i32>} : memref<128x512xf32, #tpu.memory_space<vmem>>, vector<4x256xf32>,
    %c0_96 = arith.constant 0 : index
    %c327 = arith.constant 327 : index
    %103 = vector.load %arg5[%c0_96, %c327] : memref<4x648xf32, #tpu.memory_space<vmem>>, vector<4x256xf32>
    %104 = arith.mulf %103, %17 : vector<4x256xf32>
    %c12_97 = arith.constant 12 : index
    %c256_98 = arith.constant 256 : index
    %105 = vector.load %arg6[%c12_97, %c256_98] : memref<128x512xf32, #tpu.memory_space<vmem>>, vector<4x256xf32>
    tpu.vector_store %arg6[%c12_97, %c256_98], %104 {strides = array<i32>} : memref<128x512xf32, #tpu.memory_space<vmem>>, vector<4x256xf32>,
    %c0_99 = arith.constant 0 : index
    %c328 = arith.constant 328 : index
    %106 = vector.load %arg5[%c0_99, %c328] : memref<4x648xf32, #tpu.memory_space<vmem>>, vector<4x256xf32>
    %107 = arith.mulf %106, %18 : vector<4x256xf32>
    %c16_100 = arith.constant 16 : index
    %c256_101 = arith.constant 256 : index
    %108 = vector.load %arg6[%c16_100, %c256_101] : memref<128x512xf32, #tpu.memory_space<vmem>>, vector<4x256xf32>
    tpu.vector_store %arg6[%c16_100, %c256_101], %107 {strides = array<i32>} : memref<128x512xf32, #tpu.memory_space<vmem>>, vector<4x256xf32>,
    %c0_102 = arith.constant 0 : index
    %c340 = arith.constant 340 : index
    %109 = vector.load %arg5[%c0_102, %c340] : memref<4x648xf32, #tpu.memory_space<vmem>>, vector<4x256xf32>
    %110 = arith.mulf %109, %14 : vector<4x256xf32>
    %c20_103 = arith.constant 20 : index
    %c256_104 = arith.constant 256 : index
    %111 = vector.load %arg6[%c20_103, %c256_104] : memref<128x512xf32, #tpu.memory_space<vmem>>, vector<4x256xf32>
    tpu.vector_store %arg6[%c20_103, %c256_104], %110 {strides = array<i32>} : memref<128x512xf32, #tpu.memory_space<vmem>>, vector<4x256xf32>,
    %c0_105 = arith.constant 0 : index
    %c341 = arith.constant 341 : index
    %112 = vector.load %arg5[%c0_105, %c341] : memref<4x648xf32, #tpu.memory_space<vmem>>, vector<4x256xf32>
    %113 = arith.mulf %112, %15 : vector<4x256xf32>
    %c24_106 = arith.constant 24 : index
    %c256_107 = arith.constant 256 : index
    %114 = vector.load %arg6[%c24_106, %c256_107] : memref<128x512xf32, #tpu.memory_space<vmem>>, vector<4x256xf32>
    tpu.vector_store %arg6[%c24_106, %c256_107], %113 {strides = array<i32>} : memref<128x512xf32, #tpu.memory_space<vmem>>, vector<4x256xf32>,
    %c0_108 = arith.constant 0 : index
    %c342 = arith.constant 342 : index
    %115 = vector.load %arg5[%c0_108, %c342] : memref<4x648xf32, #tpu.memory_space<vmem>>, vector<4x256xf32>
    %116 = arith.mulf %115, %16 : vector<4x256xf32>
    %c28_109 = arith.constant 28 : index
    %c256_110 = arith.constant 256 : index
    %117 = vector.load %arg6[%c28_109, %c256_110] : memref<128x512xf32, #tpu.memory_space<vmem>>, vector<4x256xf32>
    tpu.vector_store %arg6[%c28_109, %c256_110], %116 {strides = array<i32>} : memref<128x512xf32, #tpu.memory_space<vmem>>, vector<4x256xf32>,
    %c0_111 = arith.constant 0 : index
    %c343 = arith.constant 343 : index
    %118 = vector.load %arg5[%c0_111, %c343] : memref<4x648xf32, #tpu.memory_space<vmem>>, vector<4x256xf32>
    %119 = arith.mulf %118, %17 : vector<4x256xf32>
    %c32_112 = arith.constant 32 : index
    %c256_113 = arith.constant 256 : index
    %120 = vector.load %arg6[%c32_112, %c256_113] : memref<128x512xf32, #tpu.memory_space<vmem>>, vector<4x256xf32>
    tpu.vector_store %arg6[%c32_112, %c256_113], %119 {strides = array<i32>} : memref<128x512xf32, #tpu.memory_space<vmem>>, vector<4x256xf32>,
    %c0_114 = arith.constant 0 : index
    %c344 = arith.constant 344 : index
    %121 = vector.load %arg5[%c0_114, %c344] : memref<4x648xf32, #tpu.memory_space<vmem>>, vector<4x256xf32>
    %122 = arith.mulf %121, %18 : vector<4x256xf32>
    %c36_115 = arith.constant 36 : index
    %c256_116 = arith.constant 256 : index
    %123 = vector.load %arg6[%c36_115, %c256_116] : memref<128x512xf32, #tpu.memory_space<vmem>>, vector<4x256xf32>
    tpu.vector_store %arg6[%c36_115, %c256_116], %122 {strides = array<i32>} : memref<128x512xf32, #tpu.memory_space<vmem>>, vector<4x256xf32>,
    %c0_117 = arith.constant 0 : index
    %c356 = arith.constant 356 : index
    %124 = vector.load %arg5[%c0_117, %c356] : memref<4x648xf32, #tpu.memory_space<vmem>>, vector<4x256xf32>
    %125 = arith.mulf %124, %14 : vector<4x256xf32>
    %c40_118 = arith.constant 40 : index
    %c256_119 = arith.constant 256 : index
    %126 = vector.load %arg6[%c40_118, %c256_119] : memref<128x512xf32, #tpu.memory_space<vmem>>, vector<4x256xf32>
    tpu.vector_store %arg6[%c40_118, %c256_119], %125 {strides = array<i32>} : memref<128x512xf32, #tpu.memory_space<vmem>>, vector<4x256xf32>,
    %c0_120 = arith.constant 0 : index
    %c357 = arith.constant 357 : index
    %127 = vector.load %arg5[%c0_120, %c357] : memref<4x648xf32, #tpu.memory_space<vmem>>, vector<4x256xf32>
    %128 = arith.mulf %127, %15 : vector<4x256xf32>
    %c44_121 = arith.constant 44 : index
    %c256_122 = arith.constant 256 : index
    %129 = vector.load %arg6[%c44_121, %c256_122] : memref<128x512xf32, #tpu.memory_space<vmem>>, vector<4x256xf32>
    tpu.vector_store %arg6[%c44_121, %c256_122], %128 {strides = array<i32>} : memref<128x512xf32, #tpu.memory_space<vmem>>, vector<4x256xf32>,
    %c0_123 = arith.constant 0 : index
    %c358_124 = arith.constant 358 : index
    %130 = vector.load %arg5[%c0_123, %c358_124] : memref<4x648xf32, #tpu.memory_space<vmem>>, vector<4x256xf32>
    %131 = arith.mulf %130, %16 : vector<4x256xf32>
    %c48_125 = arith.constant 48 : index
    %c256_126 = arith.constant 256 : index
    %132 = vector.load %arg6[%c48_125, %c256_126] : memref<128x512xf32, #tpu.memory_space<vmem>>, vector<4x256xf32>
    tpu.vector_store %arg6[%c48_125, %c256_126], %131 {strides = array<i32>} : memref<128x512xf32, #tpu.memory_space<vmem>>, vector<4x256xf32>,
    %c0_127 = arith.constant 0 : index
    %c359 = arith.constant 359 : index
    %133 = vector.load %arg5[%c0_127, %c359] : memref<4x648xf32, #tpu.memory_space<vmem>>, vector<4x256xf32>
    %134 = arith.mulf %133, %17 : vector<4x256xf32>
    %c52_128 = arith.constant 52 : index
    %c256_129 = arith.constant 256 : index
    %135 = vector.load %arg6[%c52_128, %c256_129] : memref<128x512xf32, #tpu.memory_space<vmem>>, vector<4x256xf32>
    tpu.vector_store %arg6[%c52_128, %c256_129], %134 {strides = array<i32>} : memref<128x512xf32, #tpu.memory_space<vmem>>, vector<4x256xf32>,
    %c0_130 = arith.constant 0 : index
    %c360 = arith.constant 360 : index
    %136 = vector.load %arg5[%c0_130, %c360] : memref<4x648xf32, #tpu.memory_space<vmem>>, vector<4x256xf32>
    %137 = arith.mulf %136, %18 : vector<4x256xf32>
    %c56_131 = arith.constant 56 : index
    %c256_132 = arith.constant 256 : index
    %138 = vector.load %arg6[%c56_131, %c256_132] : memref<128x512xf32, #tpu.memory_space<vmem>>, vector<4x256xf32>
    tpu.vector_store %arg6[%c56_131, %c256_132], %137 {strides = array<i32>} : memref<128x512xf32, #tpu.memory_space<vmem>>, vector<4x256xf32>,
    %c0_133 = arith.constant 0 : index
    %c372 = arith.constant 372 : index
    %139 = vector.load %arg5[%c0_133, %c372] : memref<4x648xf32, #tpu.memory_space<vmem>>, vector<4x256xf32>
    %140 = arith.mulf %139, %14 : vector<4x256xf32>
    %c60_134 = arith.constant 60 : index
    %c256_135 = arith.constant 256 : index
    %141 = vector.load %arg6[%c60_134, %c256_135] : memref<128x512xf32, #tpu.memory_space<vmem>>, vector<4x256xf32>
    tpu.vector_store %arg6[%c60_134, %c256_135], %140 {strides = array<i32>} : memref<128x512xf32, #tpu.memory_space<vmem>>, vector<4x256xf32>,
    %c0_136 = arith.constant 0 : index
    %c373 = arith.constant 373 : index
    %142 = vector.load %arg5[%c0_136, %c373] : memref<4x648xf32, #tpu.memory_space<vmem>>, vector<4x256xf32>
    %143 = arith.mulf %142, %15 : vector<4x256xf32>
    %c64_137 = arith.constant 64 : index
    %c256_138 = arith.constant 256 : index
    %144 = vector.load %arg6[%c64_137, %c256_138] : memref<128x512xf32, #tpu.memory_space<vmem>>, vector<4x256xf32>
    tpu.vector_store %arg6[%c64_137, %c256_138], %143 {strides = array<i32>} : memref<128x512xf32, #tpu.memory_space<vmem>>, vector<4x256xf32>,
    %c0_139 = arith.constant 0 : index
    %c374 = arith.constant 374 : index
    %145 = vector.load %arg5[%c0_139, %c374] : memref<4x648xf32, #tpu.memory_space<vmem>>, vector<4x256xf32>
    %146 = arith.mulf %145, %16 : vector<4x256xf32>
    %c68_140 = arith.constant 68 : index
    %c256_141 = arith.constant 256 : index
    %147 = vector.load %arg6[%c68_140, %c256_141] : memref<128x512xf32, #tpu.memory_space<vmem>>, vector<4x256xf32>
    tpu.vector_store %arg6[%c68_140, %c256_141], %146 {strides = array<i32>} : memref<128x512xf32, #tpu.memory_space<vmem>>, vector<4x256xf32>,
    %c0_142 = arith.constant 0 : index
    %c375 = arith.constant 375 : index
    %148 = vector.load %arg5[%c0_142, %c375] : memref<4x648xf32, #tpu.memory_space<vmem>>, vector<4x256xf32>
    %149 = arith.mulf %148, %17 : vector<4x256xf32>
    %c72_143 = arith.constant 72 : index
    %c256_144 = arith.constant 256 : index
    %150 = vector.load %arg6[%c72_143, %c256_144] : memref<128x512xf32, #tpu.memory_space<vmem>>, vector<4x256xf32>
    tpu.vector_store %arg6[%c72_143, %c256_144], %149 {strides = array<i32>} : memref<128x512xf32, #tpu.memory_space<vmem>>, vector<4x256xf32>,
    %c0_145 = arith.constant 0 : index
    %c376 = arith.constant 376 : index
    %151 = vector.load %arg5[%c0_145, %c376] : memref<4x648xf32, #tpu.memory_space<vmem>>, vector<4x256xf32>
    %152 = arith.mulf %151, %18 : vector<4x256xf32>
    %c76_146 = arith.constant 76 : index
    %c256_147 = arith.constant 256 : index
    %153 = vector.load %arg6[%c76_146, %c256_147] : memref<128x512xf32, #tpu.memory_space<vmem>>, vector<4x256xf32>
    tpu.vector_store %arg6[%c76_146, %c256_147], %152 {strides = array<i32>} : memref<128x512xf32, #tpu.memory_space<vmem>>, vector<4x256xf32>,
    %c0_148 = arith.constant 0 : index
    %c388 = arith.constant 388 : index
    %154 = vector.load %arg5[%c0_148, %c388] : memref<4x648xf32, #tpu.memory_space<vmem>>, vector<4x256xf32>
    %155 = arith.mulf %154, %14 : vector<4x256xf32>
    %c80_149 = arith.constant 80 : index
    %c256_150 = arith.constant 256 : index
    %156 = vector.load %arg6[%c80_149, %c256_150] : memref<128x512xf32, #tpu.memory_space<vmem>>, vector<4x256xf32>
    tpu.vector_store %arg6[%c80_149, %c256_150], %155 {strides = array<i32>} : memref<128x512xf32, #tpu.memory_space<vmem>>, vector<4x256xf32>,
    %c0_151 = arith.constant 0 : index
    %c389 = arith.constant 389 : index
    %157 = vector.load %arg5[%c0_151, %c389] : memref<4x648xf32, #tpu.memory_space<vmem>>, vector<4x256xf32>
    %158 = arith.mulf %157, %15 : vector<4x256xf32>
    %c84_152 = arith.constant 84 : index
    %c256_153 = arith.constant 256 : index
    %159 = vector.load %arg6[%c84_152, %c256_153] : memref<128x512xf32, #tpu.memory_space<vmem>>, vector<4x256xf32>
    tpu.vector_store %arg6[%c84_152, %c256_153], %158 {strides = array<i32>} : memref<128x512xf32, #tpu.memory_space<vmem>>, vector<4x256xf32>,
    %c0_154 = arith.constant 0 : index
    %c390 = arith.constant 390 : index
    %160 = vector.load %arg5[%c0_154, %c390] : memref<4x648xf32, #tpu.memory_space<vmem>>, vector<4x256xf32>
    %161 = arith.mulf %160, %16 : vector<4x256xf32>
    %c88_155 = arith.constant 88 : index
    %c256_156 = arith.constant 256 : index
    %162 = vector.load %arg6[%c88_155, %c256_156] : memref<128x512xf32, #tpu.memory_space<vmem>>, vector<4x256xf32>
    tpu.vector_store %arg6[%c88_155, %c256_156], %161 {strides = array<i32>} : memref<128x512xf32, #tpu.memory_space<vmem>>, vector<4x256xf32>,
    %c0_157 = arith.constant 0 : index
    %c391 = arith.constant 391 : index
    %163 = vector.load %arg5[%c0_157, %c391] : memref<4x648xf32, #tpu.memory_space<vmem>>, vector<4x256xf32>
    %164 = arith.mulf %163, %17 : vector<4x256xf32>
    %c92_158 = arith.constant 92 : index
    %c256_159 = arith.constant 256 : index
    %165 = vector.load %arg6[%c92_158, %c256_159] : memref<128x512xf32, #tpu.memory_space<vmem>>, vector<4x256xf32>
    tpu.vector_store %arg6[%c92_158, %c256_159], %164 {strides = array<i32>} : memref<128x512xf32, #tpu.memory_space<vmem>>, vector<4x256xf32>,
    %c0_160 = arith.constant 0 : index
    %c392 = arith.constant 392 : index
    %166 = vector.load %arg5[%c0_160, %c392] : memref<4x648xf32, #tpu.memory_space<vmem>>, vector<4x256xf32>
    %167 = arith.mulf %166, %18 : vector<4x256xf32>
    %c96_161 = arith.constant 96 : index
    %c256_162 = arith.constant 256 : index
    %168 = vector.load %arg6[%c96_161, %c256_162] : memref<128x512xf32, #tpu.memory_space<vmem>>, vector<4x256xf32>
    tpu.vector_store %arg6[%c96_161, %c256_162], %167 {strides = array<i32>} : memref<128x512xf32, #tpu.memory_space<vmem>>, vector<4x256xf32>,
    %cst_163 = arith.constant 1.000000e+00 : f32
    %169 = vector.broadcast %cst_163 : f32 to vector<28x512xf32>
    %c100 = arith.constant 100 : index
    %c0_164 = arith.constant 0 : index
    %170 = vector.load %arg6[%c100, %c0_164] : memref<128x512xf32, #tpu.memory_space<vmem>>, vector<28x512xf32>
    tpu.vector_store %arg6[%c100, %c0_164], %169 {strides = array<i32>} : memref<128x512xf32, #tpu.memory_space<vmem>>, vector<28x512xf32>,
    %c0_165 = arith.constant 0 : index
    %c0_166 = arith.constant 0 : index
    %171 = vector.load %arg3[%c0_165, %c0_166] : memref<152x128xf32, #tpu.memory_space<vmem>>, vector<152x128xf32>
    %c0_167 = arith.constant 0 : index
    %c0_168 = arith.constant 0 : index
    %172 = vector.load %arg6[%c0_167, %c0_168] : memref<128x512xf32, #tpu.memory_space<vmem>>, vector<128x512xf32>
    %cst_169 = arith.constant dense<0.000000e+00> : vector<152x512xf32>
    %173 = tpu.matmul %171, %172, %cst_169 {dimension_numbers = #tpu.dot_dimension_numbers<[1], [0], [0], [1], [0, 0, 1, 1], [], []>} : vector<152x128xf32>, vector<128x512xf32>, vector<152x512xf32> -> vector<152x512xf32>
    %c0_170 = arith.constant 0 : index
    %c0_171 = arith.constant 0 : index
    %174 = vector.load %arg7[%c0_170, %c0_171] : memref<152x512xf32, #tpu.memory_space<vmem>>, vector<152x512xf32>
    tpu.vector_store %arg7[%c0_170, %c0_171], %173 {strides = array<i32>} : memref<152x512xf32, #tpu.memory_space<vmem>>, vector<152x512xf32>,
    %c0_172 = arith.constant 0 : index
    %c0_173 = arith.constant 0 : index
    %175 = vector.load %arg7[%c0_172, %c0_173] : memref<152x512xf32, #tpu.memory_space<vmem>>, vector<8x512xf32>
    %c8_174 = arith.constant 8 : index
    %c0_175 = arith.constant 0 : index
    %176 = vector.load %arg7[%c8_174, %c0_175] : memref<152x512xf32, #tpu.memory_space<vmem>>, vector<8x512xf32>
    %177 = arith.mulf %175, %176 : vector<8x512xf32>
    %c16_176 = arith.constant 16 : index
    %c0_177 = arith.constant 0 : index
    %178 = vector.load %arg7[%c16_176, %c0_177] : memref<152x512xf32, #tpu.memory_space<vmem>>, vector<8x512xf32>
    %179 = arith.mulf %175, %178 : vector<8x512xf32>
    %180 = arith.maximumf %177, %179 : vector<8x512xf32>
    %c24_178 = arith.constant 24 : index
    %c0_179 = arith.constant 0 : index
    %181 = vector.load %arg7[%c24_178, %c0_179] : memref<152x512xf32, #tpu.memory_space<vmem>>, vector<8x512xf32>
    %182 = arith.mulf %175, %181 : vector<8x512xf32>
    %183 = arith.maximumf %180, %182 : vector<8x512xf32>
    %c32_180 = arith.constant 32 : index
    %c0_181 = arith.constant 0 : index
    %184 = vector.load %arg7[%c32_180, %c0_181] : memref<152x512xf32, #tpu.memory_space<vmem>>, vector<8x512xf32>
    %185 = arith.mulf %175, %184 : vector<8x512xf32>
    %186 = arith.maximumf %183, %185 : vector<8x512xf32>
    %c40_182 = arith.constant 40 : index
    %c0_183 = arith.constant 0 : index
    %187 = vector.load %arg7[%c40_182, %c0_183] : memref<152x512xf32, #tpu.memory_space<vmem>>, vector<8x512xf32>
    %188 = arith.mulf %175, %187 : vector<8x512xf32>
    %189 = arith.maximumf %186, %188 : vector<8x512xf32>
    %c48_184 = arith.constant 48 : index
    %c0_185 = arith.constant 0 : index
    %190 = vector.load %arg7[%c48_184, %c0_185] : memref<152x512xf32, #tpu.memory_space<vmem>>, vector<8x512xf32>
    %191 = arith.mulf %175, %190 : vector<8x512xf32>
    %192 = arith.maximumf %189, %191 : vector<8x512xf32>
    %c56_186 = arith.constant 56 : index
    %c0_187 = arith.constant 0 : index
    %193 = vector.load %arg7[%c56_186, %c0_187] : memref<152x512xf32, #tpu.memory_space<vmem>>, vector<8x512xf32>
    %194 = arith.mulf %175, %193 : vector<8x512xf32>
    %195 = arith.maximumf %192, %194 : vector<8x512xf32>
    %c64_188 = arith.constant 64 : index
    %c0_189 = arith.constant 0 : index
    %196 = vector.load %arg7[%c64_188, %c0_189] : memref<152x512xf32, #tpu.memory_space<vmem>>, vector<8x512xf32>
    %197 = arith.mulf %175, %196 : vector<8x512xf32>
    %198 = arith.maximumf %195, %197 : vector<8x512xf32>
    %c72_190 = arith.constant 72 : index
    %c0_191 = arith.constant 0 : index
    %199 = vector.load %arg7[%c72_190, %c0_191] : memref<152x512xf32, #tpu.memory_space<vmem>>, vector<8x512xf32>
    %200 = arith.mulf %175, %199 : vector<8x512xf32>
    %201 = arith.maximumf %198, %200 : vector<8x512xf32>
    %cst_192 = arith.constant 0.000000e+00 : f32
    %202 = vector.broadcast %cst_192 : f32 to vector<8x512xf32>
    %cst_193 = arith.constant 0.000000e+00 : f32
    %203 = vector.broadcast %cst_193 : f32 to vector<8x512xf32>
    %c8_194 = arith.constant 8 : index
    %c0_195 = arith.constant 0 : index
    %204 = vector.load %arg7[%c8_194, %c0_195] : memref<152x512xf32, #tpu.memory_space<vmem>>, vector<8x512xf32>
    %205 = arith.mulf %175, %204 : vector<8x512xf32>
    %206 = arith.subf %205, %201 : vector<8x512xf32>
    %207 = math.exp %206 : vector<8x512xf32>
    %208 = arith.addf %202, %207 : vector<8x512xf32>
    %c80_196 = arith.constant 80 : index
    %c0_197 = arith.constant 0 : index
    %209 = vector.load %arg7[%c80_196, %c0_197] : memref<152x512xf32, #tpu.memory_space<vmem>>, vector<8x512xf32>
    %210 = arith.mulf %207, %209 : vector<8x512xf32>
    %211 = arith.addf %203, %210 : vector<8x512xf32>
    %c16_198 = arith.constant 16 : index
    %c0_199 = arith.constant 0 : index
    %212 = vector.load %arg7[%c16_198, %c0_199] : memref<152x512xf32, #tpu.memory_space<vmem>>, vector<8x512xf32>
    %213 = arith.mulf %175, %212 : vector<8x512xf32>
    %214 = arith.subf %213, %201 : vector<8x512xf32>
    %215 = math.exp %214 : vector<8x512xf32>
    %216 = arith.addf %208, %215 : vector<8x512xf32>
    %c88_200 = arith.constant 88 : index
    %c0_201 = arith.constant 0 : index
    %217 = vector.load %arg7[%c88_200, %c0_201] : memref<152x512xf32, #tpu.memory_space<vmem>>, vector<8x512xf32>
    %218 = arith.mulf %215, %217 : vector<8x512xf32>
    %219 = arith.addf %211, %218 : vector<8x512xf32>
    %c24_202 = arith.constant 24 : index
    %c0_203 = arith.constant 0 : index
    %220 = vector.load %arg7[%c24_202, %c0_203] : memref<152x512xf32, #tpu.memory_space<vmem>>, vector<8x512xf32>
    %221 = arith.mulf %175, %220 : vector<8x512xf32>
    %222 = arith.subf %221, %201 : vector<8x512xf32>
    %223 = math.exp %222 : vector<8x512xf32>
    %224 = arith.addf %216, %223 : vector<8x512xf32>
    %c96_204 = arith.constant 96 : index
    %c0_205 = arith.constant 0 : index
    %225 = vector.load %arg7[%c96_204, %c0_205] : memref<152x512xf32, #tpu.memory_space<vmem>>, vector<8x512xf32>
    %226 = arith.mulf %223, %225 : vector<8x512xf32>
    %227 = arith.addf %219, %226 : vector<8x512xf32>
    %c32_206 = arith.constant 32 : index
    %c0_207 = arith.constant 0 : index
    %228 = vector.load %arg7[%c32_206, %c0_207] : memref<152x512xf32, #tpu.memory_space<vmem>>, vector<8x512xf32>
    %229 = arith.mulf %175, %228 : vector<8x512xf32>
    %230 = arith.subf %229, %201 : vector<8x512xf32>
    %231 = math.exp %230 : vector<8x512xf32>
    %232 = arith.addf %224, %231 : vector<8x512xf32>
    %c104 = arith.constant 104 : index
    %c0_208 = arith.constant 0 : index
    %233 = vector.load %arg7[%c104, %c0_208] : memref<152x512xf32, #tpu.memory_space<vmem>>, vector<8x512xf32>
    %234 = arith.mulf %231, %233 : vector<8x512xf32>
    %235 = arith.addf %227, %234 : vector<8x512xf32>
    %c40_209 = arith.constant 40 : index
    %c0_210 = arith.constant 0 : index
    %236 = vector.load %arg7[%c40_209, %c0_210] : memref<152x512xf32, #tpu.memory_space<vmem>>, vector<8x512xf32>
    %237 = arith.mulf %175, %236 : vector<8x512xf32>
    %238 = arith.subf %237, %201 : vector<8x512xf32>
    %239 = math.exp %238 : vector<8x512xf32>
    %240 = arith.addf %232, %239 : vector<8x512xf32>
    %c112 = arith.constant 112 : index
    %c0_211 = arith.constant 0 : index
    %241 = vector.load %arg7[%c112, %c0_211] : memref<152x512xf32, #tpu.memory_space<vmem>>, vector<8x512xf32>
    %242 = arith.mulf %239, %241 : vector<8x512xf32>
    %243 = arith.addf %235, %242 : vector<8x512xf32>
    %c48_212 = arith.constant 48 : index
    %c0_213 = arith.constant 0 : index
    %244 = vector.load %arg7[%c48_212, %c0_213] : memref<152x512xf32, #tpu.memory_space<vmem>>, vector<8x512xf32>
    %245 = arith.mulf %175, %244 : vector<8x512xf32>
    %246 = arith.subf %245, %201 : vector<8x512xf32>
    %247 = math.exp %246 : vector<8x512xf32>
    %248 = arith.addf %240, %247 : vector<8x512xf32>
    %c120 = arith.constant 120 : index
    %c0_214 = arith.constant 0 : index
    %249 = vector.load %arg7[%c120, %c0_214] : memref<152x512xf32, #tpu.memory_space<vmem>>, vector<8x512xf32>
    %250 = arith.mulf %247, %249 : vector<8x512xf32>
    %251 = arith.addf %243, %250 : vector<8x512xf32>
    %c56_215 = arith.constant 56 : index
    %c0_216 = arith.constant 0 : index
    %252 = vector.load %arg7[%c56_215, %c0_216] : memref<152x512xf32, #tpu.memory_space<vmem>>, vector<8x512xf32>
    %253 = arith.mulf %175, %252 : vector<8x512xf32>
    %254 = arith.subf %253, %201 : vector<8x512xf32>
    %255 = math.exp %254 : vector<8x512xf32>
    %256 = arith.addf %248, %255 : vector<8x512xf32>
    %c128 = arith.constant 128 : index
    %c0_217 = arith.constant 0 : index
    %257 = vector.load %arg7[%c128, %c0_217] : memref<152x512xf32, #tpu.memory_space<vmem>>, vector<8x512xf32>
    %258 = arith.mulf %255, %257 : vector<8x512xf32>
    %259 = arith.addf %251, %258 : vector<8x512xf32>
    %c64_218 = arith.constant 64 : index
    %c0_219 = arith.constant 0 : index
    %260 = vector.load %arg7[%c64_218, %c0_219] : memref<152x512xf32, #tpu.memory_space<vmem>>, vector<8x512xf32>
    %261 = arith.mulf %175, %260 : vector<8x512xf32>
    %262 = arith.subf %261, %201 : vector<8x512xf32>
    %263 = math.exp %262 : vector<8x512xf32>
    %264 = arith.addf %256, %263 : vector<8x512xf32>
    %c136 = arith.constant 136 : index
    %c0_220 = arith.constant 0 : index
    %265 = vector.load %arg7[%c136, %c0_220] : memref<152x512xf32, #tpu.memory_space<vmem>>, vector<8x512xf32>
    %266 = arith.mulf %263, %265 : vector<8x512xf32>
    %267 = arith.addf %259, %266 : vector<8x512xf32>
    %c72_221 = arith.constant 72 : index
    %c0_222 = arith.constant 0 : index
    %268 = vector.load %arg7[%c72_221, %c0_222] : memref<152x512xf32, #tpu.memory_space<vmem>>, vector<8x512xf32>
    %269 = arith.mulf %175, %268 : vector<8x512xf32>
    %270 = arith.subf %269, %201 : vector<8x512xf32>
    %271 = math.exp %270 : vector<8x512xf32>
    %272 = arith.addf %264, %271 : vector<8x512xf32>
    %c144 = arith.constant 144 : index
    %c0_223 = arith.constant 0 : index
    %273 = vector.load %arg7[%c144, %c0_223] : memref<152x512xf32, #tpu.memory_space<vmem>>, vector<8x512xf32>
    %274 = arith.mulf %271, %273 : vector<8x512xf32>
    %275 = arith.addf %267, %274 : vector<8x512xf32>
    %276 = tpu.reciprocal %272 {approx = true} : vector<8x512xf32> -> vector<8x512xf32>
    %277 = arith.mulf %275, %276 : vector<8x512xf32>
    %278 = vector.extract_strided_slice %277 {offsets = [0, 0], sizes = [8, 256], strides = [1, 1]} : vector<8x512xf32> to vector<8x256xf32>
    %c0_224 = arith.constant 0 : index
    %c0_225 = arith.constant 0 : index
    %c0_226 = arith.constant 0 : index
    %279 = vector.load %arg4[%c0_224, %c0_225, %c0_226] : memref<2x8x256xf32, #tpu.memory_space<vmem>>, vector<1x8x256xf32>
    %280 = vector.shape_cast %279 : vector<1x8x256xf32> to vector<8x256xf32>
    %281 = vector.shape_cast %278 : vector<8x256xf32> to vector<1x8x256xf32>
    tpu.vector_store %arg4[%c0_224, %c0_225, %c0_226], %281 {strides = array<i32>} : memref<2x8x256xf32, #tpu.memory_space<vmem>>, vector<1x8x256xf32>,
    %282 = vector.extract_strided_slice %277 {offsets = [0, 256], sizes = [8, 256], strides = [1, 1]} : vector<8x512xf32> to vector<8x256xf32>
    %c1_227 = arith.constant 1 : index
    %c0_228 = arith.constant 0 : index
    %c0_229 = arith.constant 0 : index
    %283 = vector.load %arg4[%c1_227, %c0_228, %c0_229] : memref<2x8x256xf32, #tpu.memory_space<vmem>>, vector<1x8x256xf32>
    %284 = vector.shape_cast %283 : vector<1x8x256xf32> to vector<8x256xf32>
    %285 = vector.shape_cast %282 : vector<8x256xf32> to vector<1x8x256xf32>
    tpu.vector_store %arg4[%c1_227, %c0_228, %c0_229], %285 {strides = array<i32>} : memref<2x8x256xf32, #tpu.memory_space<vmem>>, vector<1x8x256xf32>,
    return
  }
  func.func @transform_0(%arg0: i32) -> (i32, i32) {
    %c0_i32 = arith.constant 0 : i32
    %c0_i32_0 = arith.constant 0 : i32
    %c0_i32_1 = arith.constant 0 : i32
    return %c0_i32, %c0_i32_0 : i32, i32
  }
  func.func @transform_1(%arg0: i32) -> (i32, i32, i32) {
    %c0_i32 = arith.constant 0 : i32
    %c0_i32_0 = arith.constant 0 : i32
    %c0_i32_1 = arith.constant 0 : i32
    return %arg0, %c0_i32, %c0_i32_0 : i32, i32, i32
  }
  func.func @transform_2(%arg0: i32) -> (i32, i32) {
    %c0_i32 = arith.constant 0 : i32
    %c0_i32_0 = arith.constant 0 : i32
    %c0_i32_1 = arith.constant 0 : i32
    return %c0_i32, %c0_i32_0 : i32, i32
  }
  func.func @transform_3(%arg0: i32) -> (i32, i32, i32) {
    %c0_i32 = arith.constant 0 : i32
    %c0_i32_0 = arith.constant 0 : i32
    %c0_i32_1 = arith.constant 0 : i32
    return %arg0, %c0_i32, %c0_i32_0 : i32, i32, i32
  }
}

</mosaic_0001>

<bundles_post_ra>
// kernel: tpu_custom_call.1
= control target key start
LH: loop header
LB: loop body
LE: loop exit
PB: predicated region body
PF: predicated region fallthrough
CT: control target
= control target key end

     0   :  { %8 = vsyncpa [#allocation6], 0  ;;  %s4192_s0 = inlined_call_operand.hbm [shape: f32[20,256], index: 0, kind: input, shape index: {}]   ;;  %s4193_s1 = inlined_call_operand.hbm [shape: f32[2,4,256], index: 1, kind: input, shape index: {}]   ;;  %s4194_s2 = inlined_call_operand.hbm [shape: f32[152,128], index: 2, kind: input, shape index: {}]   ;;  %s4195_s3 = inlined_call_operand.hbm [shape: f32[2,8,256], index: 3, kind: output, shape index: {}]  }
   0x1   :  { %9 = vsyncpa [#allocation9], 0 }
   0x2   :  { %10 = vsyncpa [#allocation7], 0  ;;  %s2733_s12 = smov [#allocation8]   ;;  %s2639_s16 = scalar_lea.hbm %s4193_s1, 256 }
   0x3   :  { %s28_s13 = sshll.u32 %s2733_s12, 4  ;;  %p2640_p0 = scmp.ne.s32.totalorder %s4193_s1, %s2639_s16  ;;  %s29_s13 = int_to_ptr.vmem [resolvable:$true] %s28_s13 }
   0x4   :  { %p2643_p1 = scmp.lt.u32.totalorder %s2639_s16, %s4193_s1 }
   0x6   :  { %p2645_p2 = pnand %p2643_p1, %p2640_p0 }
   0x8   :  { %2648 = shalt.err (!%p2645_p2)
}
   0x9   :  { %s2649_s21 = scalar_lea.vmem %s29_s13, 256  ;;  %p2654_p4 = scmp.lt.s32.totalorder %s29_s13, %s29_s13 }
   0xa   :  { %p2650_p3 = scmp.ne.s32.totalorder %s29_s13, %s2649_s21  ;;  %p2655_p5 = scmp.lt.s32.totalorder %s2649_s21, %s2649_s21 }
   0xc   :  { %p2656_p6 = por %p2655_p5, %p2654_p4 }
   0xe   :  { %p2657_p7 = pnand %p2656_p6, %p2650_p3 }
  0x10   :  { %2660 = shalt.err (!%p2657_p7)
}
  0x11   :  { %s2734_s22 = smov 128   ;;  %s2735_s23 = smov 8  }
  0x12   :  { %34 = dma.hbm_to_vmem [thread:$0]  %s4193_s1, 256, %s29_s13, [#allocation9], %s2734_s22, %s2734_s22, %s2735_s23  }
  0x13   :  { %s2736_s26 = smov [#allocation5]   ;;  %s2661_s30 = scalar_lea.hbm %s4192_s0, 768 }
  0x14   :  { %s16_s27 = sshll.u32 %s2736_s26, 4  ;;  %p2662_p8 = scmp.ne.s32.totalorder %s4192_s0, %s2661_s30  ;;  %s17_s27 = int_to_ptr.vmem [resolvable:$true] %s16_s27 }
  0x15   :  { %p2665_p9 = scmp.lt.u32.totalorder %s2661_s30, %s4192_s0 }
  0x17   :  { %p2667_p10 = pnand %p2665_p9, %p2662_p8 }
  0x19   :  { %2670 = shalt.err (!%p2667_p10)
}
  0x1a   :  { %s2671_s8 = scalar_lea.vmem %s17_s27, 768  ;;  %p2676_p12 = scmp.lt.s32.totalorder %s17_s27, %s17_s27 }
  0x1b   :  { %p2672_p11 = scmp.ne.s32.totalorder %s17_s27, %s2671_s8  ;;  %p2677_p13 = scmp.lt.s32.totalorder %s2671_s8, %s2671_s8 }
  0x1d   :  { %p2678_p0 = por %p2677_p13, %p2676_p12 }
  0x1f   :  { %p2679_p1 = pnand %p2678_p0, %p2672_p11 }
  0x21   :  { %2682 = shalt.err (!%p2679_p1)
}
  0x22   :  { %s2737_s1 = smov 256   ;;  %s2738_s9 = smov 16  }
  0x23   :  { %22 = dma.hbm_to_vmem [thread:$0]  %s4192_s0, 768, %s17_s27, [#allocation6], %s2737_s1, %s2737_s1, %s2738_s9  }
  0x24   :  { %s2739_s12 = smov [#allocation10]   ;;  %s2683_s16 = scalar_lea.hbm %s4194_s2, 2432 }
  0x25   :  { %s40_s13 = sshll.u32 %s2739_s12, 4  ;;  %p2684_p2 = scmp.ne.s32.totalorder %s4194_s2, %s2683_s16  ;;  %s41_s13 = int_to_ptr.vmem [resolvable:$true] %s40_s13 }
  0x26   :  { %p2687_p3 = scmp.lt.u32.totalorder %s2683_s16, %s4194_s2 }
  0x28   :  { %p2689_p4 = pnand %p2687_p3, %p2684_p2 }
  0x2a   :  { %2692 = shalt.err (!%p2689_p4)
}
  0x2b   :  { %s2693_s21 = scalar_lea.vmem %s41_s13, 2432  ;;  %p2698_p6 = scmp.lt.s32.totalorder %s41_s13, %s41_s13 }
  0x2c   :  { %p2694_p5 = scmp.ne.s32.totalorder %s41_s13, %s2693_s21  ;;  %p2699_p7 = scmp.lt.s32.totalorder %s2693_s21, %s2693_s21 }
  0x2e   :  { %p2700_p8 = por %p2699_p7, %p2698_p6 }
  0x30   :  { %p2701_p9 = pnand %p2700_p8, %p2694_p5 }
  0x32   :  { %2704 = shalt.err (!%p2701_p9)
}
  0x33   :  { %46 = dma.hbm_to_vmem [thread:$0]  %s4194_s2, 2432, %s41_s13, [#allocation9], %s2734_s22, %s2734_s22, %s2735_s23  }
  0x34   :  { %2727 = dma.done.wait [#allocation6], 768  }
  0x35   :  { %2728 = vsyncadd [#allocation6], 4294966528 }
  0x36   :  { %2729 = dma.done.wait [#allocation9], 2688  }
  0x37   :  { %2730 = vsyncadd [#allocation9], 4294964608  ;;  %vm56_vm0 = vcmask 273408   ;;  %vm58_vm1 = vcmask 552208   ;;  %v2740_v0 = vmov 0.0   ;;  %vm76_vm2 = vcmask 1044272  }
  0x38   :  { %57 = vst.msk [vmem:[#allocation2] sm:$0xf] %vm56_vm0, %v2740_v0  ;;  %1628 = vmatprep.mubr.f32.mxu0 %v2740_v0  ;;  %1807 = vmatprep.mubr.f32.mxu1 %v2740_v0  ;;  %vm77_vm3 = vcmask 64516   ;;  %v60_v1 = vld [vmem:[#allocation8] sm:$0xff]  ;;  %s2741_s2 = smov 34   ;;  %v81_v3 = vld [vmem:[#allocation8 + $0x8] sm:$0xff] }
  0x39   :  { %59 = vst.msk [vmem:[#allocation2 + $0x8] sm:$0xf] %vm58_vm1, %v2740_v0  ;;  %vm78_vm4 = vmor %vm77_vm3, %vm76_vm2  ;;  %62 = vrot.lane.b32.xlu0 %v60_v1, %s2741_s2  ;;  %v2906_v2 = vld [vmem:[#allocation5 + $0x10] ss:$8 sps:$4 sm:$0xff]   ;;  %s2742_s22 = smov 2   ;;  %s2743_s25 = smov 102  }
  0x3a   :  { %79 = vst.msk [vmem:[#allocation2 + $0x10] sm:$0xff] %vm78_vm4, %v2740_v0  ;;  %151 = vrot.lane.b32.xlu1 %v2906_v2, %s2742_s22  ;;  %v2909_v4 = vld [vmem:[#allocation5] ss:$8 sps:$4 sm:$0xff]   ;;  %s2744_s26 = smov 68   ;;  %v2914_v5 = vld [vmem:[#allocation5 + $0x4] ss:$8 sps:$4 sm:$0xff]  }
  0x3b   :  { %s2745_s27 = smov 70   ;;  %v2917_v6 = vld [vmem:[#allocation5 + $0x14] ss:$8 sps:$4 sm:$0xff]   ;;  %s2746_s28 = smov 1   ;;  %v2922_v7 = vld [vmem:[#allocation5 + $0x20] ss:$8 sps:$4 sm:$0xff]  }
  0x3c   :  { %s2747_s29 = smov 3   ;;  %s2748_s30 = smov 69   ;;  %vm69_vm5 = vcmask 1043728   ;;  %vm70_vm6 = vcmask 1047556   ;;  %vm65_vm7 = vcmask 277504   ;;  %vm74_vm9 = vcmask 831008  }
  0x3d   :  { %83 = vrot.lane.b32.xlu0 %v81_v3, %s2743_s25  ;;  %s2749_s4 = smov 71   ;;  %s2750_s5 = smov 4   ;;  %vm71_vm8 = vmor %vm70_vm6, %vm69_vm5  ;;  %vm86_vm10 = vcmask 834560   ;;  %vm92_vm11 = vcmask 830464   ;;  %vm123_vm13 = vcmask 7168   ;;  %vm184_vm14 = vcmask 23552  }
  0x3e   :  { %787 = vrot.lane.b32.xlu1 %v2909_v4, %s2744_s26  ;;  %s2751_s6 = smov 17   ;;  %s2752_s7 = smov 72   ;;  %vm90_vm12 = vmor %vm70_vm6, %vm76_vm2  ;;  %vm815_vm15 = vcmask 564224   ;;  %vm870_vm1 = vcmask 580608   ;;  %vm763_vm2 = vcmask 556032   ;;  %vm843_vm3 = vcmask 572416  }
  0x3f   :  { %s2753_s8 = smov 85   ;;  %s2754_s10 = smov 18   ;;  %vm215_vm4 = vcmask 31744   ;;  %vm270_vm5 = vcmask 138240   ;;  %vm242_vm6 = vcmask 130048  }
  0x40   :  { %s2755_s11 = smov 84   ;;  %s2756_s12 = smov 86  }
  0x41   :  { %840 = vrot.lane.b32.xlu0 %v2906_v2, %s2745_s27  ;;  %s2757_s13 = smov 19   ;;  %s2758_s14 = smov 32  }
  0x42   :  { %120 = vrot.lane.b32.xlu1 %v2914_v5, %s2746_s28  ;;  %s2759_s15 = smov 87   ;;  %s2760_s16 = smov 100  }
  0x43   :  { %s2761_s17 = smov 20   ;;  %s2762_s18 = smov 33  }
  0x44   :  { %s2763_s19 = smov 88   ;;  %s2764_s20 = smov 101  }
  0x45   :  { %181 = vrot.lane.b32.xlu0 %v2917_v6, %s2747_s29  ;;  %s2765_s21 = smov 36   ;;  %s2766_s0 = smov 104  }
  0x46   :  { %812 = vrot.lane.b32.xlu1 %v2914_v5, %s2748_s30  ;;  %s2767_s24 = smov 35   ;;  %s2768_s22 = smov 48  }
  0x47   :  { %s2769_s27 = smov 103   ;;  %s2770_s28 = smov 116  }
  0x48   :  { %s2772_s29 = smov 51   ;;  %s2774_s30 = smov 119  }
  0x49   :  { %867 = vrot.lane.b32.xlu0 %v2917_v6, %s2749_s4  ;;  %s2775_s4 = smov 50  }
  0x4a   :  { %212 = vrot.lane.b32.xlu1 %v2922_v7, %s2750_s5 }
  0x4d   :  { %267 = vrot.lane.b32.xlu0 %v2914_v5, %s2751_s6  ;;  %s2776_s6 = smov 52  }
  0x4e   :  { %895 = vrot.lane.b32.xlu1 %v2922_v7, %s2752_s7  ;;  %s2777_s7 = smov 118  }
  0x51   :  { %950 = vrot.lane.b32.xlu0 %v2914_v5, %s2753_s8  ;;  %s2778_s8 = smov 120  }
  0x52   :  { %239 = vrot.lane.b32.xlu1 %v2909_v4, %s2738_s9 }
  0x55   :  { %294 = vrot.lane.b32.xlu0 %v2906_v2, %s2754_s10  ;;  %s2779_s10 = smov 64  }
  0x56   :  { %922 = vrot.lane.b32.xlu1 %v2909_v4, %s2755_s11  ;;  %s2780_s11 = smov 66  }
  0x59   :  { %977 = vrot.lane.b32.xlu0 %v2906_v2, %s2756_s12  ;;  %s2781_s12 = smov 6  }
  0x5a   :  { %322 = vrot.lane.b32.xlu1 %v2917_v6, %s2757_s13  ;;  %s2782_s13 = smov 65  }
  0x5d   :  { %377 = vrot.lane.b32.xlu0 %v2909_v4, %s2758_s14  ;;  %s2783_s14 = smov 67  }
  0x5e   :  { %1005 = vrot.lane.b32.xlu1 %v2917_v6, %s2759_s15  ;;  %s2784_s15 = smov 5  }
  0x61   :  { %1060 = vrot.lane.b32.xlu0 %v2909_v4, %s2760_s16  ;;  %s2785_s16 = smov 7  }
  0x62   :  { %349 = vrot.lane.b32.xlu1 %v2922_v7, %s2761_s17  ;;  %s2788_s17 = smov 125  }
  0x65   :  { %404 = vrot.lane.b32.xlu0 %v2914_v5, %s2762_s18  ;;  %s2789_s18 = smov 58  }
  0x66   :  { %1032 = vrot.lane.b32.xlu1 %v2922_v7, %s2763_s19  ;;  %s2790_s19 = smov 59  }
  0x69   :  { %1087 = vrot.lane.b32.xlu0 %v2914_v5, %s2764_s20  ;;  %s2791_s20 = smov 126  }
  0x6a   :  { %432 = vrot.lane.b32.xlu1 %v2906_v2, %s2741_s2  ;;  %s2771_s2 = smov 49  }
  0x6d   :  { %486 = vrot.lane.b32.xlu0 %v2922_v7, %s2765_s21  ;;  %s2792_s21 = smov 57  }
  0x6e   :  { %1115 = vrot.lane.b32.xlu1 %v2906_v2, %s2743_s25  ;;  %s2773_s25 = smov 117  }
  0x71   :  { %1169 = vrot.lane.b32.xlu0 %v2922_v7, %s2766_s0  ;;  %s2793_s0 = smov 124  }
  0x72   :  { %458 = vrot.lane.b32.xlu1 %v2917_v6, %s2767_s24  ;;  %s2794_s24 = smov 112  }
  0x75   :  { %513 = vrot.lane.b32.xlu0 %v2909_v4, %s2768_s22  ;;  %s2795_s22 = smov 111  }
  0x76   :  { %1141 = vrot.lane.b32.xlu1 %v2917_v6, %s2769_s27  ;;  %s2796_s27 = smov 110  }
  0x79   :  { %1196 = vrot.lane.b32.xlu0 %v2909_v4, %s2770_s28  ;;  %s2797_s28 = smov 56  }
  0x7a   :  { %541 = vrot.lane.b32.xlu1 %v2914_v5, %s2771_s2  ;;  %s2798_s2 = smov 44  }
  0x7d   :  { %596 = vrot.lane.b32.xlu0 %v2917_v6, %s2772_s29  ;;  %s2799_s29 = smov 43  }
  0x7e   :  { %1224 = vrot.lane.b32.xlu1 %v2914_v5, %s2773_s25  ;;  %s2800_s25 = smov 42  }
  0x81   :  { %1279 = vrot.lane.b32.xlu0 %v2917_v6, %s2774_s30  ;;  %s2801_s30 = smov 109  }
  0x82   :  { %568 = vrot.lane.b32.xlu1 %v2906_v2, %s2775_s4  ;;  %s2802_s4 = smov 108  }
  0x85   :  { %623 = vrot.lane.b32.xlu0 %v2922_v7, %s2776_s6  ;;  %s2803_s6 = smov 96  }
  0x86   :  { %1251 = vrot.lane.b32.xlu1 %v2906_v2, %s2777_s7  ;;  %s2804_s7 = smov 95  }
  0x89   :  { %1306 = vrot.lane.b32.xlu0 %v2922_v7, %s2778_s8 }
  0x8a   :  { %651 = vrot.lane.b32.xlu1 %v2909_v4, %s2779_s10 }
  0x8d   :  { %705 = vrot.lane.b32.xlu0 %v2906_v2, %s2780_s11  ;;  %s2805_s11 = smov 41  }
  0x8e   :  { %1334 = vrot.lane.b32.xlu1 %v2909_v4, %s2750_s5  ;;  %s2787_s5 = smov 60  }
  0x91   :  { %1387 = vrot.lane.b32.xlu0 %v2906_v2, %s2781_s12  ;;  %s2806_s12 = smov 40  }
  0x92   :  { %677 = vrot.lane.b32.xlu1 %v2914_v5, %s2782_s13  ;;  %s2807_s13 = smov 28  }
  0x95   :  { %732 = vrot.lane.b32.xlu0 %v2917_v6, %s2783_s14  ;;  %s2808_s14 = smov 27  }
  0x96   :  { %1359 = vrot.lane.b32.xlu1 %v2914_v5, %s2784_s15  ;;  %s2809_s15 = smov 94  }
  0x99   :  { %1414 = vrot.lane.b32.xlu0 %v2917_v6, %s2785_s16  ;;  %s2810_s16 = smov 93  }
  0x9a   :  { %760 = vrot.lane.b32.xlu1 %v2922_v7, %s2744_s26  ;;  %s2786_s26 = smov 127  }
  0x9d   :  { %1442 = vrot.lane.b32.xlu0 %v2922_v7, %s2735_s23 }
  0xab   :  { %v63_v8 = vpop.permute.xlu0 %62 }
  0xac   :  { %v64_v9 = vrot.slane %v63_v8, 4  ;;  %v2976_v10 = vpop.permute.xlu1 %151 }
  0xad   :  { %v153_v37 = vrot.slane %v2976_v10, 4 }
  0xae   :  { %v66_v11 = vsel %vm65_vm7, %v64_v9, %v63_v8  ;;  %73 = vst.msk [vmem:[#allocation2 + $0x8] sm:$0xf] %vm56_vm0, %v64_v9  ;;  %vm154_vm0 = vcmask 15360  }
  0xaf   :  { %72 = vst.msk [vmem:[#allocation2] sm:$0xff] %vm71_vm8, %v66_v11  ;;  %v84_v12 = vpop.permute.xlu0 %83  ;;  %v155_v44 = vsel %vm154_vm0, %v153_v37, %v2976_v10  ;;  %vm898_vm8 = vcmask 588800   ;;  %vm352_vm0 = vcmask 162816  }
  0xb0   :  { %75 = vst.msk [vmem:[#allocation2 + $0x8] sm:$0xf] %vm74_vm9, %v2740_v0  ;;  %v85_v13 = vrot.slane %v84_v12, 4  ;;  %v2982_v14 = vpop.permute.xlu1 %787  ;;  %vm297_vm9 = vcmask 146432  }
  0xb1   :  { %v789_v23 = vrot.slane %v2982_v14, 4 }
  0xb2   :  { %v87_v15 = vsel %vm86_vm10, %v85_v13, %v84_v12  ;;  %93 = vst.msk [vmem:[#allocation2 + $0x10] sm:$0xf] %vm92_vm11, %v85_v13  ;;  %vm953_vm11 = vcmask 695296  }
  0xb3   :  { %91 = vst.msk [vmem:[#allocation2 + $0x8] sm:$0xff] %vm90_vm12, %v87_v15  ;;  %v2985_v16 = vpop.permute.xlu0 %840  ;;  %v790_v5 = vsel %vm763_vm2, %v789_v23, %v2982_v14  ;;  %vm925_vm12 = vcmask 687104  }
  0xb4   :  { %v2987_v17 = vpop.permute.xlu1 %120  ;;  %v842_v36 = vrot.slane %v2985_v16, 4 }
  0xb5   :  { %v122_v18 = vrot.slane %v2987_v17, 4 }
  0xb6   :  { %v2990_v19 = vld [vmem:[#allocation2] sm:$0xff]  ;;  %v844_v12 = vsel %vm843_vm3, %v842_v36, %v2985_v16  ;;  %vm407_vm3 = vcmask 269312  }
  0xb7   :  { %v104_v20 = vld [vmem:[#allocation2] sm:$0xff]  ;;  %v2992_v21 = vpop.permute.xlu0 %181  ;;  %v124_v24 = vsel %vm123_vm13, %v122_v18, %v2987_v17  ;;  %v158_v48 = vmul.f32 %v155_v44, %v2990_v19  ;;  %vm980_vm13 = vcmask 703488  }
  0xb8   :  { %v109_v22 = vmul.f32 %v2909_v4, %v104_v20  ;;  %v183_v25 = vrot.slane %v2992_v21, 4  ;;  %v813_v26 = vpop.permute.xlu1 %812  ;;  %v3001_v27 = vmul.f32 %v124_v24, %v2990_v19 }
  0xb9   :  { %v786_v28 = vld [vmem:[#allocation2 + $0x10] sm:$0xf]  ;;  %v814_v31 = vrot.slane %v813_v26, 4  ;;  %v162_v58 = vcombine.high %v158_v48, %v158_v48 }
  0xba   :  { %v111_v29 = vcombine.high %v109_v22, %v109_v22  ;;  %113 = vst [vmem:[#allocation3] sm:$0xf] %v109_v22  ;;  %v185_v30 = vsel %vm184_vm14, %v183_v25, %v2992_v21  ;;  %v794_v32 = vmul.f32 %v789_v23, %v786_v28  ;;  %135 = vrot.lane.b32.xlu1 %v3001_v27, %s2786_s26  ;;  %v839_v35 = vld [vmem:[#allocation2 + $0x10] sm:$0xf]  ;;  %v3016_v39 = vld [vmem:[#allocation2 + $0x8] sm:$0xff]  ;;  %vm325_vm14 = vcmask 154624  }
  0xbb   :  { %v868_v33 = vpop.permute.xlu0 %867  ;;  %v188_v34 = vmul.f32 %v185_v30, %v2990_v19  ;;  %v816_v40 = vsel %vm815_vm15, %v814_v31, %v813_v26  ;;  %v848_v42 = vmul.f32 %v842_v36, %v839_v35  ;;  %v147_v50 = vld [vmem:[#allocation2 + $0x8] sm:$0xf]  ;;  %v811_v51 = vld [vmem:[#allocation2 + $0x10] sm:$0xf]  ;;  %v131_v1 = vcombine.low %v3001_v27, %v3001_v27 }
  0xbc   :  { %114 = vst [vmem:[#allocation3 + $0x8] sm:$0xf] %v111_v29  ;;  %802 = vrot.lane.b32.xlu0 %v794_v32, %s2787_s5  ;;  %v3014_v38 = vpop.permute.xlu1 %212  ;;  %v869_v41 = vrot.slane %v868_v33, 4  ;;  %v3026_v46 = vmul.f32 %v3016_v39, %v816_v40  ;;  %v159_v54 = vmul.f32 %v153_v37, %v147_v50  ;;  %v820_v55 = vmul.f32 %v814_v31, %v811_v51  ;;  %v866_v59 = vld [vmem:[#allocation2 + $0x10] sm:$0xf] }
  0xbd   :  { %v116_v4 = vld [vmem:[#allocation2 + $0x8] sm:$0xf]  ;;  %v192_v7 = vcombine.low %v188_v34, %v188_v34  ;;  %v793_v8 = vmul.f32 %v3016_v39, %v790_v5  ;;  %v847_v13 = vmul.f32 %v844_v12, %v3016_v39  ;;  %v214_v17 = vrot.slane %v3014_v38, 4  ;;  %v921_v12 = vld [vmem:[#allocation2 + $0x10] sm:$0xf] }
  0xbe   :  { %196 = vrot.lane.b32.xlu1 %v188_v34, %s2788_s17  ;;  %v871_v47 = vsel %vm870_vm1, %v869_v41, %v868_v33  ;;  %v824_v60 = vcombine.low %v820_v55, %v820_v55  ;;  %v875_v61 = vmul.f32 %v869_v41, %v866_v59  ;;  %v128_v9 = vmul.f32 %v122_v18, %v116_v4  ;;  %v177_v11 = vld [vmem:[#allocation2 + $0x8] sm:$0xf] }
  0xbf   :  { %v3018_v43 = vpop.permute.xlu0 %267  ;;  %v3036_v53 = vmul.f32 %v871_v47, %v3016_v39  ;;  %v797_v15 = vcombine.high %v793_v8, %v793_v8  ;;  %v189_v22 = vmul.f32 %v183_v25, %v177_v11  ;;  %v851_v16 = vcombine.high %v847_v13, %v847_v13  ;;  %v208_v36 = vld [vmem:[#allocation2 + $0x8] sm:$0xf]  ;;  %v894_v11 = vld [vmem:[#allocation2 + $0x10] sm:$0xf] }
  0xc0   :  { %856 = vrot.lane.b32.xlu0 %v848_v42, %s2789_s18  ;;  %v3023_v45 = vpop.permute.xlu1 %895  ;;  %v879_v2 = vcombine.low %v875_v61, %v875_v61  ;;  %v132_v20 = vcombine.low %v128_v9, %v128_v9  ;;  %v216_v24 = vsel %vm215_vm4, %v214_v17, %v3014_v38  ;;  %v823_v25 = vcombine.low %v3026_v46, %v3026_v46  ;;  %v238_v37 = vld [vmem:[#allocation2 + $0x8] sm:$0xf] }
  0xc1   :  { %v193_v23 = vcombine.low %v189_v22, %v189_v22  ;;  %v3090_v27 = vmul.f32 %v216_v24, %v2990_v19  ;;  %v269_v28 = vrot.slane %v3018_v43, 4  ;;  %v878_v31 = vcombine.low %v3036_v53, %v3036_v53 }
  0xc2   :  { %827 = vrot.lane.b32.xlu1 %v3026_v46, %s2790_s19  ;;  %v220_v38 = vmul.f32 %v214_v17, %v208_v36  ;;  %v897_v44 = vrot.slane %v3023_v45, 4  ;;  %vm380_vm15 = vcmask 261120   ;;  %vm1008_vm1 = vcmask 711680  }
  0xc3   :  { %v3029_v49 = vpop.permute.xlu0 %950  ;;  %v223_v33 = vcombine.high %v3090_v27, %v3090_v27  ;;  %v271_v34 = vsel %vm270_vm5, %v269_v28, %v3018_v43  ;;  %vm1063_vm5 = vcmask 818176  }
  0xc4   :  { %163 = vrot.lane.b32.xlu0 %v158_v48, %s2791_s20  ;;  %v3033_v52 = vpop.permute.xlu1 %239  ;;  %v3109_v41 = vmul.f32 %v271_v34, %v2990_v19  ;;  %v899_v51 = vsel %vm898_vm8, %v897_v44, %v3023_v45  ;;  %v952_v45 = vrot.slane %v3029_v49, 4  ;;  %vm1090_vm8 = vcmask 826368  }
  0xc5   :  { %v241_v29 = vrot.slane %v3033_v52, 4 }
  0xc6   :  { %882 = vrot.lane.b32.xlu1 %v3036_v53, %s2792_s21  ;;  %v278_v50 = vcombine.high %v3109_v41, %v3109_v41  ;;  %v266_v53 = vld [vmem:[#allocation2 + $0x8] sm:$0xf]  ;;  %v954_v5 = vsel %vm953_vm11, %v952_v45, %v3029_v49  ;;  %vm831_vm11 = vcmask 482304  }
  0xc7   :  { %v3038_v56 = vpop.permute.xlu0 %294  ;;  %v243_v35 = vsel %vm242_vm6, %v241_v29, %v3033_v52  ;;  %v247_v40 = vmul.f32 %v241_v29, %v238_v37  ;;  %vm1035_vm6 = vcmask 719872  }
  0xc8   :  { %167 = vrot.lane.b32.xlu0 %v159_v54, %s2791_s20  ;;  %v3042_v57 = vpop.permute.xlu1 %922  ;;  %v3112_v42 = vmul.f32 %v243_v35, %v2990_v19  ;;  %v296_v43 = vrot.slane %v3038_v56, 4  ;;  %v293_v54 = vld [vmem:[#allocation2 + $0x8] sm:$0xf] }
  0xc9   :  { %v251_v48 = vcombine.low %v247_v40, %v247_v40 }
  0xca   :  { %165 = vrot.lane.b32.xlu1 %v162_v58, %s2791_s20  ;;  %v298_v52 = vsel %vm297_vm9, %v296_v43, %v3038_v56  ;;  %v275_v58 = vmul.f32 %v269_v28, %v266_v53  ;;  %v302_v59 = vmul.f32 %v296_v43, %v293_v54  ;;  %v924_v56 = vrot.slane %v3042_v57, 4  ;;  %v976_v28 = vld [vmem:[#allocation2 + $0x10] sm:$0xf]  ;;  %s2815_s20 = smov 24  }
  0xcb   :  { %v3044_v62 = vpop.permute.xlu0 %977  ;;  %v250_v37 = vcombine.low %v3112_v42, %v3112_v42  ;;  %vm169_vm9 = vcmask 1031168  }
  0xcc   :  { %829 = vrot.lane.b32.xlu0 %v824_v60, %s2790_s19  ;;  %v3047_v63 = vpop.permute.xlu1 %322  ;;  %v902_v60 = vmul.f32 %v899_v51, %v3016_v39  ;;  %v979_v49 = vrot.slane %v3044_v62, 4 }
  0xcd   :  { %v324_v40 = vrot.slane %v3047_v63, 4 }
  0xce   :  { %133 = vrot.lane.b32.xlu1 %v131_v1, %s2786_s26  ;;  %v301_v1 = vmul.f32 %v298_v52, %v2990_v19  ;;  %v906_v4 = vcombine.high %v902_v60, %v902_v60  ;;  %v981_v24 = vsel %vm980_vm13, %v979_v49, %v3044_v62  ;;  %vm461_vm13 = vcmask 285696  }
  0xcf   :  { %v3051_v3 = vpop.permute.xlu0 %377  ;;  %v326_v43 = vsel %vm325_vm14, %v324_v40, %v3047_v63  ;;  %vm886_vm14 = vcmask 465920  }
  0xd0   :  { %884 = vrot.lane.b32.xlu0 %v879_v2, %s2792_s21  ;;  %v3059_v6 = vpop.permute.xlu1 %1005  ;;  %v306_v2 = vcombine.low %v302_v59, %v302_v59  ;;  %v379_v51 = vrot.slane %v3051_v3, 4 }
  0xd2   :  { %194 = vrot.lane.b32.xlu1 %v192_v7, %s2788_s17  ;;  %v926_v7 = vsel %vm925_vm12, %v924_v56, %v3042_v57  ;;  %vm489_vm12 = vcmask 293888  }
  0xd3   :  { %v3064_v10 = vpop.permute.xlu0 %1060  ;;  %v929_v22 = vmul.f32 %v926_v7, %v3016_v39 }
  0xd4   :  { %798 = vrot.lane.b32.xlu0 %v793_v8, %s2787_s5  ;;  %v3070_v14 = vpop.permute.xlu1 %349 }
  0xd5   :  { %v351_v52 = vrot.slane %v3070_v14, 4 }
  0xd6   :  { %800 = vrot.lane.b32.xlu1 %v797_v15, %s2787_s5  ;;  %v930_v15 = vmul.f32 %v924_v56, %v921_v12 }
  0xd7   :  { %v3075_v18 = vpop.permute.xlu0 %404  ;;  %v353_v59 = vsel %vm352_vm0, %v351_v52, %v3070_v14  ;;  %vm778_vm0 = vcmask 490496  }
  0xd8   :  { %137 = vrot.lane.b32.xlu0 %v132_v20, %s2786_s26  ;;  %v3081_v26 = vpop.permute.xlu1 %1032  ;;  %v957_v20 = vmul.f32 %v954_v5, %v3016_v39  ;;  %v934_v17 = vcombine.low %v930_v15, %v930_v15  ;;  %v1007_v5 = vrot.slane %v3059_v6, 4  ;;  %s2811_s26 = smov 92  }
  0xda   :  { %854 = vrot.lane.b32.xlu1 %v851_v16, %s2789_s18 }
  0xdb   :  { %v3084_v21 = vpop.permute.xlu0 %1087 }
  0xdc   :  { %198 = vrot.lane.b32.xlu0 %v193_v23, %s2788_s17  ;;  %v3096_v30 = vpop.permute.xlu1 %432  ;;  %v961_v23 = vcombine.high %v957_v20, %v957_v20  ;;  %s2812_s17 = smov 80  }
  0xde   :  { %825 = vrot.lane.b32.xlu1 %v823_v25, %s2790_s19  ;;  %v949_v25 = vld [vmem:[#allocation2 + $0x10] sm:$0xf]  ;;  %s2814_s19 = smov 25  }
  0xdf   :  { %v3100_v32 = vpop.permute.xlu0 %486  ;;  %v958_v29 = vmul.f32 %v952_v45, %v949_v25 }
  0xe0   :  { %852 = vrot.lane.b32.xlu0 %v847_v13, %s2789_s18  ;;  %v3116_v46 = vpop.permute.xlu1 %1115  ;;  %v903_v13 = vmul.f32 %v897_v44, %v894_v11  ;;  %v305_v44 = vcombine.low %v301_v1, %v301_v1  ;;  %s2813_s18 = smov 26  }
  0xe2   :  { %880 = vrot.lane.b32.xlu1 %v878_v31, %s2792_s21  ;;  %v985_v31 = vmul.f32 %v979_v49, %v976_v28  ;;  %v1034_v28 = vrot.slane %v3081_v26, 4  ;;  %s2816_s21 = smov 12  }
  0xe3   :  { %v3119_v47 = vpop.permute.xlu0 %1169 }
  0xe4   :  { %226 = vrot.lane.b32.xlu0 %v223_v33, %s2793_s0  ;;  %v3129_v55 = vpop.permute.xlu1 %458  ;;  %v984_v33 = vmul.f32 %v981_v24, %v3016_v39  ;;  %v989_v62 = vcombine.low %v985_v31, %v985_v31 }
  0xe6   :  { %228 = vrot.lane.b32.xlu1 %v220_v38, %s2793_s0 }
  0xe7   :  { %v3132_v61 = vpop.permute.xlu0 %513 }
  0xe8   :  { %254 = vrot.lane.b32.xlu0 %v3112_v42, %s2794_s24  ;;  %v3141_v8 = vpop.permute.xlu1 %1141  ;;  %v933_v42 = vcombine.low %v929_v22, %v929_v22 }
  0xea   :  { %256 = vrot.lane.b32.xlu1 %v251_v48, %s2794_s24 }
  0xeb   :  { %v3144_v9 = vpop.permute.xlu0 %1196 }
  0xec   :  { %281 = vrot.lane.b32.xlu0 %v278_v50, %s2795_s22  ;;  %v3152_v57 = vpop.permute.xlu1 %541  ;;  %v3187_v50 = vmul.f32 %v326_v43, %v2990_v19 }
  0xee   :  { %283 = vrot.lane.b32.xlu1 %v275_v58, %s2795_s22  ;;  %v333_v54 = vcombine.high %v3187_v50, %v3187_v50  ;;  %v381_v58 = vsel %vm380_vm15, %v379_v51, %v3051_v3  ;;  %v406_v3 = vrot.slane %v3075_v18, 4  ;;  %vm200_vm15 = vcmask 1022976  }
  0xef   :  { %v3154_v16 = vpop.permute.xlu0 %596 }
  0xf0   :  { %309 = vrot.lane.b32.xlu0 %v301_v1, %s2796_s27  ;;  %v3160_v34 = vpop.permute.xlu1 %1224  ;;  %v321_v1 = vld [vmem:[#allocation2 + $0x8] sm:$0xf]  ;;  %v408_v15 = vsel %vm407_vm3, %v406_v3, %v3075_v18  ;;  %v1062_v18 = vrot.slane %v3064_v10, 4  ;;  %vm858_vm3 = vcmask 474112  }
  0xf1   :  { %v330_v56 = vmul.f32 %v324_v40, %v321_v1  ;;  %v3230_v25 = vmul.f32 %v408_v15, %v2990_v19  ;;  %v1004_v40 = vld [vmem:[#allocation2 + $0x10] sm:$0xf] }
  0xf2   :  { %311 = vrot.lane.b32.xlu1 %v306_v2, %s2796_s27  ;;  %v3204_v2 = vmul.f32 %v381_v58, %v2990_v19  ;;  %v1059_v1 = vld [vmem:[#allocation2 + $0x10] sm:$0xf] }
  0xf3   :  { %v3163_v35 = vpop.permute.xlu0 %1279 }
  0xf4   :  { %909 = vrot.lane.b32.xlu0 %v906_v4, %s2797_s28  ;;  %v3169_v36 = vpop.permute.xlu1 %568  ;;  %v3207_v4 = vmul.f32 %v353_v59, %v2990_v19  ;;  %v388_v12 = vcombine.high %v3204_v2, %v3204_v2 }
  0xf6   :  { %911 = vrot.lane.b32.xlu1 %v903_v13, %s2797_s28  ;;  %v1009_v13 = vsel %vm1008_vm1, %v1007_v5, %v3059_v6  ;;  %vm516_vm1 = vcmask 392192  }
  0xf7   :  { %v3173_v38 = vpop.permute.xlu0 %623  ;;  %v3227_v24 = vmul.f32 %v1009_v13, %v3016_v39 }
  0xf8   :  { %937 = vrot.lane.b32.xlu0 %v929_v22, %s2798_s2  ;;  %v3180_v48 = vpop.permute.xlu1 %1251  ;;  %v403_v22 = vld [vmem:[#allocation2 + $0x8] sm:$0xf] }
  0xf9   :  { %v1016_v31 = vcombine.high %v3227_v24, %v3227_v24 }
  0xfa   :  { %939 = vrot.lane.b32.xlu1 %v934_v17, %s2798_s2  ;;  %v412_v17 = vmul.f32 %v406_v3, %v403_v22 }
  0xfc   :  { %964 = vrot.lane.b32.xlu0 %v961_v23, %s2799_s29  ;;  %v3193_v63 = vpop.permute.xlu1 %651 }
  0xfe   :  { %966 = vrot.lane.b32.xlu1 %v958_v29, %s2799_s29  ;;  %v416_v29 = vcombine.low %v412_v17, %v412_v17  ;;  %v434_v17 = vrot.slane %v3096_v30, 4 }
 0x100   :  { %992 = vrot.lane.b32.xlu0 %v984_v33, %s2800_s25  ;;  %v3211_v14 = vpop.permute.xlu1 %1334 }
 0x102   :  { %994 = vrot.lane.b32.xlu1 %v989_v62, %s2800_s25  ;;  %v1036_v62 = vsel %vm1035_vm6, %v1034_v28, %v3081_v26  ;;  %vm230_vm6 = vcmask 1014784  }
 0x104   :  { %224 = vrot.lane.b32.xlu0 %v3090_v27, %s2793_s0  ;;  %v3183_v27 = vpop.permute.xlu0 %1306  ;;  %v3224_v23 = vpop.permute.xlu1 %677 }
 0x106   :  { %252 = vrot.lane.b32.xlu1 %v250_v37, %s2794_s24  ;;  %s2817_s24 = smov 79  }
 0x108   :  { %279 = vrot.lane.b32.xlu0 %v3109_v41, %s2795_s22  ;;  %v988_v41 = vcombine.low %v984_v33, %v984_v33  ;;  %v3195_v53 = vpop.permute.xlu0 %705  ;;  %v1064_v33 = vsel %vm1063_vm5, %v1062_v18, %v3064_v10  ;;  %v3243_v37 = vpop.permute.xlu1 %1359  ;;  %v1089_v10 = vrot.slane %v3084_v21, 4  ;;  %vm1144_vm5 = vcmask 842752   ;;  %s2818_s22 = smov 78  }
 0x10a   :  { %307 = vrot.lane.b32.xlu1 %v305_v44, %s2796_s27  ;;  %v1031_v44 = vld [vmem:[#allocation2 + $0x10] sm:$0xf]  ;;  %s2819_s27 = smov 77  }
 0x10c   :  { %907 = vrot.lane.b32.xlu0 %v902_v60, %s2797_s28  ;;  %v348_v60 = vld [vmem:[#allocation2 + $0x8] sm:$0xf]  ;;  %v3214_v7 = vpop.permute.xlu0 %1387  ;;  %s2820_s28 = smov 76  }
 0x10d   :  { %v357_v45 = vmul.f32 %v351_v52, %v348_v60  ;;  %v1067_v52 = vmul.f32 %v1064_v33, %v3016_v39  ;;  %v1091_v60 = vsel %vm1090_vm8, %v1089_v10, %v3084_v21  ;;  %vm1199_vm8 = vcmask 949248  }
 0x10e   :  { %935 = vrot.lane.b32.xlu1 %v933_v42, %s2798_s2  ;;  %v1013_v42 = vmul.f32 %v1007_v5, %v1004_v40  ;;  %v488_v40 = vrot.slane %v3100_v32, 4  ;;  %s2821_s2 = smov 11  }
 0x10f   :  { %v361_v11 = vcombine.low %v357_v45, %v357_v45  ;;  %v1071_v58 = vcombine.high %v1067_v52, %v1067_v52  ;;  %v1086_v45 = vld [vmem:[#allocation2 + $0x10] sm:$0xf] }
 0x110   :  { %962 = vrot.lane.b32.xlu0 %v957_v20, %s2799_s29  ;;  %v376_v20 = vld [vmem:[#allocation2 + $0x8] sm:$0xf]  ;;  %v3232_v6 = vpop.permute.xlu0 %732  ;;  %v1095_v5 = vmul.f32 %v1089_v10, %v1086_v45  ;;  %s2822_s29 = smov 10  }
 0x111   :  { %v385_v49 = vmul.f32 %v379_v51, %v376_v20  ;;  %v1040_v51 = vmul.f32 %v1034_v28, %v1031_v44  ;;  %v360_v20 = vcombine.low %v3207_v4, %v3207_v4  ;;  %v460_v44 = vrot.slane %v3129_v55, 4 }
 0x112   :  { %990 = vrot.lane.b32.xlu1 %v988_v41, %s2800_s25  ;;  %v1039_v41 = vmul.f32 %v1036_v62, %v3016_v39  ;;  %v1099_v21 = vcombine.low %v1095_v5, %v1095_v5  ;;  %s2823_s25 = smov 9  }
 0x113   :  { %v1044_v26 = vcombine.low %v1040_v51, %v1040_v51 }
 0x114   :  { %336 = vrot.lane.b32.xlu0 %v333_v54, %s2801_s30  ;;  %v3246_v43 = vpop.permute.xlu0 %1414  ;;  %v3254_v54 = vpop.permute.xlu1 %760 }
 0x116   :  { %338 = vrot.lane.b32.xlu1 %v330_v56, %s2801_s30  ;;  %v1068_v56 = vmul.f32 %v1062_v18, %v1059_v1  ;;  %v415_v18 = vcombine.low %v3230_v25, %v3230_v25  ;;  %v457_v1 = vld [vmem:[#allocation2 + $0x8] sm:$0xf] }
 0x118   :  { %364 = vrot.lane.b32.xlu0 %v3207_v4, %s2802_s4  ;;  %v3256_v59 = vpop.permute.xlu0 %1442  ;;  %v1043_v4 = vcombine.low %v1039_v41, %v1039_v41 }
 0x11a   :  { %366 = vrot.lane.b32.xlu1 %v361_v11, %s2802_s4  ;;  %v1094_v11 = vmul.f32 %v1091_v60, %v3016_v39 }
 0x11c   :  { %391 = vrot.lane.b32.xlu0 %v388_v12, %s2803_s6 }
 0x11e   :  { %393 = vrot.lane.b32.xlu1 %v385_v49, %s2803_s6 }
 0x120   :  { %419 = vrot.lane.b32.xlu0 %v3230_v25, %s2804_s7 }
 0x122   :  { %421 = vrot.lane.b32.xlu1 %v416_v29, %s2804_s7 }
 0x124   :  { %1019 = vrot.lane.b32.xlu0 %v1016_v31, %s2805_s11 }
 0x126   :  { %1021 = vrot.lane.b32.xlu1 %v1013_v42, %s2805_s11 }
 0x128   :  { %1047 = vrot.lane.b32.xlu0 %v1039_v41, %s2806_s12 }
 0x12a   :  { %1049 = vrot.lane.b32.xlu1 %v1044_v26, %s2806_s12  ;;  %v490_v26 = vsel %vm489_vm12, %v488_v40, %v3100_v32  ;;  %vm913_vm12 = vcmask 457728  }
 0x12b   :  { %v3312_v32 = vmul.f32 %v490_v26, %v2990_v19 }
 0x12c   :  { %1074 = vrot.lane.b32.xlu0 %v1071_v58, %s2807_s13  ;;  %v3261_v3 = vpop.permute.xlu1 %135  ;;  %v462_v58 = vsel %vm461_vm13, %v460_v44, %v3129_v55  ;;  %vm544_vm13 = vcmask 400384  }
 0x12d   :  { %v3315_v55 = vmul.f32 %v462_v58, %v2990_v19 }
 0x12e   :  { %v3264_v12 = vpop.permute.xlu0 %802  ;;  %1076 = vrot.lane.b32.xlu1 %v1068_v56, %s2807_s13  ;;  %v466_v56 = vmul.f32 %v460_v44, %v457_v1  ;;  %v485_v44 = vld [vmem:[#allocation2 + $0x8] sm:$0xf] }
 0x130   :  { %1102 = vrot.lane.b32.xlu0 %v1094_v11, %s2808_s14  ;;  %v3268_v13 = vpop.permute.xlu1 %196 }
 0x132   :  { %v3270_v15 = vpop.permute.xlu0 %856  ;;  %1104 = vrot.lane.b32.xlu1 %v1099_v21, %s2808_s14 }
 0x134   :  { %334 = vrot.lane.b32.xlu0 %v3187_v50, %s2801_s30  ;;  %v3277_v22 = vpop.permute.xlu1 %827  ;;  %v435_v50 = vsel %vm65_vm7, %v434_v17, %v3096_v30  ;;  %vm139_vm7 = vcmask 1039360   ;;  %s2825_s30 = smov 62  }
 0x136   :  { %v164_v49 = vpop.permute.xlu0 %163  ;;  %362 = vrot.lane.b32.xlu1 %v360_v20, %s2802_s4  ;;  %v1117_v20 = vrot.slane %v3116_v46, 4  ;;  %s2826_s4 = smov 61  }
 0x138   :  { %389 = vrot.lane.b32.xlu0 %v3204_v2, %s2803_s6  ;;  %v3285_v28 = vpop.permute.xlu1 %882  ;;  %v3293_v2 = vmul.f32 %v435_v50, %v2990_v19  ;;  %s2827_s6 = smov 123  }
 0x13a   :  { %v168_v29 = vpop.permute.xlu0 %167  ;;  %417 = vrot.lane.b32.xlu1 %v415_v18, %s2804_s7  ;;  %v442_v51 = vcombine.high %v3293_v2, %v3293_v2  ;;  %s2828_s7 = smov 122  }
 0x13c   :  { %1017 = vrot.lane.b32.xlu0 %v3227_v24, %s2805_s11  ;;  %v166_v31 = vpop.permute.xlu1 %165  ;;  %v1098_v24 = vcombine.low %v1094_v11, %v1094_v11  ;;  %s2829_s11 = smov 121  }
 0x13d   :  { %v170_v33 = vsel %vm169_vm9, %v164_v49, %v166_v31  ;;  %v171_v25 = vsel %vm169_vm9, %v166_v31, %v168_v29  ;;  %v515_v49 = vrot.slane %v3132_v61, 4  ;;  %v497_v29 = vcombine.high %v3312_v32, %v3312_v32 }
 0x13e   :  { %v830_v62 = vpop.permute.xlu0 %829  ;;  %174 = vst [vmem:[#allocation3 + $0x20] sm:$0xf] %v170_v33  ;;  %175 = vst [vmem:[#allocation3 + $0x28] sm:$0xf] %v171_v25  ;;  %1045 = vrot.lane.b32.xlu1 %v1043_v4, %s2806_s12  ;;  %v1118_v33 = vsel %vm86_vm10, %v1117_v20, %v3116_v46  ;;  %vm1172_vm10 = vcmask 850944   ;;  %vm258_vm9 = vcmask 916480  }
 0x13f   :  { %v833_v30 = vsel %vm831_vm11, %v3277_v22, %v830_v62  ;;  %v517_v25 = vsel %vm516_vm1, %v515_v49, %v3132_v61  ;;  %v3337_v46 = vmul.f32 %v1118_v33, %v3016_v39  ;;  %vm599_vm1 = vcmask 416768  }
 0x140   :  { %837 = vst [vmem:[#allocation3 + $0x18] sm:$0xf0] %v833_v30  ;;  %1072 = vrot.lane.b32.xlu0 %v1067_v52, %s2807_s13  ;;  %v134_v42 = vpop.permute.xlu1 %133  ;;  %v431_v52 = vld [vmem:[#allocation2 + $0x8] sm:$0xf]  ;;  %v3340_v61 = vmul.f32 %v517_v25, %v2990_v19 }
 0x141   :  { %v140_v41 = vsel %vm139_vm7, %v134_v42, %v3261_v3  ;;  %v439_v45 = vmul.f32 %v434_v17, %v431_v52  ;;  %v470_v17 = vcombine.low %v466_v56, %v466_v56  ;;  %v512_v30 = vld [vmem:[#allocation2 + $0x8] sm:$0xf]  ;;  %v1125_v58 = vcombine.high %v3337_v46, %v3337_v46  ;;  %v1114_v56 = vld [vmem:[#allocation2 + $0x10] sm:$0xf] }
 0x142   :  { %v885_v10 = vpop.permute.xlu0 %884  ;;  %144 = vst [vmem:[#allocation3] sm:$0xf0] %v140_v41  ;;  %1100 = vrot.lane.b32.xlu1 %v1098_v24, %s2808_s14  ;;  %v521_v24 = vmul.f32 %v515_v49, %v512_v30  ;;  %v1171_v41 = vrot.slane %v3119_v47, 4 }
 0x143   :  { %v888_v60 = vsel %vm886_vm14, %v3285_v28, %v885_v10  ;;  %v1143_v10 = vrot.slane %v3141_v8, 4 }
 0x144   :  { %892 = vst [vmem:[#allocation3 + $0x38] sm:$0xf0] %v888_v60  ;;  %445 = vrot.lane.b32.xlu0 %v442_v51, %s2809_s15  ;;  %v195_v5 = vpop.permute.xlu1 %194  ;;  %v525_v26 = vcombine.low %v521_v24, %v521_v24 }
 0x145   :  { %v201_v11 = vsel %vm200_vm15, %v195_v5, %v3268_v13  ;;  %v1145_v1 = vsel %vm1144_vm5, %v1143_v10, %v3141_v8  ;;  %v1140_v5 = vld [vmem:[#allocation2 + $0x10] sm:$0xf]  ;;  %vm1227_vm5 = vcmask 957440  }
 0x146   :  { %v799_v21 = vpop.permute.xlu0 %798  ;;  %205 = vst [vmem:[#allocation3 + $0x20] sm:$0xf0] %v201_v11  ;;  %447 = vrot.lane.b32.xlu1 %v439_v45, %s2809_s15  ;;  %v1122_v11 = vmul.f32 %v1117_v20, %v1114_v56 }
 0x148   :  { %473 = vrot.lane.b32.xlu0 %v3315_v55, %s2810_s16  ;;  %v801_v18 = vpop.permute.xlu1 %800 }
 0x149   :  { %v804_v50 = vsel %vm778_vm0, %v799_v21, %v801_v18  ;;  %v805_v4 = vsel %vm778_vm0, %v801_v18, %v3264_v12  ;;  %v494_v12 = vmul.f32 %v488_v40, %v485_v44 }
 0x14a   :  { %v138_v31 = vpop.permute.xlu0 %137  ;;  %808 = vst [vmem:[#allocation3 + $0x10] sm:$0xf] %v804_v50  ;;  %809 = vst [vmem:[#allocation3 + $0x18] sm:$0xf] %v805_v4  ;;  %475 = vrot.lane.b32.xlu1 %v470_v17, %s2810_s16  ;;  %v3366_v17 = vmul.f32 %v1145_v1, %v3016_v39 }
 0x14b   :  { %v141_v62 = vsel %vm139_vm7, %v3261_v3, %v138_v31  ;;  %v1198_v31 = vrot.slane %v3144_v9, 4  ;;  %vm313_vm7 = vcmask 900096  }
 0x14c   :  { %145 = vst [vmem:[#allocation3 + $0x8] sm:$0xf0] %v141_v62  ;;  %500 = vrot.lane.b32.xlu0 %v497_v29, %s2811_s26  ;;  %v855_v42 = vpop.permute.xlu1 %854  ;;  %v1500_v62 = vld [vmem:[#allocation3] sm:$0xff] }
 0x14d   :  { %v860_v3 = vsel %vm858_vm3, %v855_v42, %v3270_v15  ;;  %v1504_v4 = vld [vmem:[#allocation3 + $0x20] sm:$0xff] }
 0x14e   :  { %v199_v51 = vpop.permute.xlu0 %198  ;;  %864 = vst [vmem:[#allocation3 + $0x38] sm:$0xf] %v860_v3  ;;  %502 = vrot.lane.b32.xlu1 %v494_v12, %s2811_s26  ;;  %v2391_v12 = vpack.c.bf16 %v1504_v4, %v1500_v62  ;;  %v570_v62 = vrot.slane %v3169_v36, 4 }
 0x14f   :  { %v202_v40 = vsel %vm200_vm15, %v3268_v13, %v199_v51  ;;  %v1173_v13 = vsel %vm1172_vm10, %v1171_v41, %v3119_v47  ;;  %v1200_v51 = vsel %vm1199_vm8, %v1198_v31, %v3144_v9  ;;  %vm968_vm15 = vcmask 351232  }
 0x150   :  { %206 = vst [vmem:[#allocation3 + $0x28] sm:$0xf0] %v202_v40  ;;  %528 = vrot.lane.b32.xlu0 %v3340_v61, %s2812_s17  ;;  %v826_v15 = vpop.permute.xlu1 %825  ;;  %v3363_v49 = vmul.f32 %v1173_v13, %v3016_v39  ;;  %v1195_v40 = vld [vmem:[#allocation2 + $0x10] sm:$0xf]  ;;  %vm996_vm10 = vcmask 343040   ;;  %vm626_vm8 = vcmask 424960  }
 0x151   :  { %v832_v60 = vsel %vm831_vm11, %v826_v15, %v3277_v22  ;;  %v1149_v22 = vmul.f32 %v1143_v10, %v1140_v5  ;;  %v1503_v29 = vld [vmem:[#allocation3 + $0x18] sm:$0xff]  ;;  %v1204_v15 = vmul.f32 %v1198_v31, %v1195_v40  ;;  %vm285_vm11 = vcmask 908288  }
 0x152   :  { %v853_v52 = vpop.permute.xlu0 %852  ;;  %836 = vst [vmem:[#allocation3 + $0x10] sm:$0xf0] %v832_v60  ;;  %530 = vrot.lane.b32.xlu1 %v525_v26, %s2812_s17  ;;  %v1180_v24 = vcombine.high %v3363_v49, %v3363_v49  ;;  %v1168_v10 = vld [vmem:[#allocation2 + $0x10] sm:$0xf]  ;;  %v3388_v60 = vmul.f32 %v1200_v51, %v3016_v39  ;;  %v469_v5 = vcombine.low %v3315_v55, %v3315_v55  ;;  %v567_v51 = vld [vmem:[#allocation2 + $0x8] sm:$0xf] }
 0x153   :  { %v859_v45 = vsel %vm858_vm3, %v853_v52, %v855_v42  ;;  %v1501_v33 = vld [vmem:[#allocation3 + $0x8] sm:$0xff]  ;;  %v1153_v44 = vcombine.low %v1149_v22, %v1149_v22  ;;  %v1177_v26 = vmul.f32 %v1171_v41, %v1168_v10  ;;  %v1208_v47 = vcombine.low %v1204_v15, %v1204_v15 }
 0x154   :  { %863 = vst [vmem:[#allocation3 + $0x30] sm:$0xf] %v859_v45  ;;  %1128 = vrot.lane.b32.xlu0 %v1125_v58, %s2813_s18  ;;  %v881_v21 = vpop.permute.xlu1 %880  ;;  %vm571_vm3 = vcmask 408576   ;;  %v576_v40 = vmul.f32 %v570_v62, %v567_v51  ;;  %v3450_v15 = vld [vmem:[#allocation2] sm:$0xff] }
 0x155   :  { %v887_v8 = vsel %vm886_vm14, %v881_v21, %v3285_v28  ;;  %v1507_v50 = vld [vmem:[#allocation3 + $0x38] sm:$0xff]  ;;  %vm941_vm14 = vcmask 359424  }
 0x156   :  { %v3370_v18 = vpop.permute.xlu0 %226  ;;  %891 = vst [vmem:[#allocation3 + $0x30] sm:$0xf0] %v887_v8  ;;  %1130 = vrot.lane.b32.xlu1 %v1122_v11, %s2813_s18  ;;  %v2421_v20 = vpack.c.bf16 %v1507_v50, %v1503_v29  ;;  %v543_v8 = vrot.slane %v3152_v57, 4 }
 0x157   :  { %v1505_v25 = vld [vmem:[#allocation3 + $0x28] sm:$0xff] }
 0x158   :  { %1156 = vrot.lane.b32.xlu0 %v3366_v17, %s2814_s19  ;;  %v2389_v28 = vpack.c.bf16 %v1505_v25, %v1501_v33  ;;  %2422 = vmatprep.subr.bf16.mxu1 %v2421_v20  ;;  %v229_v30 = vpop.permute.xlu1 %228  ;;  %v545_v4 = vsel %vm544_vm13, %v543_v8, %v3152_v57  ;;  %vm368_vm13 = vcmask 883712  }
 0x159   :  { %v232_v42 = vsel %vm230_vm6, %v3370_v18, %v229_v30  ;;  %v1502_v13 = vld [vmem:[#allocation3 + $0x10] sm:$0xff] }
 0x15a   :  { %v3380_v3 = vpop.permute.xlu0 %254  ;;  %2390 = vmatprep.subr.bf16.mxu0 %v2389_v28  ;;  %236 = vst [vmem:[#allocation3 + $0x48] sm:$0xf] %v232_v42  ;;  %1158 = vrot.lane.b32.xlu1 %v1153_v44, %s2814_s19  ;;  %v598_v28 = vrot.slane %v3154_v16, 4  ;;  %v572_v42 = vsel %vm571_vm3, %v570_v62, %v3169_v36  ;;  %vm654_vm3 = vcmask 523264  }
 0x15b   :  { %2392 = vmatpush1.bf16.msra.mxu0 %v2391_v12 }
 0x15c   :  { %1183 = vrot.lane.b32.xlu0 %v1180_v24, %s2815_s20  ;;  %v257_v58 = vpop.permute.xlu1 %256  ;;  %v600_v24 = vsel %vm599_vm1, %v598_v28, %v3154_v16  ;;  %v3456_v16 = vmul.f32 %v3450_v15, %v572_v42  ;;  %v1223_v42 = vld [vmem:[#allocation2 + $0x10] sm:$0xf]  ;;  %vm1023_vm1 = vcmask 334848  }
 0x15d   :  { %v260_v9 = vsel %vm258_vm9, %v3380_v3, %v257_v58  ;;  %v1506_v1 = vld [vmem:[#allocation3 + $0x30] sm:$0xff]  ;;  %v3453_v58 = vmul.f32 %v3450_v15, %v600_v24 }
 0x15e   :  { %v3392_v52 = vpop.permute.xlu0 %281  ;;  %264 = vst [vmem:[#allocation3 + $0x48] sm:$0xf0] %v260_v9  ;;  %1185 = vrot.lane.b32.xlu1 %v1177_v26, %s2815_s20  ;;  %v2423_v45 = vpack.c.bf16 %v1506_v1, %v1502_v13  ;;  %v1226_v9 = vrot.slane %v3160_v34, 4  ;;  %v625_v13 = vrot.slane %v3173_v38, 4 }
 0x160   :  { %1211 = vrot.lane.b32.xlu0 %v3388_v60, %s2816_s21  ;;  %2424 = vmatpush1.bf16.msra.mxu1 %v2423_v45  ;;  %v284_v39 = vpop.permute.xlu1 %283  ;;  %v580_v45 = vcombine.low %v576_v40, %v576_v40  ;;  %v1232_v51 = vmul.f32 %v1226_v9, %v1223_v42  ;;  %v707_v42 = vrot.slane %v3195_v53, 4 }
 0x161   :  { %v287_v41 = vsel %vm285_vm11, %v3392_v52, %v284_v39  ;;  %v607_v39 = vcombine.high %v3453_v58, %v3453_v58 }
 0x162   :  { %v3399_v56 = vpop.permute.xlu0 %309  ;;  %291 = vst [vmem:[#allocation3 + $0x68] sm:$0xf] %v287_v41  ;;  %1213 = vrot.lane.b32.xlu1 %v1208_v47, %s2816_s21 }
 0x164   :  { %443 = vrot.lane.b32.xlu0 %v3293_v2, %s2809_s15  ;;  %v312_v11 = vpop.permute.xlu1 %311  ;;  %v524_v2 = vcombine.low %v3340_v61, %v3340_v61  ;;  %v3427_v61 = vmul.f32 %v545_v4, %v2990_v19  ;;  %v1207_v19 = vcombine.low %v3388_v60, %v3388_v60  ;;  %v2638_v4 = vld [vmem:[#allocation2 + $0x8] sm:$0xff] }
 0x165   :  { %v315_v22 = vsel %vm313_vm7, %v3399_v56, %v312_v11  ;;  %v1509_v57 = vld [vmem:[#allocation3 + $0x48] sm:$0xff]  ;;  %v627_v11 = vsel %vm626_vm8, %v625_v13, %v3173_v38  ;;  %vm708_vm8 = vcmask 539648  }
 0x166   :  { %v3408_v21 = vpop.permute.xlu0 %909  ;;  %319 = vst [vmem:[#allocation3 + $0x68] sm:$0xf0] %v315_v22  ;;  %471 = vrot.lane.b32.xlu1 %v469_v5, %s2810_s16  ;;  %v552_v44 = vcombine.high %v3427_v61, %v3427_v61 }
 0x168   :  { %498 = vrot.lane.b32.xlu0 %v3312_v32, %s2811_s26  ;;  %v912_v55 = vpop.permute.xlu1 %911  ;;  %v1152_v32 = vcombine.low %v3366_v17, %v3366_v17 }
 0x169   :  { %v915_v29 = vsel %vm913_vm12, %v3408_v21, %v912_v55 }
 0x16a   :  { %v3418_v50 = vpop.permute.xlu0 %937  ;;  %919 = vst [vmem:[#allocation3 + $0x58] sm:$0xf] %v915_v29  ;;  %526 = vrot.lane.b32.xlu1 %v524_v2, %s2812_s17  ;;  %v622_v2 = vld [vmem:[#allocation2 + $0x8] sm:$0xf] }
 0x16b   :  { %v631_v29 = vmul.f32 %v625_v13, %v622_v2 }
 0x16c   :  { %1126 = vrot.lane.b32.xlu0 %v3337_v46, %s2813_s18  ;;  %v940_v31 = vpop.permute.xlu1 %939 }
 0x16d   :  { %v943_v20 = vsel %vm941_vm14, %v3418_v50, %v940_v31  ;;  %v1513_v25 = vld [vmem:[#allocation3 + $0x68] sm:$0xff] }
 0x16e   :  { %v3431_v33 = vpop.permute.xlu0 %964  ;;  %947 = vst [vmem:[#allocation3 + $0x58] sm:$0xf0] %v943_v20  ;;  %1154 = vrot.lane.b32.xlu1 %v1152_v32, %s2814_s19  ;;  %v2393_v46 = vpack.c.bf16 %v1513_v25, %v1509_v57  ;;  %v1281_v57 = vrot.slane %v3163_v35, 4  ;;  %v1253_v25 = vrot.slane %v3180_v48, 4 }
 0x170   :  { %1181 = vrot.lane.b32.xlu0 %v3363_v49, %s2815_s20  ;;  %v967_v17 = vpop.permute.xlu1 %966  ;;  %2394 = vmatprep.subr.bf16.mxu0 %v2393_v46  ;;  %v540_v49 = vld [vmem:[#allocation2 + $0x8] sm:$0xf] }
 0x171   :  { %v970_v30 = vsel %vm968_vm15, %v3431_v33, %v967_v17  ;;  %v549_v10 = vmul.f32 %v543_v8, %v540_v49  ;;  %v595_v8 = vld [vmem:[#allocation2 + $0x8] sm:$0xf]  ;;  %v1250_v49 = vld [vmem:[#allocation2 + $0x10] sm:$0xf] }
 0x172   :  { %v3444_v12 = vpop.permute.xlu0 %992  ;;  %974 = vst [vmem:[#allocation3 + $0x78] sm:$0xf] %v970_v30  ;;  %1209 = vrot.lane.b32.xlu1 %v1207_v19, %s2816_s21  ;;  %v604_v55 = vmul.f32 %v598_v28, %v595_v8 }
 0x174   :  { %555 = vrot.lane.b32.xlu0 %v552_v44, %s2817_s24  ;;  %v995_v26 = vpop.permute.xlu1 %994 }
 0x175   :  { %v998_v36 = vsel %vm996_vm10, %v3444_v12, %v995_v26  ;;  %v1511_v31 = vld [vmem:[#allocation3 + $0x58] sm:$0xff] }
 0x176   :  { %v225_v60 = vpop.permute.xlu0 %224  ;;  %1002 = vst [vmem:[#allocation3 + $0x78] sm:$0xf0] %v998_v36  ;;  %557 = vrot.lane.b32.xlu1 %v549_v10, %s2817_s24  ;;  %v1259_v10 = vmul.f32 %v1253_v25, %v1250_v49  ;;  %v679_v49 = vrot.slane %v3224_v23, 4 }
 0x177   :  { %v231_v1 = vsel %vm230_vm6, %v225_v60, %v3370_v18  ;;  %v1228_v18 = vsel %vm1227_vm5, %v1226_v9, %v3160_v34  ;;  %v3480_v34 = vmul.f32 %v3450_v15, %v627_v11  ;;  %v1308_v60 = vrot.slane %v3183_v27, 4 }
 0x178   :  { %235 = vst [vmem:[#allocation3 + $0x40] sm:$0xf] %v231_v1  ;;  %583 = vrot.lane.b32.xlu0 %v3456_v16, %s2818_s22  ;;  %v253_v47 = vpop.permute.xlu1 %252  ;;  %v3477_v32 = vmul.f32 %v2638_v4, %v1228_v18  ;;  %v1263_v13 = vcombine.low %v1259_v10, %v1259_v10  ;;  %vm1078_vm5 = vcmask 228352  }
 0x179   :  { %v259_v41 = vsel %vm258_vm9, %v253_v47, %v3380_v3  ;;  %vm1282_vm9 = vcmask 973824  }
 0x17a   :  { %v280_v5 = vpop.permute.xlu0 %279  ;;  %263 = vst [vmem:[#allocation3 + $0x40] sm:$0xf0] %v259_v41  ;;  %585 = vrot.lane.b32.xlu1 %v580_v45, %s2818_s22  ;;  %v1235_v19 = vcombine.high %v3477_v32, %v3477_v32  ;;  %v1283_v44 = vsel %vm1282_vm9, %v1281_v57, %v3163_v35  ;;  %v1278_v41 = vld [vmem:[#allocation2 + $0x10] sm:$0xf]  ;;  %vm680_vm9 = vcmask 531456  }
 0x17b   :  { %v286_v22 = vsel %vm285_vm11, %v280_v5, %v3392_v52  ;;  %vm1254_vm11 = vcmask 965632   ;;  %v3501_v40 = vmul.f32 %v2638_v4, %v1283_v44  ;;  %v1305_v5 = vld [vmem:[#allocation2 + $0x10] sm:$0xf]  ;;  %v1287_v18 = vmul.f32 %v1281_v57, %v1278_v41 }
 0x17c   :  { %290 = vst [vmem:[#allocation3 + $0x60] sm:$0xf] %v286_v22  ;;  %610 = vrot.lane.b32.xlu0 %v607_v39, %s2819_s27  ;;  %v308_v3 = vpop.permute.xlu1 %307  ;;  %v1255_v30 = vsel %vm1254_vm11, %v1253_v25, %v3180_v48  ;;  %v1304_v22 = vld [vmem:[#allocation2 + $0x8] sm:$0xff]  ;;  %v1314_v8 = vmul.f32 %v1308_v60, %v1305_v5  ;;  %v579_v57 = vcombine.low %v3456_v16, %v3456_v16  ;;  %vm1106_vm11 = vcmask 220160  }
 0x17d   :  { %v314_v38 = vsel %vm313_vm7, %v308_v3, %v3399_v56  ;;  %v1515_v20 = vld [vmem:[#allocation3 + $0x78] sm:$0xff]  ;;  %v635_v56 = vcombine.low %v631_v29, %v631_v29  ;;  %v3503_v35 = vmul.f32 %v2638_v4, %v1255_v30  ;;  %vm340_vm7 = vcmask 891904  }
 0x17e   :  { %v908_v52 = vpop.permute.xlu0 %907  ;;  %318 = vst [vmem:[#allocation3 + $0x60] sm:$0xf0] %v314_v38  ;;  %612 = vrot.lane.b32.xlu1 %v604_v55, %s2819_s27  ;;  %v2425_v62 = vpack.c.bf16 %v1515_v20, %v1511_v31  ;;  %v734_v41 = vrot.slane %v3232_v6, 4 }
 0x17f   :  { %v914_v28 = vsel %vm913_vm12, %v908_v52, %v3408_v21  ;;  %vm1309_vm12 = vcmask 982016   ;;  %v1318_v52 = vcombine.low %v1314_v8, %v1314_v8 }
 0x180   :  { %918 = vst [vmem:[#allocation3 + $0x50] sm:$0xf] %v914_v28  ;;  %638 = vrot.lane.b32.xlu0 %v3480_v34, %s2820_s28  ;;  %2426 = vmatprep.subr.bf16.mxu1 %v2425_v62  ;;  %v936_v46 = vpop.permute.xlu1 %935  ;;  %v1310_v39 = vsel %vm1309_vm12, %v1308_v60, %v3183_v27  ;;  %v676_v60 = vld [vmem:[#allocation2 + $0x8] sm:$0xf] }
 0x181   :  { %v942_v17 = vsel %vm941_vm14, %v936_v46, %v3418_v50  ;;  %v1313_v29 = vmul.f32 %v1310_v39, %v1304_v22  ;;  %vm395_vm14 = vcmask 785408   ;;  %v1336_v39 = vrot.slane %v3211_v14, 4 }
 0x182   :  { %v963_v21 = vpop.permute.xlu0 %962  ;;  %946 = vst [vmem:[#allocation3 + $0x50] sm:$0xf0] %v942_v17  ;;  %640 = vrot.lane.b32.xlu1 %v635_v56, %s2820_s28  ;;  %v653_v56 = vrot.slane %v3193_v63, 4 }
 0x183   :  { %v969_v24 = vsel %vm968_vm15, %v963_v21, %v3431_v33  ;;  %v1508_v33 = vld [vmem:[#allocation3 + $0x40] sm:$0xff]  ;;  %vm423_vm15 = vcmask 777216   ;;  %v1317_v10 = vcombine.low %v1313_v29, %v1313_v29 }
 0x184   :  { %973 = vst [vmem:[#allocation3 + $0x70] sm:$0xf] %v969_v24  ;;  %1238 = vrot.lane.b32.xlu0 %v1235_v19, %s2821_s2  ;;  %v991_v50 = vpop.permute.xlu1 %990  ;;  %v655_v17 = vsel %vm654_vm3, %v653_v56, %v3193_v63 }
 0x185   :  { %v997_v48 = vsel %vm996_vm10, %v991_v50, %v3444_v12  ;;  %v1512_v36 = vld [vmem:[#allocation3 + $0x60] sm:$0xff]  ;;  %v1290_v12 = vcombine.high %v3501_v40, %v3501_v40  ;;  %vm1051_vm10 = vcmask 326656   ;;  %v3560_v21 = vmul.f32 %v3450_v15, %v655_v17 }
 0x186   :  { %v3507_v26 = vpop.permute.xlu0 %336  ;;  %1001 = vst [vmem:[#allocation3 + $0x70] sm:$0xf0] %v997_v48  ;;  %1240 = vrot.lane.b32.xlu1 %v1232_v51, %s2821_s2  ;;  %v2395_v9 = vpack.c.bf16 %v1512_v36, %v1508_v33  ;;  %v709_v33 = vsel %vm708_vm8, %v707_v42, %v3195_v53  ;;  %v681_v36 = vsel %vm680_vm9, %v679_v49, %v3224_v23  ;;  %vm735_vm8 = vcmask 547840  }
 0x187   :  { %v662_v50 = vcombine.high %v3560_v21, %v3560_v21  ;;  %vm1160_vm9 = vcmask 203776  }
 0x188   :  { %1266 = vrot.lane.b32.xlu0 %v3503_v35, %s2822_s29  ;;  %v339_v1 = vpop.permute.xlu1 %338  ;;  %2396 = vmatpush1.bf16.msra.mxu0 %v2395_v9 }
 0x189   :  { %v342_v45 = vsel %vm340_vm7, %v3507_v26, %v339_v1  ;;  %v1510_v27 = vld [vmem:[#allocation3 + $0x50] sm:$0xff] }
 0x18a   :  { %v3517_v47 = vpop.permute.xlu0 %364  ;;  %346 = vst [vmem:[#allocation3 + $0x88] sm:$0xf] %v342_v45  ;;  %1268 = vrot.lane.b32.xlu1 %v1263_v13, %s2822_s29  ;;  %v685_v13 = vmul.f32 %v679_v49, %v676_v60  ;;  %v3585_v45 = vmul.f32 %v3450_v15, %v681_v36 }
 0x18c   :  { %1293 = vrot.lane.b32.xlu0 %v1290_v12, %s2823_s25  ;;  %v367_v11 = vpop.permute.xlu1 %366  ;;  %v3582_v12 = vmul.f32 %v3450_v15, %v709_v33  ;;  %v1416_v33 = vrot.slane %v3246_v43, 4 }
 0x18d   :  { %v370_v2 = vsel %vm368_vm13, %v3517_v47, %v367_v11  ;;  %v1514_v3 = vld [vmem:[#allocation3 + $0x70] sm:$0xff] }
 0x18e   :  { %v3525_v55 = vpop.permute.xlu0 %391  ;;  %374 = vst [vmem:[#allocation3 + $0x88] sm:$0xf0] %v370_v2  ;;  %1295 = vrot.lane.b32.xlu1 %v1287_v18, %s2823_s25  ;;  %v2427_v4 = vpack.c.bf16 %v1514_v3, %v1510_v27  ;;  %v689_v18 = vcombine.low %v685_v13, %v685_v13  ;;  %v716_v22 = vcombine.high %v3582_v12, %v3582_v12  ;;  %v704_v3 = vld [vmem:[#allocation2 + $0x8] sm:$0xf]  ;;  %v1413_v13 = vld [vmem:[#allocation2 + $0x14] sm:$0xf] }
 0x190   :  { %1321 = vrot.lane.b32.xlu0 %v1313_v29, %s2735_s23  ;;  %2428 = vmatpush1.bf16.msra.mxu1 %v2427_v4  ;;  %v394_v38 = vpop.permute.xlu1 %393  ;;  %v736_v29 = vsel %vm735_vm8, %v734_v41, %v3232_v6  ;;  %v731_v4 = vld [vmem:[#allocation2 + $0x8] sm:$0xf]  ;;  %vm1215_vm8 = vcmask 97280  }
 0x191   :  { %v397_v31 = vsel %vm395_vm14, %v3525_v55, %v394_v38  ;;  %v713_v38 = vmul.f32 %v707_v42, %v704_v3  ;;  %v3613_v6 = vmul.f32 %v3450_v15, %v736_v29 }
 0x192   :  { %v3531_v20 = vpop.permute.xlu0 %419  ;;  %401 = vst [vmem:[#allocation3 + $0xa8] sm:$0xf] %v397_v31  ;;  %1323 = vrot.lane.b32.xlu1 %v1318_v52, %s2735_s23  ;;  %v740_v52 = vmul.f32 %v734_v41, %v731_v4  ;;  %v1422_v41 = vmul.f32 %v1416_v33, %v1413_v13  ;;  %v688_v4 = vcombine.low %v3585_v45, %v3585_v45 }
 0x194   :  { %553 = vrot.lane.b32.xlu0 %v3427_v61, %s2817_s24  ;;  %v422_v25 = vpop.permute.xlu1 %421  ;;  %v634_v61 = vcombine.low %v3480_v34, %v3480_v34 }
 0x195   :  { %v425_v28 = vsel %vm423_vm15, %v3531_v20, %v422_v25  ;;  %v1517_v63 = vld [vmem:[#allocation3 + $0x88] sm:$0xff] }
 0x196   :  { %v3540_v62 = vpop.permute.xlu0 %1019  ;;  %429 = vst [vmem:[#allocation3 + $0xa8] sm:$0xf0] %v425_v28  ;;  %581 = vrot.lane.b32.xlu1 %v579_v57, %s2818_s22 }
 0x198   :  { %608 = vrot.lane.b32.xlu0 %v3453_v58, %s2819_s27  ;;  %v1022_v16 = vpop.permute.xlu1 %1021  ;;  %v1262_v58 = vcombine.low %v3503_v35, %v3503_v35 }
 0x199   :  { %v1025_v46 = vsel %vm1023_vm1, %v3540_v62, %v1022_v16 }
 0x19a   :  { %v3550_v19 = vpop.permute.xlu0 %1047  ;;  %1029 = vst [vmem:[#allocation3 + $0x98] sm:$0xf] %v1025_v46  ;;  %636 = vrot.lane.b32.xlu1 %v634_v61, %s2820_s28  ;;  %v1361_v61 = vrot.slane %v3243_v37, 4 }
 0x19c   :  { %1236 = vrot.lane.b32.xlu0 %v3477_v32, %s2821_s2  ;;  %v1050_v34 = vpop.permute.xlu1 %1049 }
 0x19d   :  { %v1053_v44 = vsel %vm1051_vm10, %v3550_v19, %v1050_v34  ;;  %v1521_v24 = vld [vmem:[#allocation3 + $0xa8] sm:$0xff] }
 0x19e   :  { %v3564_v30 = vpop.permute.xlu0 %1074  ;;  %1057 = vst [vmem:[#allocation3 + $0x98] sm:$0xf0] %v1053_v44  ;;  %1264 = vrot.lane.b32.xlu1 %v1262_v58, %s2822_s29  ;;  %v2397_v32 = vpack.c.bf16 %v1521_v24, %v1517_v63  ;;  %v1333_v58 = vld [vmem:[#allocation2 + $0x14] sm:$0xf] }
 0x19f   :  { %v1358_v44 = vld [vmem:[#allocation2 + $0x14] sm:$0xf] }
 0x1a0   :  { %1291 = vrot.lane.b32.xlu0 %v3501_v40, %s2823_s25  ;;  %v1077_v51 = vpop.permute.xlu1 %1076  ;;  %2398 = vmatprep.subr.bf16.mxu0 %v2397_v32  ;;  %v650_v40 = vld [vmem:[#allocation2 + $0x8] sm:$0xf]  ;;  %v1341_v32 = vmul.f32 %v1336_v39, %v1333_v58 }
 0x1a1   :  { %v1080_v35 = vsel %vm1078_vm5, %v3564_v30, %v1077_v51  ;;  %v659_v9 = vmul.f32 %v653_v56, %v650_v40  ;;  %v1389_v56 = vrot.slane %v3214_v7, 4  ;;  %v1367_v51 = vmul.f32 %v1361_v61, %v1358_v44 }
 0x1a2   :  { %v3575_v48 = vpop.permute.xlu0 %1102  ;;  %1084 = vst [vmem:[#allocation3 + $0xb8] sm:$0xf] %v1080_v35  ;;  %1319 = vrot.lane.b32.xlu1 %v1317_v10, %s2735_s23  ;;  %s2824_s23 = smov 63  }
 0x1a3   :  { %v1371_v40 = vcombine.low %v1367_v51, %v1367_v51 }
 0x1a4   :  { %665 = vrot.lane.b32.xlu0 %v662_v50, %s2779_s10  ;;  %v1105_v1 = vpop.permute.xlu1 %1104 }
 0x1a5   :  { %v1108_v53 = vsel %vm1106_vm11, %v3575_v48, %v1105_v1  ;;  %v1519_v25 = vld [vmem:[#allocation3 + $0x98] sm:$0xff] }
 0x1a6   :  { %v335_v23 = vpop.permute.xlu0 %334  ;;  %1112 = vst [vmem:[#allocation3 + $0xb8] sm:$0xf0] %v1108_v53  ;;  %667 = vrot.lane.b32.xlu1 %v659_v9, %s2779_s10 }
 0x1a7   :  { %v341_v5 = vsel %vm340_vm7, %v335_v23, %v3507_v26  ;;  %v1337_v26 = vsel %vm215_vm4, %v1336_v39, %v3211_v14  ;;  %vm1390_vm4 = vcmask 48128   ;;  %vm1362_vm7 = vcmask 39936  }
 0x1a8   :  { %345 = vst [vmem:[#allocation3 + $0x80] sm:$0xf] %v341_v5  ;;  %692 = vrot.lane.b32.xlu0 %v3585_v45, %s2824_s23  ;;  %v363_v11 = vpop.permute.xlu1 %362  ;;  %v1391_v24 = vsel %vm1390_vm4, %v1389_v56, %v3214_v7  ;;  %v1363_v42 = vsel %vm1362_vm7, %v1361_v61, %v3243_v37  ;;  %vm559_vm4 = vcmask 646144   ;;  %vm587_vm7 = vcmask 637952  }
 0x1a9   :  { %v369_v8 = vsel %vm368_vm13, %v363_v11, %v3517_v47  ;;  %v3607_v47 = vld [vmem:[#allocation2 + $0xc] sm:$0xff]  ;;  %vm449_vm13 = vcmask 769024  }
 0x1aa   :  { %v390_v2 = vpop.permute.xlu0 %389  ;;  %373 = vst [vmem:[#allocation3 + $0x80] sm:$0xf0] %v369_v8  ;;  %694 = vrot.lane.b32.xlu1 %v689_v18, %s2824_s23  ;;  %v3610_v14 = vmul.f32 %v1337_v26, %v3607_v47  ;;  %v3635_v50 = vmul.f32 %v1391_v24, %v3607_v47  ;;  %v1426_v26 = vcombine.low %v1422_v41, %v1422_v41  ;;  %v2830_v24 = vmov 1.0  }
 0x1ab   :  { %v396_v27 = vsel %vm395_vm14, %v390_v2, %v3525_v55  ;;  %vm1417_vm14 = vcmask 56320   ;;  %1466 = vst [vmem:[#allocation3 + $0x188] sm:$0xf0] %v2830_v24  ;;  %1465 = vst [vmem:[#allocation3 + $0x180] sm:$0xf0] %v2830_v24 }
 0x1ac   :  { %400 = vst [vmem:[#allocation3 + $0xa0] sm:$0xf] %v396_v27  ;;  %719 = vrot.lane.b32.xlu0 %v716_v22, %s2825_s30  ;;  %v418_v31 = vpop.permute.xlu1 %417  ;;  %v1344_v34 = vcombine.high %v3610_v14, %v3610_v14  ;;  %v1398_v9 = vcombine.high %v3635_v50, %v3635_v50  ;;  %v1418_v23 = vsel %vm1417_vm14, %v1416_v33, %v3246_v43  ;;  %1467 = vst [vmem:[#allocation3 + $0x190] sm:$0xf0] %v2830_v24  ;;  %vm642_vm14 = vcmask 621568  }
 0x1ad   :  { %v424_v55 = vsel %vm423_vm15, %v418_v31, %v3531_v20  ;;  %v1523_v28 = vld [vmem:[#allocation3 + $0xb8] sm:$0xff]  ;;  %v744_v20 = vcombine.low %v740_v52, %v740_v52  ;;  %vm477_vm15 = vcmask 760832   ;;  %v1421_v18 = vmul.f32 %v1418_v23, %v3607_v47  ;;  %1468 = vst [vmem:[#allocation3 + $0x198] sm:$0xf0] %v2830_v24 }
 0x1ae   :  { %v1018_v57 = vpop.permute.xlu0 %1017  ;;  %428 = vst [vmem:[#allocation3 + $0xa0] sm:$0xf0] %v424_v55  ;;  %721 = vrot.lane.b32.xlu1 %v713_v38, %s2825_s30  ;;  %v2429_v46 = vpack.c.bf16 %v1523_v28, %v1519_v25  ;;  %v762_v55 = vrot.slane %v3254_v54, 4 }
 0x1af   :  { %v1024_v16 = vsel %vm1023_vm1, %v1018_v57, %v3540_v62  ;;  %vm504_vm1 = vcmask 752640   ;;  %v1425_v58 = vcombine.low %v1421_v18, %v1421_v18 }
 0x1b0   :  { %1028 = vst [vmem:[#allocation3 + $0x90] sm:$0xf] %v1024_v16  ;;  %747 = vrot.lane.b32.xlu0 %v3613_v6, %s2826_s4  ;;  %2430 = vmatprep.subr.bf16.mxu1 %v2429_v46  ;;  %v1046_v17 = vpop.permute.xlu1 %1045  ;;  %v764_v28 = vsel %vm763_vm2, %v762_v55, %v3254_v54  ;;  %vm1187_vm2 = vcmask 195584  }
 0x1b1   :  { %v1052_v62 = vsel %vm1051_vm10, %v1046_v17, %v3550_v19  ;;  %v3638_v19 = vmul.f32 %v1363_v42, %v3607_v47  ;;  %vm532_vm10 = vcmask 654336   ;;  %v767_v61 = vmul.f32 %v3450_v15, %v764_v28 }
 0x1b2   :  { %v1073_v63 = vpop.permute.xlu0 %1072  ;;  %1056 = vst [vmem:[#allocation3 + $0x90] sm:$0xf0] %v1052_v62  ;;  %749 = vrot.lane.b32.xlu1 %v744_v20, %s2826_s4 }
 0x1b3   :  { %v1079_v49 = vsel %vm1078_vm5, %v1073_v63, %v3564_v30  ;;  %v1516_v30 = vld [vmem:[#allocation3 + $0x80] sm:$0xff]  ;;  %vm1132_vm5 = vcmask 211968   ;;  %v771_v15 = vcombine.high %v767_v61, %v767_v61 }
 0x1b4   :  { %1083 = vst [vmem:[#allocation3 + $0xb0] sm:$0xf] %v1079_v49  ;;  %1347 = vrot.lane.b32.xlu0 %v1344_v34, %s2793_s0  ;;  %v1101_v10 = vpop.permute.xlu1 %1100  ;;  %v1441_v49 = vld [vmem:[#allocation2 + $0x14] sm:$0xf] }
 0x1b5   :  { %v1107_v7 = vsel %vm1106_vm11, %v1101_v10, %v3575_v48  ;;  %v1520_v35 = vld [vmem:[#allocation3 + $0xa0] sm:$0xff]  ;;  %v1386_v48 = vld [vmem:[#allocation2 + $0x14] sm:$0xf]  ;;  %vm1325_vm11 = vcmask 64512  }
 0x1b6   :  { %v3642_v37 = vpop.permute.xlu0 %445  ;;  %1111 = vst [vmem:[#allocation3 + $0xb0] sm:$0xf0] %v1107_v7  ;;  %1349 = vrot.lane.b32.xlu1 %v1341_v32, %s2793_s0  ;;  %v2399_v36 = vpack.c.bf16 %v1520_v35, %v1516_v30  ;;  %v1395_v39 = vmul.f32 %v1389_v56, %v1386_v48  ;;  %v1444_v56 = vrot.slane %v3256_v59, 4 }
 0x1b8   :  { %1374 = vrot.lane.b32.xlu0 %v3638_v19, %s2827_s6  ;;  %v448_v60 = vpop.permute.xlu1 %447  ;;  %2400 = vmatpush1.bf16.msra.mxu0 %v2399_v36  ;;  %v1445_v17 = vsel %vm1325_vm11, %v1444_v56, %v3256_v59  ;;  %v759_v59 = vld [vmem:[#allocation2 + $0x8] sm:$0xf] }
 0x1b9   :  { %v451_v1 = vsel %vm449_vm13, %v3642_v37, %v448_v60  ;;  %v1518_v8 = vld [vmem:[#allocation3 + $0x90] sm:$0xff]  ;;  %v1448_v44 = vmul.f32 %v1445_v17, %v3607_v47  ;;  %v768_v47 = vmul.f32 %v762_v55, %v759_v59 }
 0x1ba   :  { %v3652_v53 = vpop.permute.xlu0 %473  ;;  %455 = vst [vmem:[#allocation3 + $0xc8] sm:$0xf] %v451_v1  ;;  %1376 = vrot.lane.b32.xlu1 %v1371_v40, %s2827_s6 }
 0x1bb   :  { %v1452_v32 = vcombine.high %v1448_v44, %v1448_v44 }
 0x1bc   :  { %1401 = vrot.lane.b32.xlu0 %v1398_v9, %s2828_s7  ;;  %v476_v5 = vpop.permute.xlu1 %475 }
 0x1bd   :  { %v479_v11 = vsel %vm477_vm15, %v3652_v53, %v476_v5  ;;  %v1522_v2 = vld [vmem:[#allocation3 + $0xb0] sm:$0xff] }
 0x1be   :  { %v3660_v22 = vpop.permute.xlu0 %500  ;;  %483 = vst [vmem:[#allocation3 + $0xc8] sm:$0xf0] %v479_v11  ;;  %1403 = vrot.lane.b32.xlu1 %v1395_v39, %s2828_s7  ;;  %v2431_v43 = vpack.c.bf16 %v1522_v2, %v1518_v8 }
 0x1c0   :  { %1429 = vrot.lane.b32.xlu0 %v1421_v18, %s2829_s11  ;;  %2432 = vmatpush1.bf16.msra.mxu1 %v2431_v43  ;;  %v503_v29 = vpop.permute.xlu1 %502 }
 0x1c1   :  { %v506_v27 = vsel %vm504_vm1, %v3660_v22, %v503_v29 }
 0x1c2   :  { %v3666_v3 = vpop.permute.xlu0 %528  ;;  %510 = vst [vmem:[#allocation3 + $0xe8] sm:$0xf] %v506_v27  ;;  %1431 = vrot.lane.b32.xlu1 %v1426_v26, %s2829_s11 }
 0x1c4   :  { %663 = vrot.lane.b32.xlu0 %v3560_v21, %s2779_s10  ;;  %v531_v38 = vpop.permute.xlu1 %530  ;;  %v743_v21 = vcombine.low %v3613_v6, %v3613_v6 }
 0x1c5   :  { %v534_v52 = vsel %vm532_vm10, %v3666_v3, %v531_v38  ;;  %v1525_v46 = vld [vmem:[#allocation3 + $0xc8] sm:$0xff] }
 0x1c6   :  { %v3675_v31 = vpop.permute.xlu0 %1128  ;;  %538 = vst [vmem:[#allocation3 + $0xe8] sm:$0xf0] %v534_v52  ;;  %690 = vrot.lane.b32.xlu1 %v688_v4, %s2824_s23 }
 0x1c8   :  { %717 = vrot.lane.b32.xlu0 %v3582_v12, %s2825_s30  ;;  %v1131_v57 = vpop.permute.xlu1 %1130  ;;  %v1370_v12 = vcombine.low %v3638_v19, %v3638_v19  ;;  %v1449_v19 = vmul.f32 %v1444_v56, %v1441_v49 }
 0x1c9   :  { %v1134_v45 = vsel %vm1132_vm5, %v3675_v31, %v1131_v57 }
 0x1ca   :  { %v3685_v25 = vpop.permute.xlu0 %1156  ;;  %1138 = vst [vmem:[#allocation3 + $0xd8] sm:$0xf] %v1134_v45  ;;  %745 = vrot.lane.b32.xlu1 %v743_v21, %s2826_s4 }
 0x1cc   :  { %1345 = vrot.lane.b32.xlu0 %v3610_v14, %s2793_s0  ;;  %v1159_v6 = vpop.permute.xlu1 %1158 }
 0x1cd   :  { %v1162_v16 = vsel %vm1160_vm9, %v3685_v25, %v1159_v6  ;;  %v1529_v20 = vld [vmem:[#allocation3 + $0xe8] sm:$0xff] }
 0x1ce   :  { %v1184_v54 = vpop.permute.xlu0 %1183  ;;  %1166 = vst [vmem:[#allocation3 + $0xd8] sm:$0xf0] %v1162_v16  ;;  %1372 = vrot.lane.b32.xlu1 %v1370_v12, %s2827_s6  ;;  %v2401_v14 = vpack.c.bf16 %v1529_v20, %v1525_v46 }
 0x1d0   :  { %1399 = vrot.lane.b32.xlu0 %v3635_v50, %s2828_s7  ;;  %v1186_v34 = vpop.permute.xlu1 %1185  ;;  %2402 = vmatprep.subr.bf16.mxu0 %v2401_v14 }
 0x1d1   :  { %v1189_v62 = vsel %vm1187_vm2, %v1184_v54, %v1186_v34 }
 0x1d2   :  { %v1212_v63 = vpop.permute.xlu0 %1211  ;;  %1193 = vst [vmem:[#allocation3 + $0xf8] sm:$0xf] %v1189_v62  ;;  %1427 = vrot.lane.b32.xlu1 %v1425_v58, %s2829_s11 }
 0x1d4   :  { %774 = vrot.lane.b32.xlu0 %v771_v15, %s2787_s5  ;;  %v1214_v42 = vpop.permute.xlu1 %1213 }
 0x1d5   :  { %v1217_v51 = vsel %vm1215_vm8, %v1212_v63, %v1214_v42  ;;  %v1527_v60 = vld [vmem:[#allocation3 + $0xd8] sm:$0xff] }
 0x1d6   :  { %v444_v10 = vpop.permute.xlu0 %443  ;;  %1221 = vst [vmem:[#allocation3 + $0xf8] sm:$0xf0] %v1217_v51  ;;  %776 = vrot.lane.b32.xlu1 %v768_v47, %s2787_s5 }
 0x1d7   :  { %v450_v50 = vsel %vm449_vm13, %v444_v10, %v3642_v37  ;;  %vm614_vm13 = vcmask 629760  }
 0x1d8   :  { %454 = vst [vmem:[#allocation3 + $0xc0] sm:$0xf] %v450_v50  ;;  %1455 = vrot.lane.b32.xlu0 %v1452_v32, %s2778_s8  ;;  %v472_v7 = vpop.permute.xlu1 %471 }
 0x1d9   :  { %v478_v30 = vsel %vm477_vm15, %v472_v7, %v3652_v53  ;;  %vm1242_vm15 = vcmask 89088  }
 0x1da   :  { %v499_v35 = vpop.permute.xlu0 %498  ;;  %482 = vst [vmem:[#allocation3 + $0xc0] sm:$0xf0] %v478_v30  ;;  %1457 = vrot.lane.b32.xlu1 %v1449_v19, %s2778_s8 }
 0x1db   :  { %v505_v33 = vsel %vm504_vm1, %v499_v35, %v3660_v22  ;;  %vm1270_vm1 = vcmask 80896  }
 0x1dc   :  { %509 = vst [vmem:[#allocation3 + $0xe0] sm:$0xf] %v505_v33  ;;  %772 = vrot.lane.b32.xlu0 %v767_v61, %s2787_s5  ;;  %v527_v37 = vpop.permute.xlu1 %526 }
 0x1dd   :  { %v533_v36 = vsel %vm532_vm10, %v527_v37, %v3666_v3  ;;  %v1531_v48 = vld [vmem:[#allocation3 + $0xf8] sm:$0xff]  ;;  %vm1297_vm10 = vcmask 72704  }
 0x1de   :  { %v1127_v40 = vpop.permute.xlu0 %1126  ;;  %537 = vst [vmem:[#allocation3 + $0xe0] sm:$0xf0] %v533_v36  ;;  %1453 = vrot.lane.b32.xlu1 %v1448_v44, %s2778_s8  ;;  %v2433_v13 = vpack.c.bf16 %v1531_v48, %v1527_v60  ;;  %s2832_s8 = smov [#allocation11]  }
 0x1df   :  { %v1133_v9 = vsel %vm1132_vm5, %v1127_v40, %v3675_v31  ;;  %vm696_vm5 = vcmask 515072   ;;  %s2376_s10 = sshll.u32 %s2832_s8, 4  ;;  %s2377_s10 = int_to_ptr.vmem [resolvable:$true] %s2376_s10 }
 0x1e0   :  { %1137 = vst [vmem:[#allocation3 + $0xd0] sm:$0xf] %v1133_v9  ;;  %2434 = vmatprep.subr.bf16.mxu1 %v2433_v13  ;;  %v1155_v1 = vpop.permute.xlu1 %1154  ;;  %s2705_s5 = scalar_lea.vmem %s2377_s10, 512  ;;  %p2710_p11 = scmp.lt.s32.totalorder %s2377_s10, %s2377_s10 }
 0x1e1   :  { %v1161_v53 = vsel %vm1160_vm9, %v1155_v1, %v3685_v25  ;;  %v1524_v11 = vld [vmem:[#allocation3 + $0xc0] sm:$0xff]  ;;  %vm723_vm9 = vcmask 506880   ;;  %p2706_p10 = scmp.ne.s32.totalorder %s2377_s10, %s2705_s5  ;;  %p2711_p12 = scmp.lt.s32.totalorder %s2705_s5, %s2705_s5 }
 0x1e2   :  { %v1182_v23 = vpop.permute.xlu0 %1181  ;;  %1165 = vst [vmem:[#allocation3 + $0xd0] sm:$0xf0] %v1161_v53 }
 0x1e3   :  { %v1188_v39 = vsel %vm1187_vm2, %v1182_v23, %v1184_v54  ;;  %vm1378_vm2 = vcmask 1006592   ;;  %p2712_p13 = por %p2711_p12, %p2710_p11 }
 0x1e4   :  { %1192 = vst [vmem:[#allocation3 + $0xf0] sm:$0xf] %v1188_v39  ;;  %v1210_v41 = vpop.permute.xlu1 %1209 }
 0x1e5   :  { %v1216_v5 = vsel %vm1215_vm8, %v1210_v41, %v1212_v63  ;;  %v1528_v22 = vld [vmem:[#allocation3 + $0xe0] sm:$0xff]  ;;  %vm1405_vm8 = vcmask 998400   ;;  %p2713_p0 = pnand %p2712_p13, %p2706_p10 }
 0x1e6   :  { %v556_v18 = vpop.permute.xlu0 %555  ;;  %1220 = vst [vmem:[#allocation3 + $0xf0] sm:$0xf0] %v1216_v5  ;;  %v2403_v8 = vpack.c.bf16 %v1528_v22, %v1524_v11 }
 0x1e8   :  { %v558_v2 = vpop.permute.xlu1 %557  ;;  %2404 = vmatpush1.bf16.msra.mxu0 %v2403_v8 }
 0x1e9   :  { %v561_v43 = vsel %vm559_vm4, %v556_v18, %v558_v2  ;;  %v1526_v4 = vld [vmem:[#allocation3 + $0xd0] sm:$0xff] }
 0x1ea   :  { %v584_v26 = vpop.permute.xlu0 %583  ;;  %565 = vst [vmem:[#allocation3 + $0x108] sm:$0xf] %v561_v43 }
 0x1ec   :  { %v586_v29 = vpop.permute.xlu1 %585 }
 0x1ed   :  { %v589_v27 = vsel %vm587_vm7, %v584_v26, %v586_v29  ;;  %v1530_v38 = vld [vmem:[#allocation3 + $0xf0] sm:$0xff] }
 0x1ee   :  { %v611_v3 = vpop.permute.xlu0 %610  ;;  %593 = vst [vmem:[#allocation3 + $0x108] sm:$0xf0] %v589_v27  ;;  %v2435_v52 = vpack.c.bf16 %v1530_v38, %v1526_v4 }
 0x1f0   :  { %2436 = vmatpush1.bf16.msra.mxu1 %v2435_v52  ;;  %v613_v31 = vpop.permute.xlu1 %612 }
 0x1f1   :  { %v616_v55 = vsel %vm614_vm13, %v611_v3, %v613_v31 }
 0x1f2   :  { %v639_v21 = vpop.permute.xlu0 %638  ;;  %620 = vst [vmem:[#allocation3 + $0x128] sm:$0xf] %v616_v55 }
 0x1f4   :  { %v641_v57 = vpop.permute.xlu1 %640 }
 0x1f5   :  { %v644_v45 = vsel %vm642_vm14, %v639_v21, %v641_v57  ;;  %v1533_v54 = vld [vmem:[#allocation3 + $0x108] sm:$0xff] }
 0x1f6   :  { %v1239_v25 = vpop.permute.xlu0 %1238  ;;  %648 = vst [vmem:[#allocation3 + $0x128] sm:$0xf0] %v644_v45 }
 0x1f8   :  { %v1241_v28 = vpop.permute.xlu1 %1240 }
 0x1f9   :  { %v1244_v56 = vsel %vm1242_vm15, %v1239_v25, %v1241_v28 }
 0x1fa   :  { %v1267_v12 = vpop.permute.xlu0 %1266  ;;  %1248 = vst [vmem:[#allocation3 + $0x118] sm:$0xf] %v1244_v56 }
 0x1fc   :  { %v1269_v6 = vpop.permute.xlu1 %1268 }
 0x1fd   :  { %v1272_v61 = vsel %vm1270_vm1, %v1267_v12, %v1269_v6  ;;  %v1537_v46 = vld [vmem:[#allocation3 + $0x128] sm:$0xff] }
 0x1fe   :  { %v1294_v16 = vpop.permute.xlu0 %1293  ;;  %1276 = vst [vmem:[#allocation3 + $0x118] sm:$0xf0] %v1272_v61  ;;  %v2405_v20 = vpack.c.bf16 %v1537_v46, %v1533_v54 }
 0x200   :  { %v1296_v17 = vpop.permute.xlu1 %1295  ;;  %2406 = vmatprep.subr.bf16.mxu0 %v2405_v20 }
 0x201   :  { %v1299_v14 = vsel %vm1297_vm10, %v1294_v16, %v1296_v17 }
 0x202   :  { %v1322_v58 = vpop.permute.xlu0 %1321  ;;  %1303 = vst [vmem:[#allocation3 + $0x138] sm:$0xf] %v1299_v14 }
 0x204   :  { %v1324_v34 = vpop.permute.xlu1 %1323 }
 0x205   :  { %v1327_v15 = vsel %vm1325_vm11, %v1322_v58, %v1324_v34  ;;  %v1535_v10 = vld [vmem:[#allocation3 + $0x118] sm:$0xff] }
 0x206   :  { %v554_v44 = vpop.permute.xlu0 %553  ;;  %1331 = vst [vmem:[#allocation3 + $0x138] sm:$0xf0] %v1327_v15 }
 0x207   :  { %v560_v62 = vsel %vm559_vm4, %v554_v44, %v556_v18  ;;  %vm1433_vm4 = vcmask 990208  }
 0x208   :  { %564 = vst [vmem:[#allocation3 + $0x100] sm:$0xf] %v560_v62  ;;  %v582_v63 = vpop.permute.xlu1 %581 }
 0x209   :  { %v588_v59 = vsel %vm587_vm7, %v582_v63, %v584_v26 }
 0x20a   :  { %v609_v47 = vpop.permute.xlu0 %608  ;;  %592 = vst [vmem:[#allocation3 + $0x100] sm:$0xf0] %v588_v59 }
 0x20b   :  { %v615_v42 = vsel %vm614_vm13, %v609_v47, %v611_v3 }
 0x20c   :  { %619 = vst [vmem:[#allocation3 + $0x120] sm:$0xf] %v615_v42  ;;  %v637_v49 = vpop.permute.xlu1 %636 }
 0x20d   :  { %v643_v32 = vsel %vm642_vm14, %v637_v49, %v639_v21  ;;  %v1539_v50 = vld [vmem:[#allocation3 + $0x138] sm:$0xff] }
 0x20e   :  { %v1237_v51 = vpop.permute.xlu0 %1236  ;;  %647 = vst [vmem:[#allocation3 + $0x120] sm:$0xf0] %v643_v32  ;;  %v2437_v7 = vpack.c.bf16 %v1539_v50, %v1535_v10 }
 0x20f   :  { %v1243_v19 = vsel %vm1242_vm15, %v1237_v51, %v1239_v25 }
 0x210   :  { %1247 = vst [vmem:[#allocation3 + $0x110] sm:$0xf] %v1243_v19  ;;  %2438 = vmatprep.subr.bf16.mxu1 %v2437_v7  ;;  %v1265_v30 = vpop.permute.xlu1 %1264 }
 0x211   :  { %v1271_v35 = vsel %vm1270_vm1, %v1265_v30, %v1267_v12  ;;  %v1532_v48 = vld [vmem:[#allocation3 + $0x100] sm:$0xff] }
 0x212   :  { %v1292_v33 = vpop.permute.xlu0 %1291  ;;  %1275 = vst [vmem:[#allocation3 + $0x110] sm:$0xf0] %v1271_v35 }
 0x213   :  { %v1298_v37 = vsel %vm1297_vm10, %v1292_v33, %v1294_v16 }
 0x214   :  { %1302 = vst [vmem:[#allocation3 + $0x130] sm:$0xf] %v1298_v37  ;;  %v1320_v36 = vpop.permute.xlu1 %1319 }
 0x215   :  { %v1326_v40 = vsel %vm1325_vm11, %v1320_v36, %v1322_v58  ;;  %v1536_v9 = vld [vmem:[#allocation3 + $0x120] sm:$0xff]  ;;  %vm751_vm11 = vcmask 498688  }
 0x216   :  { %v666_v60 = vpop.permute.xlu0 %665  ;;  %1330 = vst [vmem:[#allocation3 + $0x130] sm:$0xf0] %v1326_v40  ;;  %v2407_v13 = vpack.c.bf16 %v1536_v9, %v1532_v48 }
 0x218   :  { %v668_v1 = vpop.permute.xlu1 %667  ;;  %2408 = vmatpush1.bf16.msra.mxu0 %v2407_v13 }
 0x219   :  { %v670_v53 = vsel %vm654_vm3, %v666_v60, %v668_v1  ;;  %v1534_v18 = vld [vmem:[#allocation3 + $0x110] sm:$0xff] }
 0x21a   :  { %v693_v23 = vpop.permute.xlu0 %692  ;;  %674 = vst [vmem:[#allocation3 + $0x148] sm:$0xf] %v670_v53 }
 0x21c   :  { %v695_v39 = vpop.permute.xlu1 %694 }
 0x21d   :  { %v698_v41 = vsel %vm696_vm5, %v693_v23, %v695_v39  ;;  %v1538_v11 = vld [vmem:[#allocation3 + $0x130] sm:$0xff] }
 0x21e   :  { %v720_v5 = vpop.permute.xlu0 %719  ;;  %702 = vst [vmem:[#allocation3 + $0x148] sm:$0xf0] %v698_v41  ;;  %v2439_v22 = vpack.c.bf16 %v1538_v11, %v1534_v18 }
 0x220   :  { %2440 = vmatpush1.bf16.msra.mxu1 %v2439_v22  ;;  %v722_v8 = vpop.permute.xlu1 %721 }
 0x221   :  { %v725_v2 = vsel %vm723_vm9, %v720_v5, %v722_v8  ;;  %v2831_v8 = vmov 1.0|1.0  }
 0x222   :  { %v748_v43 = vpop.permute.xlu0 %747  ;;  %729 = vst [vmem:[#allocation3 + $0x168] sm:$0xf] %v725_v2 }
 0x224   :  { %v750_v26 = vpop.permute.xlu1 %749 }
 0x225   :  { %v753_v29 = vsel %vm751_vm11, %v748_v43, %v750_v26  ;;  %v1541_v21 = vld [vmem:[#allocation3 + $0x148] sm:$0xff] }
 0x226   :  { %v1348_v27 = vpop.permute.xlu0 %1347  ;;  %757 = vst [vmem:[#allocation3 + $0x168] sm:$0xf0] %v753_v29  ;;  %v1482_v26 = vld [vmem:[#allocation10 + $0x8] sm:$0xff]  ;;  %v1483_v29 = vld [vmem:[#allocation10 + $0x10] sm:$0xff] }
 0x228   :  { %v1350_v3 = vpop.permute.xlu1 %1349 }
 0x229   :  { %v1352_v4 = vsel %vm230_vm6, %v1348_v27, %v1350_v3  ;;  %v1486_v3 = vld [vmem:[#allocation10 + $0x28] sm:$0xff] }
 0x22a   :  { %v1375_v38 = vpop.permute.xlu0 %1374  ;;  %1356 = vst [vmem:[#allocation3 + $0x158] sm:$0xf] %v1352_v4  ;;  %v1487_v4 = vld [vmem:[#allocation10 + $0x30] sm:$0xff] }
 0x22c   :  { %v1377_v52 = vpop.permute.xlu1 %1376 }
 0x22d   :  { %v1380_v31 = vsel %vm1378_vm2, %v1375_v38, %v1377_v52  ;;  %v1545_v57 = vld [vmem:[#allocation3 + $0x168] sm:$0xff]  ;;  %v1489_v52 = vld [vmem:[#allocation10 + $0x40] sm:$0xff] }
 0x22e   :  { %v1402_v55 = vpop.permute.xlu0 %1401  ;;  %1384 = vst [vmem:[#allocation3 + $0x158] sm:$0xf0] %v1380_v31  ;;  %v2409_v45 = vpack.c.bf16 %v1545_v57, %v1541_v21  ;;  %v1490_v31 = vld [vmem:[#allocation10 + $0x48] sm:$0xff]  ;;  %v1492_v21 = vld [vmem:[#allocation10 + $0x58] sm:$0xff]  ;;  %v1493_v57 = vld [vmem:[#allocation10 + $0x60] sm:$0xff] }
 0x230   :  { %v1404_v25 = vpop.permute.xlu1 %1403  ;;  %2410 = vmatprep.subr.bf16.mxu0 %v2409_v45  ;;  %v1494_v45 = vld [vmem:[#allocation10 + $0x68] sm:$0xff] }
 0x231   :  { %v1407_v28 = vsel %vm1405_vm8, %v1402_v55, %v1404_v25  ;;  %v1495_v25 = vld [vmem:[#allocation10 + $0x70] sm:$0xff] }
 0x232   :  { %v1430_v56 = vpop.permute.xlu0 %1429  ;;  %1411 = vst [vmem:[#allocation3 + $0x178] sm:$0xf] %v1407_v28  ;;  %v1496_v28 = vld [vmem:[#allocation10 + $0x78] sm:$0xff] }
 0x234   :  { %v1432_v12 = vpop.permute.xlu1 %1431 }
 0x235   :  { %v1435_v6 = vsel %vm1433_vm4, %v1430_v56, %v1432_v12  ;;  %v1543_v15 = vld [vmem:[#allocation3 + $0x158] sm:$0xff]  ;;  %v1498_v12 = vld [vmem:[#allocation10 + $0x88] sm:$0xff] }
 0x236   :  { %v664_v61 = vpop.permute.xlu0 %663  ;;  %1439 = vst [vmem:[#allocation3 + $0x178] sm:$0xf0] %v1435_v6  ;;  %v1499_v6 = vld [vmem:[#allocation10 + $0x90] sm:$0xff] }
 0x237   :  { %v669_v16 = vsel %vm654_vm3, %v664_v61, %v666_v60 }
 0x238   :  { %673 = vst [vmem:[#allocation3 + $0x140] sm:$0xf] %v669_v16  ;;  %v691_v54 = vpop.permute.xlu1 %690 }
 0x239   :  { %v697_v46 = vsel %vm696_vm5, %v691_v54, %v693_v23 }
 0x23a   :  { %v718_v20 = vpop.permute.xlu0 %717  ;;  %701 = vst [vmem:[#allocation3 + $0x140] sm:$0xf0] %v697_v46 }
 0x23b   :  { %v724_v17 = vsel %vm723_vm9, %v718_v20, %v720_v5 }
 0x23c   :  { %728 = vst [vmem:[#allocation3 + $0x160] sm:$0xf] %v724_v17  ;;  %v746_v14 = vpop.permute.xlu1 %745 }
 0x23d   :  { %v752_v58 = vsel %vm751_vm11, %v746_v14, %v748_v43  ;;  %v1547_v44 = vld [vmem:[#allocation3 + $0x178] sm:$0xff]  ;;  %v1481_v43 = vld [vmem:[#allocation10] sm:$0xff] }
 0x23e   :  { %v1346_v34 = vpop.permute.xlu0 %1345  ;;  %756 = vst [vmem:[#allocation3 + $0x160] sm:$0xf0] %v752_v58  ;;  %v2441_v63 = vpack.c.bf16 %v1547_v44, %v1543_v15 }
 0x23f   :  { %v1351_v62 = vsel %vm230_vm6, %v1346_v34, %v1348_v27  ;;  %v1485_v27 = vld [vmem:[#allocation10 + $0x20] sm:$0xff] }
 0x240   :  { %1355 = vst [vmem:[#allocation3 + $0x150] sm:$0xf] %v1351_v62  ;;  %2442 = vmatprep.subr.bf16.mxu1 %v2441_v63  ;;  %v1373_v59 = vpop.permute.xlu1 %1372 }
 0x241   :  { %v1379_v47 = vsel %vm1378_vm2, %v1373_v59, %v1375_v38  ;;  %v1540_v50 = vld [vmem:[#allocation3 + $0x140] sm:$0xff]  ;;  %v1488_v38 = vld [vmem:[#allocation10 + $0x38] sm:$0xff] }
 0x242   :  { %v1400_v42 = vpop.permute.xlu0 %1399  ;;  %1383 = vst [vmem:[#allocation3 + $0x150] sm:$0xf0] %v1379_v47 }
 0x243   :  { %v1406_v49 = vsel %vm1405_vm8, %v1400_v42, %v1402_v55  ;;  %v1491_v55 = vld [vmem:[#allocation10 + $0x50] sm:$0xff] }
 0x244   :  { %1410 = vst [vmem:[#allocation3 + $0x170] sm:$0xf] %v1406_v49  ;;  %v1428_v32 = vpop.permute.xlu1 %1427 }
 0x245   :  { %v1434_v51 = vsel %vm1433_vm4, %v1428_v32, %v1430_v56  ;;  %v1544_v19 = vld [vmem:[#allocation3 + $0x160] sm:$0xff] }
 0x246   :  { %v775_v10 = vpop.permute.xlu0 %774  ;;  %1438 = vst [vmem:[#allocation3 + $0x170] sm:$0xf0] %v1434_v51  ;;  %v2411_v7 = vpack.c.bf16 %v1544_v19, %v1540_v50  ;;  %v1497_v56 = vld [vmem:[#allocation10 + $0x80] sm:$0xff] }
 0x248   :  { %v777_v30 = vpop.permute.xlu1 %776  ;;  %2412 = vmatpush1.bf16.msra.mxu0 %v2411_v7 }
 0x249   :  { %v780_v35 = vsel %vm778_vm0, %v775_v10, %v777_v30  ;;  %v1542_v60 = vld [vmem:[#allocation3 + $0x150] sm:$0xff] }
 0x24a   :  { %v1456_v33 = vpop.permute.xlu0 %1455  ;;  %784 = vst [vmem:[#allocation3 + $0x188] sm:$0xf] %v780_v35 }
 0x24c   :  { %v1458_v37 = vpop.permute.xlu1 %1457 }
 0x24d   :  { %v1460_v36 = vsel %vm1309_vm12, %v1456_v33, %v1458_v37  ;;  %v1546_v48 = vld [vmem:[#allocation3 + $0x170] sm:$0xff] }
 0x24e   :  { %v773_v40 = vpop.permute.xlu0 %772  ;;  %1464 = vst [vmem:[#allocation3 + $0x198] sm:$0xf] %v1460_v36  ;;  %v2443_v13 = vpack.c.bf16 %v1546_v48, %v1542_v60 }
 0x24f   :  { %v779_v9 = vsel %vm778_vm0, %v773_v40, %v775_v10 }
 0x250   :  { %783 = vst [vmem:[#allocation3 + $0x180] sm:$0xf] %v779_v9  ;;  %2444 = vmatpush1.bf16.msra.mxu1 %v2443_v13  ;;  %v1454_v1 = vpop.permute.xlu1 %1453 }
 0x251   :  { %v1459_v53 = vsel %vm1309_vm12, %v1454_v1, %v1456_v33  ;;  %v1549_v23 = vld [vmem:[#allocation3 + $0x188] sm:$0xff] }
 0x252   :  { %1463 = vst [vmem:[#allocation3 + $0x190] sm:$0xf] %v1459_v53  ;;  %v2413_v39 = vpack.c.bf16 %v2830_v24, %v1549_v23 }
 0x254   :  { %2414 = vmatprep.subr.bf16.mxu0 %v2413_v39 }
 0x255   :  { %v1551_v41 = vld [vmem:[#allocation3 + $0x198] sm:$0xff] }
 0x256   :  { %v2445_v5 = vpack.c.bf16 %v2830_v24, %v1551_v41 }
 0x257   :  { %v1548_v18 = vld [vmem:[#allocation3 + $0x180] sm:$0xff] }
 0x258   :  { %v2415_v11 = vpack.c.bf16 %v2830_v24, %v1548_v18  ;;  %2446 = vmatprep.subr.bf16.mxu1 %v2445_v5 }
 0x259   :  { %v1550_v22 = vld [vmem:[#allocation3 + $0x190] sm:$0xff] }
 0x25a   :  { %2416 = vmatpush1.bf16.msra.mxu0 %v2415_v11  ;;  %v2447_v2 = vpack.c.bf16 %v2830_v24, %v1550_v22  ;;  %v1484_v24 = vld [vmem:[#allocation10 + $0x18] sm:$0xff] }
 0x25b   :  { %2418 = vmatprep.subr.bf16.mxu0 %v2831_v8 }
 0x25c   :  { %2448 = vmatpush1.bf16.msra.mxu1 %v2447_v2 }
 0x25d   :  { %2450 = vmatprep.subr.bf16.mxu1 %v2831_v8 }
 0x25e   :  { %2420 = vmatpush1.bf16.msra.mxu0 %v2831_v8 }
 0x260   :  { %2452 = vmatpush1.bf16.msra.mxu1 %v2831_v8 }
 0x261   :  { %1629 = vmatmul.mubr.f32.vlgmr.msra.gmra.mrb[0].mxu0 %v1481_v43 }
 0x262   :  { %1634 = vmatprep.mubr.f32.mxu0 %v2740_v0 }
 0x263   :  { %1808 = vmatmul.mubr.f32.vlgmr.msra.gmra.mrb[0].mxu1 %v1481_v43 }
 0x264   :  { %1813 = vmatprep.mubr.f32.mxu1 %v2740_v0 }
 0x265   :  { %1635 = vmatmul.mubr.f32.gmra.mrb[2].mxu0 %v1482_v26 }
 0x266   :  { %1640 = vmatprep.mubr.f32.mxu0 %v2740_v0 }
 0x267   :  { %1814 = vmatmul.mubr.f32.gmra.mrb[2].mxu1 %v1482_v26 }
 0x268   :  { %1819 = vmatprep.mubr.f32.mxu1 %v2740_v0 }
 0x269   :  { %1641 = vmatmul.mubr.f32.gmra.mrb[4].mxu0 %v1483_v29 }
 0x26a   :  { %1646 = vmatprep.mubr.f32.mxu0 %v2740_v0 }
 0x26b   :  { %1820 = vmatmul.mubr.f32.gmra.mrb[4].mxu1 %v1483_v29 }
 0x26c   :  { %1825 = vmatprep.mubr.f32.mxu1 %v2740_v0 }
 0x26d   :  { %1647 = vmatmul.mubr.f32.gmra.mrb[6].mxu0 %v1484_v24 }
 0x26e   :  { %1652 = vmatprep.mubr.f32.mxu0 %v2740_v0 }
 0x26f   :  { %1826 = vmatmul.mubr.f32.gmra.mrb[6].mxu1 %v1484_v24 }
 0x270   :  { %1831 = vmatprep.mubr.f32.mxu1 %v2740_v0 }
 0x271   :  { %1653 = vmatmul.mubr.f32.gmra.mrb[8].mxu0 %v1485_v27 }
 0x272   :  { %1658 = vmatprep.mubr.f32.mxu0 %v2740_v0 }
 0x273   :  { %1832 = vmatmul.mubr.f32.gmra.mrb[8].mxu1 %v1485_v27 }
 0x274   :  { %1837 = vmatprep.mubr.f32.mxu1 %v2740_v0 }
 0x275   :  { %1659 = vmatmul.mubr.f32.gmra.mrb[10].mxu0 %v1486_v3 }
 0x276   :  { %1664 = vmatprep.mubr.f32.mxu0 %v2740_v0 }
 0x277   :  { %1838 = vmatmul.mubr.f32.gmra.mrb[10].mxu1 %v1486_v3 }
 0x278   :  { %1843 = vmatprep.mubr.f32.mxu1 %v2740_v0 }
 0x279   :  { %1665 = vmatmul.mubr.f32.gmra.mrb[12].mxu0 %v1487_v4 }
 0x27a   :  { %1670 = vmatprep.mubr.f32.mxu0 %v2740_v0 }
 0x27b   :  { %1844 = vmatmul.mubr.f32.gmra.mrb[12].mxu1 %v1487_v4 }
 0x27c   :  { %1849 = vmatprep.mubr.f32.mxu1 %v2740_v0 }
 0x27d   :  { %1671 = vmatmul.mubr.f32.gmra.mrb[14].mxu0 %v1488_v38 }
 0x27e   :  { %1676 = vmatprep.mubr.f32.mxu0 %v2740_v0 }
 0x27f   :  { %1850 = vmatmul.mubr.f32.gmra.mrb[14].mxu1 %v1488_v38 }
 0x280   :  { %1855 = vmatprep.mubr.f32.mxu1 %v2740_v0 }
 0x281   :  { %1677 = vmatmul.mubr.f32.gmra.mrb[16].mxu0 %v1489_v52 }
 0x282   :  { %1682 = vmatprep.mubr.f32.mxu0 %v2740_v0 }
 0x283   :  { %1856 = vmatmul.mubr.f32.gmra.mrb[16].mxu1 %v1489_v52 }
 0x284   :  { %1861 = vmatprep.mubr.f32.mxu1 %v2740_v0 }
 0x285   :  { %1683 = vmatmul.mubr.f32.gmra.mrb[18].mxu0 %v1490_v31 }
 0x286   :  { %1688 = vmatprep.mubr.f32.mxu0 %v2740_v0 }
 0x287   :  { %1862 = vmatmul.mubr.f32.gmra.mrb[18].mxu1 %v1490_v31 }
 0x288   :  { %1867 = vmatprep.mubr.f32.mxu1 %v2740_v0 }
 0x289   :  { %1689 = vmatmul.mubr.f32.gmra.mrb[20].mxu0 %v1491_v55 }
 0x28a   :  { %1694 = vmatprep.mubr.f32.mxu0 %v2740_v0 }
 0x28b   :  { %1868 = vmatmul.mubr.f32.gmra.mrb[20].mxu1 %v1491_v55 }
 0x28c   :  { %1873 = vmatprep.mubr.f32.mxu1 %v2740_v0 }
 0x28d   :  { %1695 = vmatmul.mubr.f32.gmra.mrb[22].mxu0 %v1492_v21 }
 0x28e   :  { %1700 = vmatprep.mubr.f32.mxu0 %v2740_v0 }
 0x28f   :  { %1874 = vmatmul.mubr.f32.gmra.mrb[22].mxu1 %v1492_v21 }
 0x290   :  { %1879 = vmatprep.mubr.f32.mxu1 %v2740_v0 }
 0x291   :  { %1701 = vmatmul.mubr.f32.gmra.mrb[24].mxu0 %v1493_v57 }
 0x292   :  { %1706 = vmatprep.mubr.f32.mxu0 %v2740_v0 }
 0x293   :  { %1880 = vmatmul.mubr.f32.gmra.mrb[24].mxu1 %v1493_v57 }
 0x294   :  { %1885 = vmatprep.mubr.f32.mxu1 %v2740_v0 }
 0x295   :  { %1707 = vmatmul.mubr.f32.gmra.mrb[26].mxu0 %v1494_v45 }
 0x296   :  { %1712 = vmatprep.mubr.f32.mxu0 %v2740_v0 }
 0x297   :  { %1886 = vmatmul.mubr.f32.gmra.mrb[26].mxu1 %v1494_v45 }
 0x298   :  { %1891 = vmatprep.mubr.f32.mxu1 %v2740_v0 }
 0x299   :  { %1713 = vmatmul.mubr.f32.gmra.mrb[28].mxu0 %v1495_v25 }
 0x29a   :  { %1718 = vmatprep.mubr.f32.mxu0 %v2740_v0 }
 0x29b   :  { %1892 = vmatmul.mubr.f32.gmra.mrb[28].mxu1 %v1495_v25 }
 0x29c   :  { %1897 = vmatprep.mubr.f32.mxu1 %v2740_v0 }
 0x29d   :  { %1719 = vmatmul.mubr.f32.gmra.mrb[30].mxu0 %v1496_v28 }
 0x29e   :  { %1724 = vmatprep.mubr.f32.mxu0 %v2740_v0 }
 0x29f   :  { %1898 = vmatmul.mubr.f32.gmra.mrb[30].mxu1 %v1496_v28 }
 0x2a0   :  { %1903 = vmatprep.mubr.f32.mxu1 %v2740_v0 }
 0x2a1   :  { %1725 = vmatmul.mubr.f32.gmra.mrb[32].mxu0 %v1497_v56 }
 0x2a2   :  { %1730 = vmatprep.mubr.f32.mxu0 %v2740_v0 }
 0x2a3   :  { %1904 = vmatmul.mubr.f32.gmra.mrb[32].mxu1 %v1497_v56 }
 0x2a4   :  { %1909 = vmatprep.mubr.f32.mxu1 %v2740_v0 }
 0x2a5   :  { %1731 = vmatmul.mubr.f32.gmra.mrb[34].mxu0 %v1498_v12 }
 0x2a6   :  { %1736 = vmatprep.mubr.f32.mxu0 %v2740_v0 }
 0x2a7   :  { %1910 = vmatmul.mubr.f32.gmra.mrb[34].mxu1 %v1498_v12 }
 0x2a8   :  { %1915 = vmatprep.mubr.f32.mxu1 %v2740_v0 }
 0x2a9   :  { %1737 = vmatmul.mubr.f32.gmra.mrb[36].mxu0 %v1499_v6 }
 0x2ab   :  { %1916 = vmatmul.mubr.f32.gmra.mrb[36].mxu1 %v1499_v6 }
 0x334   :  { %v3807_v61 = vpop.f32.mrb[0].mxu0 }
 0x335   :  { %v3809_v16 = vpop.f32.mrb[1].mxu0 }
 0x336   :  { %v3811_v54 = vpop.f32.mrb[0].mxu1 }
 0x337   :  { %v3813_v20 = vpop.f32.mrb[1].mxu1 }
 0x338   :  { %v1636_v46 = vpop.f32.mrb[2].mxu0 }
 0x339   :  { %v3816_v17 = vmul.f32 %v1636_v46, %v3807_v61  ;;  %v1638_v14 = vpop.f32.mrb[3].mxu0 }
 0x33a   :  { %v3819_v58 = vmul.f32 %v1638_v14, %v3809_v16  ;;  %v1815_v34 = vpop.f32.mrb[2].mxu1 }
 0x33b   :  { %v3822_v0 = vmul.f32 %v1815_v34, %v3811_v54  ;;  %v1817_v44 = vpop.f32.mrb[3].mxu1 }
 0x33c   :  { %v1642_v15 = vpop.f32.mrb[4].mxu0  ;;  %v3828_v63 = vmul.f32 %v1817_v44, %v3813_v20 }
 0x33d   :  { %v3825_v62 = vmul.f32 %v1642_v15, %v3807_v61  ;;  %v1644_v59 = vpop.f32.mrb[5].mxu0 }
 0x33e   :  { %v3831_v47 = vmul.f32 %v1644_v59, %v3809_v16  ;;  %v1821_v49 = vpop.f32.mrb[4].mxu1 }
 0x33f   :  { %v2018_v42 = vmax.f32 %v3816_v17, %v3825_v62  ;;  %v3838_v51 = vmul.f32 %v1821_v49, %v3811_v54  ;;  %v1823_v50 = vpop.f32.mrb[5].mxu1 }
 0x340   :  { %v2019_v32 = vmax.f32 %v3819_v58, %v3831_v47  ;;  %v1648_v10 = vpop.f32.mrb[6].mxu0  ;;  %v3844_v7 = vmul.f32 %v1823_v50, %v3813_v20 }
 0x341   :  { %v3841_v19 = vmul.f32 %v1648_v10, %v3807_v61  ;;  %v1650_v30 = vpop.f32.mrb[7].mxu0  ;;  %v2020_v35 = vmax.f32 %v3822_v0, %v3838_v51 }
 0x342   :  { %v3849_v33 = vmul.f32 %v1650_v30, %v3809_v16  ;;  %v2021_v36 = vmax.f32 %v3828_v63, %v3844_v7  ;;  %v1827_v40 = vpop.f32.mrb[6].mxu1 }
 0x343   :  { %v2030_v37 = vmax.f32 %v2018_v42, %v3841_v19  ;;  %v3856_v48 = vmul.f32 %v1827_v40, %v3811_v54  ;;  %v1829_v13 = vpop.f32.mrb[7].mxu1 }
 0x344   :  { %v2031_v60 = vmax.f32 %v2019_v32, %v3849_v33  ;;  %v1654_v9 = vpop.f32.mrb[8].mxu0  ;;  %v3862_v53 = vmul.f32 %v1829_v13, %v3813_v20 }
 0x345   :  { %v3859_v1 = vmul.f32 %v1654_v9, %v3807_v61  ;;  %v1656_v23 = vpop.f32.mrb[9].mxu0  ;;  %v2032_v39 = vmax.f32 %v2020_v35, %v3856_v48 }
 0x346   :  { %v3866_v41 = vmul.f32 %v1656_v23, %v3809_v16  ;;  %v2033_v18 = vmax.f32 %v2021_v36, %v3862_v53  ;;  %v1833_v11 = vpop.f32.mrb[8].mxu1 }
 0x347   :  { %v2042_v5 = vmax.f32 %v2030_v37, %v3859_v1  ;;  %v3872_v8 = vmul.f32 %v1833_v11, %v3811_v54  ;;  %v1835_v43 = vpop.f32.mrb[9].mxu1 }
 0x348   :  { %v2043_v22 = vmax.f32 %v2031_v60, %v3866_v41  ;;  %v1660_v2 = vpop.f32.mrb[10].mxu0  ;;  %v3878_v29 = vmul.f32 %v1835_v43, %v3813_v20 }
 0x349   :  { %v3875_v26 = vmul.f32 %v1660_v2, %v3807_v61  ;;  %v1662_v24 = vpop.f32.mrb[11].mxu0  ;;  %v2044_v27 = vmax.f32 %v2032_v39, %v3872_v8 }
 0x34a   :  { %v3882_v3 = vmul.f32 %v1662_v24, %v3809_v16  ;;  %v2045_v38 = vmax.f32 %v2033_v18, %v3878_v29  ;;  %v1839_v52 = vpop.f32.mrb[10].mxu1 }
 0x34b   :  { %v2054_v4 = vmax.f32 %v2042_v5, %v3875_v26  ;;  %v3888_v55 = vmul.f32 %v1839_v52, %v3811_v54  ;;  %v1841_v57 = vpop.f32.mrb[11].mxu1 }
 0x34c   :  { %v2055_v31 = vmax.f32 %v2043_v22, %v3882_v3  ;;  %v1666_v21 = vpop.f32.mrb[12].mxu0  ;;  %v3894_v25 = vmul.f32 %v1841_v57, %v3813_v20 }
 0x34d   :  { %v3891_v45 = vmul.f32 %v1666_v21, %v3807_v61  ;;  %v1668_v28 = vpop.f32.mrb[13].mxu0  ;;  %v2056_v56 = vmax.f32 %v2044_v27, %v3888_v55 }
 0x34e   :  { %v3898_v12 = vmul.f32 %v1668_v28, %v3809_v16  ;;  %v2057_v46 = vmax.f32 %v2045_v38, %v3894_v25  ;;  %v1845_v14 = vpop.f32.mrb[12].mxu1 }
 0x34f   :  { %v2066_v6 = vmax.f32 %v2054_v4, %v3891_v45  ;;  %v3904_v15 = vmul.f32 %v1845_v14, %v3811_v54  ;;  %v1847_v59 = vpop.f32.mrb[13].mxu1 }
 0x350   :  { %v2067_v34 = vmax.f32 %v2055_v31, %v3898_v12  ;;  %v1672_v44 = vpop.f32.mrb[14].mxu0  ;;  %v3910_v49 = vmul.f32 %v1847_v59, %v3813_v20 }
 0x351   :  { %v3907_v42 = vmul.f32 %v1672_v44, %v3807_v61  ;;  %v1674_v32 = vpop.f32.mrb[15].mxu0  ;;  %v2068_v10 = vmax.f32 %v2056_v56, %v3904_v15 }
 0x352   :  { %v3914_v50 = vmul.f32 %v1674_v32, %v3809_v16  ;;  %v2069_v35 = vmax.f32 %v2057_v46, %v3910_v49  ;;  %v1851_v37 = vpop.f32.mrb[14].mxu1 }
 0x353   :  { %v2078_v30 = vmax.f32 %v2066_v6, %v3907_v42  ;;  %v3920_v40 = vmul.f32 %v1851_v37, %v3811_v54  ;;  %v1853_v9 = vpop.f32.mrb[15].mxu1 }
 0x354   :  { %v2079_v36 = vmax.f32 %v2067_v34, %v3914_v50  ;;  %v1678_v60 = vpop.f32.mrb[16].mxu0  ;;  %v3926_v23 = vmul.f32 %v1853_v9, %v3813_v20 }
 0x355   :  { %v3923_v13 = vmul.f32 %v1678_v60, %v3807_v61  ;;  %v1680_v39 = vpop.f32.mrb[17].mxu0  ;;  %v2080_v5 = vmax.f32 %v2068_v10, %v3920_v40 }
 0x356   :  { %v3930_v18 = vmul.f32 %v1680_v39, %v3809_v16  ;;  %v2081_v22 = vmax.f32 %v2069_v35, %v3926_v23  ;;  %v1857_v2 = vpop.f32.mrb[16].mxu1 }
 0x357   :  { %v2090_v11 = vmax.f32 %v2078_v30, %v3923_v13  ;;  %v3936_v24 = vmul.f32 %v1857_v2, %v3811_v54  ;;  %v1859_v4 = vpop.f32.mrb[17].mxu1 }
 0x358   :  { %v2091_v43 = vmax.f32 %v2079_v36, %v3930_v18  ;;  %v1684_v27 = vpop.f32.mrb[18].mxu0  ;;  %v3940_v52 = vmul.f32 %v1859_v4, %v3813_v20 }
 0x359   :  { %v2098_v38 = vmul.f32 %v1684_v27, %v3807_v61  ;;  %v1686_v31 = vpop.f32.mrb[19].mxu0  ;;  %v2092_v21 = vmax.f32 %v2080_v5, %v3936_v24 }
 0x35a   :  { %v2099_v57 = vmul.f32 %v1686_v31, %v3809_v16  ;;  %v2093_v56 = vmax.f32 %v2081_v22, %v3940_v52  ;;  %v1863_v6 = vpop.f32.mrb[18].mxu1 }
 0x35b   :  { %v3944_v28 = vmax.f32 %v2090_v11, %v2098_v38  ;;  %v2100_v14 = vmul.f32 %v1863_v6, %v3811_v54  ;;  %v1865_v34 = vpop.f32.mrb[19].mxu1 }
 0x35c   :  { %v3947_v46 = vmax.f32 %v2091_v43, %v2099_v57  ;;  %v3950_v44 = vpop.f32.mrb[20].mxu0  ;;  %v2101_v59 = vmul.f32 %v1865_v34, %v3813_v20 }
 0x35d   :  { %v2330_v61 = vsub.f32 %v2098_v38, %v3944_v28  ;;  %v2106_v32 = vsub.f32 %v3816_v17, %v3944_v28  ;;  %v3956_v16 = vpop.f32.mrb[21].mxu0  ;;  %v2134_v10 = vsub.f32 %v3825_v62, %v3944_v28  ;;  %v3961_v35 = vmax.f32 %v2092_v21, %v2100_v14 }
 0x35e   :  { %v2331_v30 = vsub.f32 %v2099_v57, %v3947_v46  ;;  %v2107_v54 = vsub.f32 %v3819_v58, %v3947_v46  ;;  %v2135_v37 = vsub.f32 %v3831_v47, %v3947_v46  ;;  %v3967_v20 = vmax.f32 %v2093_v56, %v2101_v59  ;;  %v3969_v17 = vpop.f32.mrb[20].mxu1 }
 0x35f   :  { %v2334_v36 = vmul.f32 1.442695, %v2330_v61  ;;  %v2110_v60 = vmul.f32 1.442695, %v2106_v32  ;;  %v2162_v9 = vsub.f32 %v3841_v19, %v3944_v28  ;;  %v2332_v39 = vsub.f32 %v2100_v14, %v3961_v35  ;;  %v3976_v58 = vpop.f32.mrb[21].mxu1 }
 0x360   :  { %v2336_v62 = vmul.f32 1.442695, %v2331_v30  ;;  %v2108_v5 = vsub.f32 %v3822_v0, %v3961_v35  ;;  %v2112_v11 = vmul.f32 1.442695, %v2107_v54  ;;  %v3978_v22 = vpop.f32.mrb[22].mxu0  ;;  %v2333_v47 = vsub.f32 %v2101_v59, %v3967_v20 }
 0x361   :  { %2557 = vpow2.f32 %v2334_v36  ;;  %v2109_v2 = vsub.f32 %v3828_v63, %v3967_v20  ;;  %v2138_v43 = vmul.f32 1.442695, %v2134_v10  ;;  %v3983_v27 = vpop.f32.mrb[23].mxu0  ;;  %v2338_v19 = vmul.f32 1.442695, %v2332_v39 }
 0x362   :  { %2559 = vpow2.f32 %v2336_v62  ;;  %v2114_v4 = vmul.f32 1.442695, %v2108_v5  ;;  %v2140_v38 = vmul.f32 1.442695, %v2135_v37  ;;  %v2340_v31 = vmul.f32 1.442695, %v2333_v47 }
 0x363   :  { %2561 = vpow2.f32 %v2110_v60  ;;  %v2116_v0 = vmul.f32 1.442695, %v2109_v2  ;;  %v2166_v21 = vmul.f32 1.442695, %v2162_v9  ;;  %v3987_v56 = vpop.f32.mrb[22].mxu1  ;;  %v2136_v6 = vsub.f32 %v3838_v51, %v3961_v35 }
 0x364   :  { %2563 = vpow2.f32 %v2338_v19  ;;  %v3985_v57 = vpop.f32.mrb[24].mxu0  ;;  %v2163_v63 = vsub.f32 %v3849_v33, %v3947_v46  ;;  %v2137_v14 = vsub.f32 %v3844_v7, %v3967_v20  ;;  %v3997_v61 = vpop.f32.mrb[23].mxu1  ;;  %v2190_v59 = vsub.f32 %v3859_v1, %v3944_v28 }
 0x365   :  { %2565 = vpow2.f32 %v2340_v31  ;;  %v3995_v34 = vpop.f32.mrb[25].mxu0  ;;  %v2191_v32 = vsub.f32 %v3866_v41, %v3947_v46  ;;  %v2164_v51 = vsub.f32 %v3856_v48, %v3961_v35  ;;  %v2142_v10 = vmul.f32 1.442695, %v2136_v6 }
 0x366   :  { %2567 = vpow2.f32 %v2114_v4  ;;  %v2168_v33 = vmul.f32 1.442695, %v2163_v63  ;;  %v2144_v30 = vmul.f32 1.442695, %v2137_v14  ;;  %v2194_v7 = vmul.f32 1.442695, %v2190_v59 }
 0x367   :  { %2569 = vpow2.f32 %v2112_v11  ;;  %v2196_v54 = vmul.f32 1.442695, %v2191_v32  ;;  %v4005_v37 = vpop.f32.mrb[24].mxu1  ;;  %v2218_v36 = vsub.f32 %v3875_v26, %v3944_v28  ;;  %v2170_v60 = vmul.f32 1.442695, %v2164_v51 }
 0x368   :  { %2571 = vpow2.f32 %v2116_v0  ;;  %v4009_v1 = vpop.f32.mrb[26].mxu0  ;;  %v4011_v41 = vpop.f32.mrb[25].mxu1  ;;  %v2165_v48 = vsub.f32 %v3862_v53, %v3967_v20  ;;  %v2219_v9 = vsub.f32 %v3882_v3, %v3947_v46  ;;  %v2192_v5 = vsub.f32 %v3872_v8, %v3961_v35 }
 0x369   :  { %2573 = vpow2.f32 %v2138_v43  ;;  %v4017_v62 = vpop.f32.mrb[27].mxu0  ;;  %v2222_v39 = vmul.f32 1.442695, %v2218_v36  ;;  %v2193_v26 = vsub.f32 %v3878_v29, %v3967_v20  ;;  %v2220_v2 = vsub.f32 %v3888_v55, %v3961_v35 }
 0x36a   :  { %2575 = vpow2.f32 %v2140_v38  ;;  %v2172_v11 = vmul.f32 1.442695, %v2165_v48  ;;  %v2224_v47 = vmul.f32 1.442695, %v2219_v9  ;;  %v4027_v3 = vpop.f32.mrb[26].mxu1  ;;  %v2246_v8 = vsub.f32 %v3891_v45, %v3944_v28 }
 0x36b   :  { %v4025_v53 = vpop.eup %2557  ;;  %2577 = vpow2.f32 %v2166_v21  ;;  %v2198_v43 = vmul.f32 1.442695, %v2192_v5  ;;  %v4029_v19 = vmul.f32 1.442695, %v2193_v26  ;;  %v4037_v38 = vpop.f32.mrb[27].mxu1  ;;  %v2221_v55 = vsub.f32 %v3894_v25, %v3967_v20 }
 0x36c   :  { %v4033_v4 = vpop.eup %2559  ;;  %2579 = vpow2.f32 %v2142_v10  ;;  %v4035_v29 = vpop.f32.mrb[28].mxu0  ;;  %v4039_v31 = vmul.f32 1.442695, %v2220_v2  ;;  %v2247_v0 = vsub.f32 %v3898_v12, %v3947_v46  ;;  %v4047_v45 = vmul.f32 1.442695, %v2246_v8 }
 0x36d   :  { %v2562_v21 = vpop.eup %2561  ;;  %2581 = vpow2.f32 %v2168_v33  ;;  %v4045_v6 = vpop.f32.mrb[29].mxu0  ;;  %v2248_v63 = vsub.f32 %v3904_v15, %v3961_v35  ;;  %v2274_v14 = vsub.f32 %v3907_v42, %v3944_v28  ;;  %v4056_v25 = vmul.f32 1.442695, %v2221_v55 }
 0x36e   :  { %v4053_v59 = vpop.eup %2563  ;;  %v2126_v32 = vmul.f32 %v2562_v21, %v3950_v44  ;;  %2583 = vpow2.f32 %v2144_v30  ;;  %v4058_v12 = vmul.f32 1.442695, %v2247_v0  ;;  %v4062_v10 = vpop.f32.mrb[28].mxu1  ;;  %v2249_v42 = vsub.f32 %v3910_v49, %v3967_v20 }
 0x36f   :  { %4198 = vst [vmem:[#allocation15_spill] sm:$0xff] %v4053_v59  ;;  %v4060_v51 = vpop.eup %2565  ;;  %2585 = vpow2.f32 %v2194_v7  ;;  %v4064_v33 = vmul.f32 1.442695, %v2248_v63  ;;  %v4066_v15 = vmul.f32 1.442695, %v2274_v14  ;;  %v4072_v30 = vpop.f32.mrb[29].mxu1  ;;  %v2275_v48 = vsub.f32 %v3914_v50, %v3947_v46 }
 0x370   :  { %4199 = vst [vmem:[#allocation16_spill] sm:$0xff] %v4060_v51  ;;  %v2568_v36 = vpop.eup %2567  ;;  %2587 = vpow2.f32 %v2196_v54  ;;  %v4070_v44 = vpop.f32.mrb[30].mxu0  ;;  %v2276_v7 = vsub.f32 %v3920_v40, %v3961_v35  ;;  %v2302_v9 = vsub.f32 %v3923_v13, %v3944_v28  ;;  %v4083_v54 = vmul.f32 1.442695, %v2249_v42 }
 0x371   :  { %v2570_v5 = vpop.eup %2569  ;;  %v2128_v26 = vmul.f32 %v2568_v36, %v3969_v17  ;;  %2589 = vpow2.f32 %v2170_v60  ;;  %v4081_v49 = vpop.f32.mrb[31].mxu0  ;;  %v2277_v2 = vsub.f32 %v3926_v23, %v3967_v20  ;;  %v4088_v55 = vmul.f32 1.442695, %v2275_v48 }
 0x372   :  { %v2572_v8 = vpop.eup %2571  ;;  %v2127_v50 = vmul.f32 %v2570_v5, %v3956_v16  ;;  %2591 = vpow2.f32 %v2222_v39  ;;  %v4090_v40 = vmul.f32 1.442695, %v2276_v7  ;;  %v4093_v17 = vpop.f32.mrb[30].mxu1  ;;  %v4095_v60 = vmul.f32 1.442695, %v2302_v9 }
 0x373   :  { %v2574_v13 = vpop.eup %2573  ;;  %v2129_v28 = vmul.f32 %v2572_v8, %v3976_v58  ;;  %2593 = vpow2.f32 %v2172_v11  ;;  %v4097_v0 = vmul.f32 1.442695, %v2277_v2  ;;  %v4102_v39 = vpop.f32.mrb[31].mxu1 }
 0x374   :  { %v2576_v63 = vpop.eup %2575  ;;  %v2146_v23 = vadd.f32 %v2574_v13, %v2562_v21  ;;  %v2154_v14 = vmul.f32 %v2574_v13, %v3978_v22  ;;  %2595 = vpow2.f32 %v2224_v47  ;;  %v4100_v16 = vpop.f32.mrb[32].mxu0 }
 0x375   :  { %v2578_v58 = vpop.eup %2577  ;;  %v2147_v11 = vadd.f32 %v2576_v63, %v2570_v5  ;;  %v2155_v48 = vmul.f32 %v2576_v63, %v3983_v27  ;;  %2597 = vpow2.f32 %v2198_v43  ;;  %v4107_v7 = vpop.f32.mrb[33].mxu0 }
 0x376   :  { %v2580_v9 = vpop.eup %2579  ;;  %v2158_v22 = vadd.f32 %v2154_v14, %v2126_v32  ;;  %v2174_v47 = vadd.f32 %v2578_v58, %v2146_v23  ;;  %v2182_v2 = vmul.f32 %v2578_v58, %v3985_v57  ;;  %2599 = vpow2.f32 %v4029_v19  ;;  %v4115_v27 = vpop.f32.mrb[32].mxu1 }
 0x377   :  { %v2582_v13 = vpop.eup %2581  ;;  %v2159_v51 = vadd.f32 %v2155_v48, %v2127_v50  ;;  %v2148_v42 = vadd.f32 %v2580_v9, %v2568_v36  ;;  %v2156_v5 = vmul.f32 %v2580_v9, %v3987_v56  ;;  %2601 = vpow2.f32 %v4039_v31  ;;  %v4121_v57 = vpop.f32.mrb[33].mxu1 }
 0x378   :  { %v2584_v43 = vpop.eup %2583  ;;  %v2186_v63 = vadd.f32 %v2182_v2, %v2158_v22  ;;  %v2175_v59 = vadd.f32 %v2582_v13, %v2147_v11  ;;  %v2183_v21 = vmul.f32 %v2582_v13, %v3995_v34  ;;  %2603 = vpow2.f32 %v4047_v45  ;;  %v4119_v32 = vpop.f32.mrb[34].mxu0 }
 0x379   :  { %v2586_v19 = vpop.eup %2585  ;;  %v2160_v50 = vadd.f32 %v2156_v5, %v2128_v26  ;;  %v2149_v36 = vadd.f32 %v2584_v43, %v2572_v8  ;;  %v2157_v56 = vmul.f32 %v2584_v43, %v3997_v61  ;;  %2605 = vpow2.f32 %v4056_v25  ;;  %v4125_v31 = vpop.f32.mrb[35].mxu0 }
 0x37a   :  { %v2588_v23 = vpop.eup %2587  ;;  %v2187_v14 = vadd.f32 %v2183_v21, %v2159_v51  ;;  %v2202_v58 = vadd.f32 %v2586_v19, %v2174_v47  ;;  %v2210_v34 = vmul.f32 %v2586_v19, %v4009_v1  ;;  %2607 = vpow2.f32 %v4058_v12  ;;  %v4131_v26 = vpop.f32.mrb[34].mxu1 }
 0x37b   :  { %v2590_v45 = vpop.eup %2589  ;;  %v2161_v11 = vadd.f32 %v2157_v56, %v2129_v28  ;;  %v2203_v48 = vadd.f32 %v2588_v23, %v2175_v59  ;;  %v2211_v9 = vmul.f32 %v2588_v23, %v4017_v62  ;;  %2609 = vpow2.f32 %v4064_v33  ;;  %v4135_v1 = vpop.f32.mrb[35].mxu1 }
 0x37c   :  { %v2592_v61 = vpop.eup %2591  ;;  %v2214_v25 = vadd.f32 %v2210_v34, %v2186_v63  ;;  %v2176_v8 = vadd.f32 %v2590_v45, %v2148_v42  ;;  %v2184_v22 = vmul.f32 %v2590_v45, %v4005_v37  ;;  %2611 = vpow2.f32 %v4066_v15  ;;  %v1738_v51 = vpop.f32.mrb[36].mxu0 }
 0x37d   :  { %v2594_v12 = vpop.eup %2593  ;;  %v2215_v21 = vadd.f32 %v2211_v9, %v2187_v14  ;;  %v2230_v28 = vadd.f32 %v2592_v61, %v2202_v58  ;;  %v2238_v59 = vmul.f32 %v2592_v61, %v4035_v29  ;;  %2613 = vpow2.f32 %v4083_v54  ;;  %v1740_v62 = vpop.f32.mrb[37].mxu0 }
 0x37e   :  { %v2596_v33 = vpop.eup %2595  ;;  %v2188_v47 = vadd.f32 %v2184_v22, %v2160_v50  ;;  %v2177_v2 = vadd.f32 %v2594_v12, %v2149_v36  ;;  %v2185_v42 = vmul.f32 %v2594_v12, %v4011_v41  ;;  %2615 = vpow2.f32 %v4088_v55  ;;  %v1917_v43 = vpop.f32.mrb[36].mxu1 }
 0x37f   :  { %v2598_v37 = vpop.eup %2597  ;;  %v2242_v15 = vadd.f32 %v2238_v59, %v2214_v25  ;;  %v2231_v13 = vadd.f32 %v2596_v33, %v2203_v48  ;;  %v2239_v5 = vmul.f32 %v2596_v33, %v4045_v6  ;;  %2617 = vpow2.f32 %v4090_v40  ;;  %v1919_v50 = vpop.f32.mrb[37].mxu1 }
 0x380   :  { %v2600_v63 = vpop.eup %2599  ;;  %v2189_v29 = vadd.f32 %v2185_v42, %v2161_v11  ;;  %v2204_v19 = vadd.f32 %v2598_v37, %v2176_v8  ;;  %v2212_v54 = vmul.f32 %v2598_v37, %v4027_v3  ;;  %2619 = vpow2.f32 %v4095_v60 }
 0x381   :  { %v2602_v36 = vpop.eup %2601  ;;  %v2243_v41 = vadd.f32 %v2239_v5, %v2215_v21  ;;  %v2205_v56 = vadd.f32 %v2600_v63, %v2177_v2  ;;  %v2213_v55 = vmul.f32 %v2600_v63, %v4037_v38  ;;  %2621 = vpow2.f32 %v4097_v0 }
 0x382   :  { %v2604_v23 = vpop.eup %2603  ;;  %v2216_v6 = vadd.f32 %v2212_v54, %v2188_v47  ;;  %v2232_v14 = vadd.f32 %v2602_v36, %v2204_v19  ;;  %v2240_v40 = vmul.f32 %v2602_v36, %v4062_v10  ;;  %v4200_v58 = vsub.f32 %v3930_v18, %v3947_v46 }
 0x383   :  { %v2606_v3 = vpop.eup %2605  ;;  %v2217_v45 = vadd.f32 %v2213_v55, %v2189_v29  ;;  %v2266_v60 = vmul.f32 %v2604_v23, %v4070_v44  ;;  %v4201_v11 = vsub.f32 %v3936_v24, %v3961_v35  ;;  %v2258_v38 = vadd.f32 %v2604_v23, %v2230_v28  ;;  %v4203_v55 = vld [vmem:[#allocation16_spill] sm:$0xff] }
 0x384   :  { %v2308_v34 = vmul.f32 1.442695, %v4200_v58  ;;  %v2608_v9 = vpop.eup %2607  ;;  %v2244_v0 = vadd.f32 %v2240_v40, %v2216_v6  ;;  %v2233_v61 = vadd.f32 %v2606_v3, %v2205_v56  ;;  %v2241_v25 = vmul.f32 %v2606_v3, %v4072_v30 }
 0x385   :  { %v2310_v48 = vmul.f32 1.442695, %v4201_v11  ;;  %v2610_v10 = vpop.eup %2609  ;;  %v2270_v8 = vadd.f32 %v2266_v60, %v2242_v15  ;;  %v2267_v18 = vmul.f32 %v2608_v9, %v4081_v49  ;;  %v2350_v46 = vmul.f32 %v4025_v53, %v1738_v51 }
 0x386   :  { %2623 = vpow2.f32 %v2308_v34  ;;  %v2612_v22 = vpop.eup %2611  ;;  %v2245_v44 = vadd.f32 %v2241_v25, %v2217_v45  ;;  %v2268_v12 = vmul.f32 %v2610_v10, %v4093_v17  ;;  %v2305_v24 = vsub.f32 %v3940_v52, %v3967_v20  ;;  %v4202_v52 = vld [vmem:[#allocation15_spill] sm:$0xff] }
 0x387   :  { %2625 = vpow2.f32 %v2310_v48  ;;  %v2259_v35 = vadd.f32 %v2608_v9, %v2231_v13  ;;  %v2614_v21 = vpop.eup %2613  ;;  %v2271_v28 = vadd.f32 %v2267_v18, %v2243_v41  ;;  %v2294_v30 = vmul.f32 %v2612_v22, %v4100_v16 }
 0x388   :  { %v2286_v59 = vadd.f32 %v2612_v22, %v2258_v38  ;;  %v2351_v33 = vmul.f32 %v4033_v4, %v1740_v62  ;;  %v2616_v47 = vpop.eup %2615  ;;  %v2272_v49 = vadd.f32 %v2268_v12, %v2244_v0  ;;  %v2269_v2 = vmul.f32 %v2614_v21, %v4102_v39 }
 0x389   :  { %v2312_v51 = vmul.f32 1.442695, %v2305_v24  ;;  %v2260_v42 = vadd.f32 %v2610_v10, %v2232_v14  ;;  %v2618_v37 = vpop.eup %2617  ;;  %v2298_v15 = vadd.f32 %v2294_v30, %v2270_v8  ;;  %v2295_v17 = vmul.f32 %v2616_v47, %v4107_v7 }
 0x38a   :  { %v2287_v5 = vadd.f32 %v2616_v47, %v2259_v35  ;;  %v2352_v20 = vmul.f32 %v4202_v52, %v1917_v43  ;;  %v2620_v13 = vpop.eup %2619  ;;  %v2273_v63 = vadd.f32 %v2269_v2, %v2245_v44  ;;  %v2296_v16 = vmul.f32 %v2618_v37, %v4115_v27 }
 0x38b   :  { %2627 = vpow2.f32 %v2312_v51  ;;  %v2288_v29 = vadd.f32 %v2618_v37, %v2260_v42  ;;  %v2622_v62 = vpop.eup %2621  ;;  %v2299_v19 = vadd.f32 %v2295_v17, %v2271_v28  ;;  %v2322_v54 = vmul.f32 %v2620_v13, %v4119_v32 }
 0x38c   :  { %v2314_v39 = vadd.f32 %v2620_v13, %v2286_v59  ;;  %v2261_v36 = vadd.f32 %v2614_v21, %v2233_v61  ;;  %v2300_v41 = vadd.f32 %v2296_v16, %v2272_v49  ;;  %v2297_v56 = vmul.f32 %v2622_v62, %v4121_v57 }
 0x38d   :  { %v2353_v7 = vmul.f32 %v4203_v55, %v1919_v50  ;;  %v2326_v23 = vadd.f32 %v2322_v54, %v2298_v15 }
 0x38e   :  { %v2342_v43 = vadd.f32 %v4025_v53, %v2314_v39  ;;  %v2289_v6 = vadd.f32 %v2622_v62, %v2261_v36  ;;  %v2301_v40 = vadd.f32 %v2297_v56, %v2273_v63 }
 0x38f   :  { %v2354_v34 = vadd.f32 %v2350_v46, %v2326_v23 }
 0x390   :  { %v2624_v14 = vpop.eup %2623  ;;  %2629 = vrcp.f32 %v2342_v43 }
 0x391   :  { %v2626_v27 = vpop.eup %2625  ;;  %v2323_v58 = vmul.f32 %v2624_v14, %v4125_v31  ;;  %v2315_v3 = vadd.f32 %v2624_v14, %v2287_v5 }
 0x392   :  { %v2324_v32 = vmul.f32 %v2626_v27, %v4131_v26  ;;  %v2316_v45 = vadd.f32 %v2626_v27, %v2288_v29 }
 0x393   :  { %v2327_v60 = vadd.f32 %v2323_v58, %v2299_v19  ;;  %v2343_v57 = vadd.f32 %v4033_v4, %v2315_v3 }
 0x394   :  { %v2328_v11 = vadd.f32 %v2324_v32, %v2300_v41  ;;  %v2344_v50 = vadd.f32 %v4202_v52, %v2316_v45 }
 0x395   :  { %v2355_v48 = vadd.f32 %v2351_v33, %v2327_v60  ;;  %2631 = vrcp.f32 %v2343_v57  ;;  %v2628_v53 = vpop.eup %2627 }
 0x396   :  { %v2356_v38 = vadd.f32 %v2352_v20, %v2328_v11  ;;  %2633 = vrcp.f32 %v2344_v50  ;;  %v2325_v9 = vmul.f32 %v2628_v53, %v4135_v1  ;;  %v2317_v31 = vadd.f32 %v2628_v53, %v2289_v6 }
 0x398   :  { %v2329_v0 = vadd.f32 %v2325_v9, %v2301_v40  ;;  %v2345_v61 = vadd.f32 %v4203_v55, %v2317_v31 }
 0x39a   :  { %v2630_v25 = vpop.eup %2629  ;;  %v2357_v26 = vadd.f32 %v2353_v7, %v2329_v0  ;;  %2635 = vrcp.f32 %v2345_v61 }
 0x39b   :  { %v2362_v10 = vmul.f32 %v2630_v25, %v2354_v34 }
 0x39d   :  { %2366 = vst [vmem:[#allocation11] sm:$0xff] %v2362_v10 }
 0x39f   :  { %v2632_v4 = vpop.eup %2631 }
 0x3a0   :  { %v2634_v8 = vpop.eup %2633  ;;  %v2363_v18 = vmul.f32 %v2632_v4, %v2355_v48 }
 0x3a1   :  { %v2364_v46 = vmul.f32 %v2634_v8, %v2356_v38 }
 0x3a2   :  { %2367 = vst [vmem:[#allocation11 + $0x8] sm:$0xff] %v2363_v18 }
 0x3a3   :  { %2369 = vst [vmem:[#allocation11 + $0x10] sm:$0xff] %v2364_v46 }
 0x3a4   :  { %v2636_v22 = vpop.eup %2635 }
 0x3a5   :  { %v2365_v44 = vmul.f32 %v2636_v22, %v2357_v26 }
 0x3a7   :  { %2370 = vst [vmem:[#allocation11 + $0x18] sm:$0xff] %v2365_v44 }
 0x3a8   :  { %2716 = shalt.err (!%p2713_p0)
}
 0x3a9   :  { %s2717_s13 = scalar_lea.hbm %s4195_s3, 512 }
 0x3aa   :  { %p2718_p1 = scmp.ne.s32.totalorder %s4195_s3, %s2717_s13  ;;  %p2721_p2 = scmp.lt.u32.totalorder %s2717_s13, %s4195_s3 }
 0x3ac   :  { %p2723_p3 = pnand %p2721_p2, %p2718_p1 }
 0x3ae   :  { %2726 = shalt.err (!%p2723_p3)
}
 0x3af   :  { %2382 = dma.vmem_to_hbm [thread:$0]  %s2377_s10, 512, %s4195_s3, [#allocation7], %s2737_s1, %s2737_s1, %s2738_s9  }
 0x3b0   :  { %2731 = dma.done.wait [#allocation7], 512  }
 0x3b1   :  { %2732 = vsyncadd [#allocation7], 4294966784 }
 0x3b2   :  { %2386 = vsyncpa [#allocation6], 1 }
 0x3b3   :  { %2387 = vsyncpa [#allocation9], 1 }
 0x3b4   :  { %2388 = vsyncpa [#allocation7], 1 }

</bundles_post_ra>
